<compile_context>
chip_gen: v7x
topology: tpu7x:2x2x1
jax: 0.10.0
libtpu: 0.0.40
codegen_flags: <defaults>
</compile_context>

<pallas_src>
import math
import numpy as np
import jax
import jax.numpy as jnp
from jax.experimental import pallas as pl
from jax.experimental.pallas import tpu as pltpu


# ----------------------------- Pallas kernel ------------------------------ #
def sparse_mlp_kernel(x_ref, w1_ref, b1_ref, w2_ref, b2_ref, w3_ref, b3_ref,
                      o_ref):
    # x tile arrives f32 (no wrapper-side astype HBM pass); cast on the VPU
    # right before the fc1 dot — cheap and hidden under the MXU.
    x = x_ref[...].astype(jnp.bfloat16)
    # fc1 + ReLU (bf16 matmul, f32 accumulate, f32 bias/activation)
    h1 = jnp.dot(x, w1_ref[...], preferred_element_type=jnp.float32)
    h1 = jnp.maximum(h1 + b1_ref[...], 0.0)
    # fc2 (block-sparse weights; theta=0.0 at __init__ -> dense path) + ReLU
    # TODO(synk): for theta > 0, skip w2 at *tile* granularity (>=128-wide N
    # tiles and/or 256-512-deep K tiles) via PrefetchScalarGridSpec block
    # indices + pl.when; the module's 32x32 blocks are below vreg/MXU
    # granularity, so skipping them saves neither vmatmuls nor DMA bytes.
    h2 = jnp.dot(h1.astype(jnp.bfloat16), w2_ref[...],
                 preferred_element_type=jnp.float32)
    h2 = jnp.maximum(h2 + b2_ref[...], 0.0)
    # fc3 (no activation); output padded to 128 lanes for a lane-dense store.
    o = jnp.dot(h2.astype(jnp.bfloat16), w3_ref[...],
                preferred_element_type=jnp.float32)
    o_ref[...] = o + b3_ref[...]
    # TODO(synk): torch.cuda.synchronize()/memory_allocated() prints in the
    # reference forward are CUDA-memory instrumentation with no TPU equivalent.


def _round_up(n, m):
    return ((n + m - 1) // m) * m


def _pick_batch_tile(batch, tm):
    """Batch tile with no wrapper padding (Pallas masks the partial last block).

    - batch > tm: use tm (multiple grid steps; last block partial).
    - 32 <= batch <= tm: split into >= 2 grid steps so both v7x TensorCores get
      work on the 'parallel' batch axis; round to 16 for bf16 sublane packing.
    - tiny batch: full-extent block (valid even when not 8/16-aligned).
    """
    if batch > tm:
        return tm
    if batch >= 32:
        return min(tm, _round_up(pl.cdiv(batch, 2), 16))
    return batch


def sparse_mlp_forward(x_nchw, params, out_dim, *, tm=256):
    """x_nchw: [B, C, H, W] float32 -> logits [B, out_dim] float32."""
    w1, b1, w2, b2, w3, b3 = params          # bf16 weights, f32 biases (padded fc3)
    B = x_nchw.shape[0]
    d_in = int(np.prod(x_nchw.shape[1:]))
    x = x_nchw.reshape(B, d_in)              # nn.Flatten(); stays f32, no pad
    out_pad = w3.shape[1]                    # 128 (lane-dense)

    tm_eff = _pick_batch_tile(B, tm)
    grid = (pl.cdiv(B, tm_eff),)

    # Weights/biases held resident across the grid (constant index_map ->
    # fetched once, never re-DMA'd while x/out tiles stream).
    resident = lambda shape: pl.BlockSpec(shape, lambda i: (0, 0))

    out = pl.pallas_call(
        sparse_mlp_kernel,
        out_shape=jax.ShapeDtypeStruct((B, out_pad), jnp.float32),
        grid=grid,
        in_specs=[
            pl.BlockSpec((tm_eff, d_in), lambda i: (i, 0)),   # f32 x tile
            resident(w1.shape), resident(b1.shape),
            resident(w2.shape), resident(b2.shape),
            resident(w3.shape), resident(b3.shape),
        ],
        out_specs=pl.BlockSpec((tm_eff, out_pad), lambda i: (i, 0)),
        compiler_params=pltpu.CompilerParams(
            dimension_semantics=("parallel",),
            vmem_limit_bytes=32 << 20,
        ),
    )(x, w1, b1, w2, b2, w3, b3)

    return out[:, :out_dim]


# ------------------------ parameter setup (plain JAX) ---------------------- #
def linear_init(key, fan_in, fan_out):
    """Deterministic init mimicking PyTorch Linear: U(-1/sqrt(fan_in), +)."""
    kw, kb = jax.random.split(key)
    bound = 1.0 / math.sqrt(fan_in)
    # Stored transposed: [in_features, out_features]
    w = jax.random.uniform(kw, (fan_in, fan_out), jnp.float32, -bound, bound)
    b = jax.random.uniform(kb, (1, fan_out), jnp.float32, -bound, bound)
    return w, b


def zero_blocks(mat, theta):
    """Replicates SparseMLP.zero_blocks on a [rows, cols] matrix (numpy).

    Note: like the PyTorch reference, theta=0.0 still zeroes the block(s)
    whose |sum| equals the minimum (cutoff_idx = 0), including ties.
    """
    mat = np.array(mat)
    size = 32
    rows, cols = mat.shape
    block_sums, block_positions = [], []
    for r in range(0, rows, size):
        for c in range(0, cols, size):
            er, ec = min(r + size, rows), min(c + size, cols)
            block_sums.append(abs(float(mat[r:er, c:ec].sum())))
            block_positions.append((r, c, er, ec))
    if block_sums:
        sorted_sums = sorted(block_sums)
        cutoff_idx = int(len(sorted_sums) * theta)
        cutoff_value = sorted_sums[cutoff_idx]
        for s, (r, c, er, ec) in zip(block_sums, block_positions):
            if s <= cutoff_value:
                mat[r:er, c:ec] = 0.0
    return mat


def make_params(key, in_dim, out_dim, theta=0.0, out_pad=128):
    k1, k2, k3 = jax.random.split(key, 3)
    w1, b1 = linear_init(k1, in_dim, 1024)   # fc1: in_dim -> 1024
    w2, b2 = linear_init(k2, 1024, 512)      # fc2: 1024 -> 512
    w3, b3 = linear_init(k3, 512, out_dim)   # fc3: 512 -> out_dim

    # apply_threshold() on fc2 at __init__ (theta = 0.0): operates on the
    # PyTorch-layout weight [out=512, in=1024] and bias viewed as [512, 1].
    w2_pt = zero_blocks(np.array(w2).T, theta)                # [512, 1024]
    w2 = jnp.asarray(w2_pt.T)                                 # back to [1024, 512]
    b2_col = zero_blocks(np.array(b2).reshape(-1, 1), theta)  # [512, 1]
    b2 = jnp.asarray(b2_col.reshape(1, -1))

    # Pad fc3 to a lane-dense 128-wide output (zero columns; sliced off later).
    pad = out_pad - out_dim
    w3 = jnp.pad(w3, ((0, 0), (0, pad)))
    b3 = jnp.pad(b3, ((0, 0), (0, pad)))

    # Weights in bf16 (halves HBM traffic, native MXU rate); biases stay f32.
    # TODO(synk): for weight-DMA-bound tiny-batch serving, quantize w1/w2 to
    # int8 (v5e/v6e) or fp8-e4m3 (v7x has no integer MXU path) with
    # per-output-channel scales applied after the f32 accumulate, and/or keep
    # weights resident across calls (cross-pallas_call prefetch) so the ~3 MiB
    # weight fetch and launch overhead are not paid per inference.
    return (w1.astype(jnp.bfloat16), b1,
            w2.astype(jnp.bfloat16), b2,
            w3.astype(jnp.bfloat16), b3)


# ---------------------------------- main ----------------------------------- #
if __name__ == "__main__":
    key = jax.random.PRNGKey(0)
    kx, kp = jax.random.split(key)

    # in_dimension = C*H*W = 4*16*16 = 1024, out_dimension = 10
    B, C, H, W = 2, 4, 16, 16
    out_dim = 10
    x = jax.random.normal(kx, (B, C, H, W), jnp.float32)

    params = make_params(kp, C * H * W, out_dim, theta=0.0)

    out = sparse_mlp_forward(x, params, out_dim)
    out = jax.block_until_ready(out)
    assert out.shape == (B, out_dim)

    # Pure-JAX reference with the SAME bf16 params / f32 accumulation.
    # (bf16 weights/activations -> matches this reference to 5e-3, not a
    #  bit-faithful f32 PyTorch SparseMLP.)
    w1, b1, w2, b2, w3, b3 = params
    xf = x.reshape(B, -1).astype(jnp.bfloat16)
    r = jnp.maximum(jnp.dot(xf, w1, preferred_element_type=jnp.float32) + b1, 0.0)
    r = jnp.maximum(jnp.dot(r.astype(jnp.bfloat16), w2,
                            preferred_element_type=jnp.float32) + b2, 0.0)
    ref = (jnp.dot(r.astype(jnp.bfloat16), w3,
                   preferred_element_type=jnp.float32) + b3)[:, :out_dim]
    np.testing.assert_allclose(np.array(out), np.array(ref), rtol=5e-3, atol=5e-3)

    print("KERNEL_OK")
</pallas_src>

<mosaic_0001>
module attributes {stable_mosaic.version = 11 : i64} {
  func.func @sparse_mlp_kernel(%arg0: i32, %arg1: memref<2x1024xf32, #tpu.memory_space<vmem>>, %arg2: memref<1024x1024xbf16, #tpu.memory_space<vmem>>, %arg3: memref<1x1024xf32, #tpu.memory_space<vmem>>, %arg4: memref<1024x512xbf16, #tpu.memory_space<vmem>>, %arg5: memref<1x512xf32, #tpu.memory_space<vmem>>, %arg6: memref<512x128xbf16, #tpu.memory_space<vmem>>, %arg7: memref<1x128xf32, #tpu.memory_space<vmem>>, %arg8: memref<2x128xf32, #tpu.memory_space<vmem>>) attributes {dimension_semantics = [#tpu.dimension_semantics<parallel>], iteration_bounds = array<i64: 1>, scalar_prefetch = 0 : i64, scratch_operands = 0 : i64, tpu.core_type = #tpu.core_type<tc>, window_params = [{transform_indices = @transform_0, window_bounds = array<i64: 2, 1024>}, {pipeline_mode = #tpu.pipeline_mode<synchronous>, transform_indices = @transform_1, window_bounds = array<i64: 1024, 1024>}, {pipeline_mode = #tpu.pipeline_mode<synchronous>, transform_indices = @transform_2, window_bounds = array<i64: 1, 1024>}, {pipeline_mode = #tpu.pipeline_mode<synchronous>, transform_indices = @transform_3, window_bounds = array<i64: 1024, 512>}, {pipeline_mode = #tpu.pipeline_mode<synchronous>, transform_indices = @transform_4, window_bounds = array<i64: 1, 512>}, {pipeline_mode = #tpu.pipeline_mode<synchronous>, transform_indices = @transform_5, window_bounds = array<i64: 512, 128>}, {pipeline_mode = #tpu.pipeline_mode<synchronous>, transform_indices = @transform_6, window_bounds = array<i64: 1, 128>}, {transform_indices = @transform_7, window_bounds = array<i64: 2, 128>}]} {
    %c0 = arith.constant 0 : index
    %c0_0 = arith.constant 0 : index
    %0 = vector.load %arg1[%c0, %c0_0] : memref<2x1024xf32, #tpu.memory_space<vmem>>, vector<2x1024xf32>
    %1 = arith.truncf %0 : vector<2x1024xf32> to vector<2x1024xbf16>
    %c0_1 = arith.constant 0 : index
    %c0_2 = arith.constant 0 : index
    %2 = vector.load %arg2[%c0_1, %c0_2] : memref<1024x1024xbf16, #tpu.memory_space<vmem>>, vector<1024x1024xbf16>
    %cst = arith.constant dense<0.000000e+00> : vector<2x1024xf32>
    %3 = tpu.matmul %1, %2, %cst {dimension_numbers = #tpu.dot_dimension_numbers<[1], [0], [0], [1], [0, 0, 1, 1], [], []>} : vector<2x1024xbf16>, vector<1024x1024xbf16>, vector<2x1024xf32> -> vector<2x1024xf32>
    %c0_3 = arith.constant 0 : index
    %c0_4 = arith.constant 0 : index
    %4 = vector.load %arg3[%c0_3, %c0_4] : memref<1x1024xf32, #tpu.memory_space<vmem>>, vector<1x1024xf32>
    %5 = vector.broadcast %4 : vector<1x1024xf32> to vector<2x1024xf32>
    %6 = arith.addf %3, %5 : vector<2x1024xf32>
    %cst_5 = arith.constant 0.000000e+00 : f32
    %7 = vector.broadcast %cst_5 : f32 to vector<2x1024xf32>
    %8 = arith.maximumf %6, %7 : vector<2x1024xf32>
    %9 = arith.truncf %8 : vector<2x1024xf32> to vector<2x1024xbf16>
    %c0_6 = arith.constant 0 : index
    %c0_7 = arith.constant 0 : index
    %10 = vector.load %arg4[%c0_6, %c0_7] : memref<1024x512xbf16, #tpu.memory_space<vmem>>, vector<1024x512xbf16>
    %cst_8 = arith.constant dense<0.000000e+00> : vector<2x512xf32>
    %11 = tpu.matmul %9, %10, %cst_8 {dimension_numbers = #tpu.dot_dimension_numbers<[1], [0], [0], [1], [0, 0, 1, 1], [], []>} : vector<2x1024xbf16>, vector<1024x512xbf16>, vector<2x512xf32> -> vector<2x512xf32>
    %c0_9 = arith.constant 0 : index
    %c0_10 = arith.constant 0 : index
    %12 = vector.load %arg5[%c0_9, %c0_10] : memref<1x512xf32, #tpu.memory_space<vmem>>, vector<1x512xf32>
    %13 = vector.broadcast %12 : vector<1x512xf32> to vector<2x512xf32>
    %14 = arith.addf %11, %13 : vector<2x512xf32>
    %cst_11 = arith.constant 0.000000e+00 : f32
    %15 = vector.broadcast %cst_11 : f32 to vector<2x512xf32>
    %16 = arith.maximumf %14, %15 : vector<2x512xf32>
    %17 = arith.truncf %16 : vector<2x512xf32> to vector<2x512xbf16>
    %c0_12 = arith.constant 0 : index
    %c0_13 = arith.constant 0 : index
    %18 = vector.load %arg6[%c0_12, %c0_13] : memref<512x128xbf16, #tpu.memory_space<vmem>>, vector<512x128xbf16>
    %cst_14 = arith.constant dense<0.000000e+00> : vector<2x128xf32>
    %19 = tpu.matmul %17, %18, %cst_14 {dimension_numbers = #tpu.dot_dimension_numbers<[1], [0], [0], [1], [0, 0, 1, 1], [], []>} : vector<2x512xbf16>, vector<512x128xbf16>, vector<2x128xf32> -> vector<2x128xf32>
    %c0_15 = arith.constant 0 : index
    %c0_16 = arith.constant 0 : index
    %20 = vector.load %arg7[%c0_15, %c0_16] : memref<1x128xf32, #tpu.memory_space<vmem>>, vector<1x128xf32>
    %21 = vector.broadcast %20 : vector<1x128xf32> to vector<2x128xf32>
    %22 = arith.addf %19, %21 : vector<2x128xf32>
    %c0_17 = arith.constant 0 : index
    %c0_18 = arith.constant 0 : index
    %23 = vector.load %arg8[%c0_17, %c0_18] : memref<2x128xf32, #tpu.memory_space<vmem>>, vector<2x128xf32>
    tpu.vector_store %arg8[%c0_17, %c0_18], %22 {strides = array<i32>} : memref<2x128xf32, #tpu.memory_space<vmem>>, vector<2x128xf32>,
    return
  }
  func.func @transform_0(%arg0: i32) -> (i32, i32) {
    %c0_i32 = arith.constant 0 : i32
    %c0_i32_0 = arith.constant 0 : i32
    return %arg0, %c0_i32 : i32, i32
  }
  func.func @transform_1(%arg0: i32) -> (i32, i32) {
    %c0_i32 = arith.constant 0 : i32
    %c0_i32_0 = arith.constant 0 : i32
    %c0_i32_1 = arith.constant 0 : i32
    return %c0_i32, %c0_i32_0 : i32, i32
  }
  func.func @transform_2(%arg0: i32) -> (i32, i32) {
    %c0_i32 = arith.constant 0 : i32
    %c0_i32_0 = arith.constant 0 : i32
    %c0_i32_1 = arith.constant 0 : i32
    return %c0_i32, %c0_i32_0 : i32, i32
  }
  func.func @transform_3(%arg0: i32) -> (i32, i32) {
    %c0_i32 = arith.constant 0 : i32
    %c0_i32_0 = arith.constant 0 : i32
    %c0_i32_1 = arith.constant 0 : i32
    return %c0_i32, %c0_i32_0 : i32, i32
  }
  func.func @transform_4(%arg0: i32) -> (i32, i32) {
    %c0_i32 = arith.constant 0 : i32
    %c0_i32_0 = arith.constant 0 : i32
    %c0_i32_1 = arith.constant 0 : i32
    return %c0_i32, %c0_i32_0 : i32, i32
  }
  func.func @transform_5(%arg0: i32) -> (i32, i32) {
    %c0_i32 = arith.constant 0 : i32
    %c0_i32_0 = arith.constant 0 : i32
    %c0_i32_1 = arith.constant 0 : i32
    return %c0_i32, %c0_i32_0 : i32, i32
  }
  func.func @transform_6(%arg0: i32) -> (i32, i32) {
    %c0_i32 = arith.constant 0 : i32
    %c0_i32_0 = arith.constant 0 : i32
    %c0_i32_1 = arith.constant 0 : i32
    return %c0_i32, %c0_i32_0 : i32, i32
  }
  func.func @transform_7(%arg0: i32) -> (i32, i32) {
    %c0_i32 = arith.constant 0 : i32
    %c0_i32_0 = arith.constant 0 : i32
    return %arg0, %c0_i32 : i32, i32
  }
}

</mosaic_0001>

<bundles_post_ra>
// kernel: tpu_custom_call.1
= control target key start
LH: loop header
LB: loop body
LE: loop exit
PB: predicated region body
PF: predicated region fallthrough
CT: control target
= control target key end

     0   :  { %12 = vsyncpa [#allocation3], 0  ;;  %s8050_s0 = inlined_call_operand.hbm [shape: f32[2,1024], index: 0, kind: input, shape index: {}]   ;;  %s8051_s1 = inlined_call_operand.hbm [shape: bf16[1024,1024], index: 1, kind: input, shape index: {}]   ;;  %s8052_s2 = inlined_call_operand.hbm [shape: f32[1,1024], index: 2, kind: input, shape index: {}]   ;;  %s8053_s3 = inlined_call_operand.hbm [shape: bf16[1024,512], index: 3, kind: input, shape index: {}]   ;;  %s8054_s4 = inlined_call_operand.hbm [shape: f32[1,512], index: 4, kind: input, shape index: {}]   ;;  %s8055_s5 = inlined_call_operand.hbm [shape: bf16[512,128], index: 5, kind: input, shape index: {}]   ;;  %s8056_s6 = inlined_call_operand.hbm [shape: f32[1,128], index: 6, kind: input, shape index: {}]   ;;  %s8057_s7 = inlined_call_operand.hbm [shape: f32[2,128], index: 7, kind: output, shape index: {}]  }
   0x1   :  { %13 = vsyncpa [#allocation6], 0 }
   0x2   :  { %14 = vsyncpa [#allocation9], 0 }
   0x3   :  { %15 = vsyncpa [#allocation12], 0 }
   0x4   :  { %16 = vsyncpa [#allocation4], 0  ;;  %s7760_s24 = smov [#allocation5]   ;;  %s7574_s28 = scalar_lea.hbm %s8051_s1, 65536 }
   0x5   :  { %s32_s25 = sshll.u32 %s7760_s24, 4  ;;  %p7575_p0 = scmp.ne.s32.totalorder %s8051_s1, %s7574_s28  ;;  %s33_s25 = int_to_ptr.vmem [resolvable:$true] %s32_s25 }
   0x6   :  { %p7578_p1 = scmp.lt.u32.totalorder %s7574_s28, %s8051_s1 }
   0x8   :  { %p7580_p2 = pnand %p7578_p1, %p7575_p0 }
   0xa   :  { %7583 = shalt.err (!%p7580_p2)
}
   0xb   :  { %s7584_s10 = scalar_lea.vmem %s33_s25, 65536  ;;  %p7589_p4 = scmp.lt.s32.totalorder %s33_s25, %s33_s25 }
   0xc   :  { %p7585_p3 = scmp.ne.s32.totalorder %s33_s25, %s7584_s10  ;;  %p7590_p5 = scmp.lt.s32.totalorder %s7584_s10, %s7584_s10 }
   0xe   :  { %p7591_p6 = por %p7590_p5, %p7589_p4 }
  0x10   :  { %p7592_p7 = pnand %p7591_p6, %p7585_p3 }
  0x12   :  { %7595 = shalt.err (!%p7592_p7)
}
  0x13   :  { %s7761_s11 = smov 512   ;;  %s7762_s12 = smov 32  }
  0x14   :  { %38 = dma.hbm_to_vmem [thread:$0]  %s8051_s1, 65536, %s33_s25, [#allocation6], %s7761_s11, %s7761_s11, %s7762_s12  }
  0x15   :  { %s7763_s15 = smov [#allocation8]   ;;  %s7596_s19 = scalar_lea.hbm %s8053_s3, 32768 }
  0x16   :  { %s54_s16 = sshll.u32 %s7763_s15, 4  ;;  %p7597_p8 = scmp.ne.s32.totalorder %s8053_s3, %s7596_s19  ;;  %s55_s16 = int_to_ptr.vmem [resolvable:$true] %s54_s16 }
  0x17   :  { %p7600_p9 = scmp.lt.u32.totalorder %s7596_s19, %s8053_s3 }
  0x19   :  { %p7602_p10 = pnand %p7600_p9, %p7597_p8 }
  0x1b   :  { %7605 = shalt.err (!%p7602_p10)
}
  0x1c   :  { %s7606_s24 = scalar_lea.vmem %s55_s16, 32768  ;;  %p7611_p12 = scmp.lt.s32.totalorder %s55_s16, %s55_s16 }
  0x1d   :  { %p7607_p11 = scmp.ne.s32.totalorder %s55_s16, %s7606_s24  ;;  %p7612_p13 = scmp.lt.s32.totalorder %s7606_s24, %s7606_s24 }
  0x1f   :  { %p7613_p0 = por %p7612_p13, %p7611_p12 }
  0x21   :  { %p7614_p1 = pnand %p7613_p0, %p7607_p11 }
  0x23   :  { %7617 = shalt.err (!%p7614_p1)
}
  0x24   :  { %s7764_s1 = smov 256   ;;  %s7765_s25 = smov 16  }
  0x25   :  { %60 = dma.hbm_to_vmem [thread:$0]  %s8053_s3, 32768, %s55_s16, [#allocation9], %s7764_s1, %s7764_s1, %s7765_s25  }
  0x26   :  { %s7766_s28 = smov [#allocation11]   ;;  %s7618_s9 = scalar_lea.hbm %s8055_s5, 4096 }
  0x27   :  { %s76_s29 = sshll.u32 %s7766_s28, 4  ;;  %p7619_p2 = scmp.ne.s32.totalorder %s8055_s5, %s7618_s9  ;;  %s77_s29 = int_to_ptr.vmem [resolvable:$true] %s76_s29 }
  0x28   :  { %p7622_p3 = scmp.lt.u32.totalorder %s7618_s9, %s8055_s5 }
  0x2a   :  { %p7624_p4 = pnand %p7622_p3, %p7619_p2 }
  0x2c   :  { %7627 = shalt.err (!%p7624_p4)
}
  0x2d   :  { %s7628_s14 = scalar_lea.vmem %s77_s29, 4096  ;;  %p7633_p6 = scmp.lt.s32.totalorder %s77_s29, %s77_s29 }
  0x2e   :  { %p7629_p5 = scmp.ne.s32.totalorder %s77_s29, %s7628_s14  ;;  %p7634_p7 = scmp.lt.s32.totalorder %s7628_s14, %s7628_s14 }
  0x30   :  { %p7635_p8 = por %p7634_p7, %p7633_p6 }
  0x32   :  { %p7636_p9 = pnand %p7635_p8, %p7629_p5 }
  0x34   :  { %7639 = shalt.err (!%p7636_p9)
}
  0x35   :  { %s7767_s3 = smov 64   ;;  %s7768_s15 = smov 4  }
  0x36   :  { %82 = dma.hbm_to_vmem [thread:$0]  %s8055_s5, 4096, %s77_s29, [#allocation12], %s7767_s3, %s7767_s3, %s7768_s15  }
  0x37   :  { %s7769_s18 = smov [#allocation2]   ;;  %s7770_s20 = smov [#allocation7]  }
  0x38   :  { %s23_s19 = sshll.u32 %s7769_s18, 4  ;;  %s45_s21 = sshll.u32 %s7770_s20, 4  ;;  %s24_s19 = int_to_ptr.vmem [resolvable:$true] %s23_s19  ;;  %s46_s21 = int_to_ptr.vmem [resolvable:$true] %s45_s21 }
  0x39   :  { %s7640_s24 = scalar_lea.hbm %s8050_s0, 256 }
  0x3a   :  { %p7641_p10 = scmp.ne.s32.totalorder %s8050_s0, %s7640_s24  ;;  %p7644_p11 = scmp.lt.u32.totalorder %s7640_s24, %s8050_s0 }
  0x3c   :  { %p7646_p12 = pnand %p7644_p11, %p7641_p10 }
  0x3e   :  { %7649 = shalt.err (!%p7646_p12)
}
  0x3f   :  { %s7650_s5 = scalar_lea.vmem %s24_s19, 256  ;;  %p7655_p0 = scmp.lt.s32.totalorder %s24_s19, %s24_s19 }
  0x40   :  { %p7651_p13 = scmp.ne.s32.totalorder %s24_s19, %s7650_s5  ;;  %p7656_p1 = scmp.lt.s32.totalorder %s7650_s5, %s7650_s5 }
  0x42   :  { %p7657_p2 = por %p7656_p1, %p7655_p0 }
  0x44   :  { %p7658_p3 = pnand %p7657_p2, %p7651_p13 }
  0x46   :  { %7661 = shalt.err (!%p7658_p3)
}
  0x47   :  { %26 = dma.hbm_to_vmem [thread:$0]  %s8050_s0, 256, %s24_s19, [#allocation3]  }
  0x48   :  { %s7662_s9 = scalar_lea.hbm %s8052_s2, 128 }
  0x49   :  { %p7663_p4 = scmp.ne.s32.totalorder %s8052_s2, %s7662_s9  ;;  %p7666_p5 = scmp.lt.u32.totalorder %s7662_s9, %s8052_s2 }
  0x4b   :  { %p7668_p6 = pnand %p7666_p5, %p7663_p4 }
  0x4d   :  { %7671 = shalt.err (!%p7668_p6)
}
  0x4e   :  { %s7672_s14 = scalar_lea.vmem %s46_s21, 128  ;;  %p7677_p8 = scmp.lt.s32.totalorder %s46_s21, %s46_s21 }
  0x4f   :  { %p7673_p7 = scmp.ne.s32.totalorder %s46_s21, %s7672_s14  ;;  %p7678_p9 = scmp.lt.s32.totalorder %s7672_s14, %s7672_s14 }
  0x51   :  { %p7679_p10 = por %p7678_p9, %p7677_p8 }
  0x53   :  { %p7680_p11 = pnand %p7679_p10, %p7673_p7 }
  0x55   :  { %7683 = shalt.err (!%p7680_p11)
}
  0x56   :  { %48 = dma.hbm_to_vmem [thread:$0]  %s8052_s2, 128, %s46_s21, [#allocation6]  }
  0x57   :  { %s7771_s15 = smov [#allocation10]   ;;  %s7772_s17 = smov [#allocation13]  }
  0x58   :  { %s67_s16 = sshll.u32 %s7771_s15, 4  ;;  %s89_s18 = sshll.u32 %s7772_s17, 4  ;;  %s68_s16 = int_to_ptr.vmem [resolvable:$true] %s67_s16  ;;  %s90_s18 = int_to_ptr.vmem [resolvable:$true] %s89_s18 }
  0x59   :  { %s7684_s22 = scalar_lea.hbm %s8054_s4, 64 }
  0x5a   :  { %p7685_p12 = scmp.ne.s32.totalorder %s8054_s4, %s7684_s22  ;;  %p7688_p13 = scmp.lt.u32.totalorder %s7684_s22, %s8054_s4 }
  0x5c   :  { %p7690_p0 = pnand %p7688_p13, %p7685_p12 }
  0x5e   :  { %7693 = shalt.err (!%p7690_p0)
}
  0x5f   :  { %s7694_s2 = scalar_lea.vmem %s68_s16, 64  ;;  %p7699_p2 = scmp.lt.s32.totalorder %s68_s16, %s68_s16 }
  0x60   :  { %p7695_p1 = scmp.ne.s32.totalorder %s68_s16, %s7694_s2  ;;  %p7700_p3 = scmp.lt.s32.totalorder %s7694_s2, %s7694_s2 }
  0x62   :  { %p7701_p4 = por %p7700_p3, %p7699_p2 }
  0x64   :  { %p7702_p5 = pnand %p7701_p4, %p7695_p1 }
  0x66   :  { %7705 = shalt.err (!%p7702_p5)
}
  0x67   :  { %70 = dma.hbm_to_vmem [thread:$0]  %s8054_s4, 64, %s68_s16, [#allocation9]  }
  0x68   :  { %s7706_s28 = scalar_lea.hbm %s8056_s6, 16 }
  0x69   :  { %p7707_p6 = scmp.ne.s32.totalorder %s8056_s6, %s7706_s28  ;;  %p7710_p7 = scmp.lt.u32.totalorder %s7706_s28, %s8056_s6 }
  0x6b   :  { %p7712_p8 = pnand %p7710_p7, %p7707_p6 }
  0x6d   :  { %7715 = shalt.err (!%p7712_p8)
}
  0x6e   :  { %s7716_s10 = scalar_lea.vmem %s90_s18, 16  ;;  %s7720_s11 = scalar_lea.vmem %s90_s18, 32 }
  0x6f   :  { %p7717_p9 = scmp.ne.s32.totalorder %s90_s18, %s7716_s10  ;;  %p7721_p10 = scmp.lt.s32.totalorder %s90_s18, %s90_s18 }
  0x70   :  { %p7722_p11 = scmp.lt.s32.totalorder %s7720_s11, %s7716_s10 }
  0x72   :  { %p7723_p12 = por %p7722_p11, %p7721_p10 }
  0x74   :  { %p7724_p13 = pnand %p7723_p12, %p7717_p9 }
  0x76   :  { %7727 = shalt.err (!%p7724_p13)
}
  0x77   :  { %92 = dma.hbm_to_vmem [thread:$0]  %s8056_s6, 16, %s90_s18, [#allocation12]  }
  0x78   :  { %7750 = dma.done.wait [#allocation3], 256  }
  0x79   :  { %7751 = vsyncadd [#allocation3], 4294967040 }
  0x7a   :  { %7752 = dma.done.wait [#allocation6], 65664  }
  0x7b   :  { %7753 = vsyncadd [#allocation6], 4294901632 }
  0x7c   :  { %7754 = dma.done.wait [#allocation9], 32832  }
  0x7d   :  { %7755 = vsyncadd [#allocation9], 4294934464 }
  0x7e   :  { %7756 = dma.done.wait [#allocation12], 4112  }
  0x7f   :  { %7757 = vsyncadd [#allocation12], 4294963184  ;;  %v169_v0 = vld [vmem:[#allocation5] sm:$0xff]  ;;  %v170_v2 = vld [vmem:[#allocation5 + $0x8] sm:$0xff]  ;;  %v7773_v32 = vmov 1983009808   ;;  %v123_v34 = vlaneseq }
  0x80   :  { %v173_v1 = vld [vmem:[#allocation5 + $0x20] sm:$0xff]  ;;  %v174_v4 = vld [vmem:[#allocation5 + $0x28] sm:$0xff]  ;;  %v121_v33 = vunpack.c.l.s4 %v7773_v32  ;;  %v7904_v59 = vld [vmem:[#allocation2] sm:$0xff]  ;;  %s7774_s6 = smov [#allocation14]  }
  0x81   :  { %v6212_v3 = vcombine.high %v169_v0, %v173_v1  ;;  %v6211_v5 = vcombine.low %v169_v0, %v173_v1  ;;  %v177_v6 = vld [vmem:[#allocation5 + $0x40] sm:$0xff]  ;;  %v6214_v8 = vcombine.high %v170_v2, %v174_v4  ;;  %v6213_v9 = vcombine.low %v170_v2, %v174_v4  ;;  %v178_v11 = vld [vmem:[#allocation5 + $0x48] sm:$0xff]  ;;  %s6199_s13 = sshll.u32 %s7774_s6, 4  ;;  %s6200_s13 = int_to_ptr.vmem [resolvable:$true] %s6199_s13 }
  0x82   :  { %v181_v7 = vld [vmem:[#allocation5 + $0x60] sm:$0xff]  ;;  %v182_v12 = vld [vmem:[#allocation5 + $0x68] sm:$0xff]  ;;  %v122_v43 = vunpack.c.0.s8 %v121_v33  ;;  %v7899_v44 = vshrl.u32 %v123_v34, 7  ;;  %s7728_s14 = scalar_lea.vmem %s6200_s13, 32  ;;  %p7733_p1 = scmp.lt.s32.totalorder %s6200_s13, %s6200_s13 }
  0x83   :  { %v6220_v10 = vcombine.high %v177_v6, %v181_v7  ;;  %v185_v13 = vld [vmem:[#allocation5 + $0x80] sm:$0xff]  ;;  %3283 = vmatprep.subr.bf16.mxu0 %v6212_v3  ;;  %v6222_v14 = vcombine.high %v178_v11, %v182_v12  ;;  %v186_v16 = vld [vmem:[#allocation5 + $0x88] sm:$0xff]  ;;  %3447 = vmatprep.subr.bf16.mxu1 %v6214_v8  ;;  %v6219_v18 = vcombine.low %v177_v6, %v181_v7  ;;  %p7729_p0 = scmp.ne.s32.totalorder %s6200_s13, %s7728_s14  ;;  %p7734_p2 = scmp.lt.s32.totalorder %s7728_s14, %s7728_s14 }
  0x84   :  { %v189_v15 = vld [vmem:[#allocation5 + $0xa0] sm:$0xff]  ;;  %v190_v17 = vld [vmem:[#allocation5 + $0xa8] sm:$0xff]  ;;  %3284 = vmatpush1.bf16.msra.mxu0 %v6211_v5  ;;  %3448 = vmatpush1.bf16.msra.mxu1 %v6213_v9  ;;  %v6221_v19 = vcombine.low %v178_v11, %v182_v12  ;;  %v7902_v53 = vsub.s32 %v122_v43, %v7899_v44 }
  0x85   :  { %3285 = vmatprep.subr.bf16.mxu0 %v6220_v10  ;;  %v6228_v20 = vcombine.high %v185_v13, %v189_v15  ;;  %3449 = vmatprep.subr.bf16.mxu1 %v6222_v14  ;;  %v6230_v21 = vcombine.high %v186_v16, %v190_v17  ;;  %v193_v22 = vld [vmem:[#allocation5 + $0xc0] sm:$0xff]  ;;  %v194_v24 = vld [vmem:[#allocation5 + $0xc8] sm:$0xff]  ;;  %v6227_v26 = vcombine.low %v185_v13, %v189_v15  ;;  %p7735_p3 = por %p7734_p2, %p7733_p1 }
  0x86   :  { %v197_v23 = vld [vmem:[#allocation5 + $0xe0] sm:$0xff]  ;;  %v198_v25 = vld [vmem:[#allocation5 + $0xe8] sm:$0xff]  ;;  %v6229_v27 = vcombine.low %v186_v16, %v190_v17  ;;  %v7908_v63 = vrot.slane %v7904_v59, %v7902_v53 }
  0x87   :  { %v6236_v28 = vcombine.high %v193_v22, %v197_v23  ;;  %v6238_v29 = vcombine.high %v194_v24, %v198_v25  ;;  %v201_v30 = vld [vmem:[#allocation5 + $0x100] sm:$0xff]  ;;  %v202_v35 = vld [vmem:[#allocation5 + $0x108] sm:$0xff]  ;;  %v6235_v37 = vcombine.low %v193_v22, %v197_v23  ;;  %v6237_v38 = vcombine.low %v194_v24, %v198_v25  ;;  %p7736_p4 = pnand %p7735_p3, %p7729_p0 }
  0x88   :  { %3286 = vmatpush1.bf16.msra.mxu0 %v6219_v18  ;;  %3450 = vmatpush1.bf16.msra.mxu1 %v6221_v19  ;;  %v205_v31 = vld [vmem:[#allocation5 + $0x120] sm:$0xff]  ;;  %v206_v36 = vld [vmem:[#allocation5 + $0x128] sm:$0xff]  ;;  %v134_v3 = vcombine.high %v7908_v63, %v7908_v63 }
  0x89   :  { %3287 = vmatprep.subr.bf16.mxu0 %v6228_v20  ;;  %3451 = vmatprep.subr.bf16.mxu1 %v6230_v21  ;;  %v6244_v39 = vcombine.high %v201_v30, %v205_v31  ;;  %v6246_v40 = vcombine.high %v202_v35, %v206_v36  ;;  %v209_v41 = vld [vmem:[#allocation5 + $0x140] sm:$0xff]  ;;  %v210_v45 = vld [vmem:[#allocation5 + $0x148] sm:$0xff]  ;;  %v6243_v47 = vcombine.low %v201_v30, %v205_v31 }
  0x8a   :  { %v213_v42 = vld [vmem:[#allocation5 + $0x160] sm:$0xff]  ;;  %v214_v46 = vld [vmem:[#allocation5 + $0x168] sm:$0xff]  ;;  %v6245_v48 = vcombine.low %v202_v35, %v206_v36  ;;  %v7912_v9 = vpack.c.bf16 %v134_v3, %v134_v3 }
  0x8b   :  { %v6252_v49 = vcombine.high %v209_v41, %v213_v42  ;;  %v6254_v50 = vcombine.high %v210_v45, %v214_v46  ;;  %v217_v51 = vld [vmem:[#allocation5 + $0x180] sm:$0xff]  ;;  %v218_v54 = vld [vmem:[#allocation5 + $0x188] sm:$0xff]  ;;  %v6251_v56 = vcombine.low %v209_v41, %v213_v42  ;;  %v6253_v57 = vcombine.low %v210_v45, %v214_v46 }
  0x8c   :  { %3288 = vmatpush1.bf16.msra.mxu0 %v6227_v26  ;;  %3452 = vmatpush1.bf16.msra.mxu1 %v6229_v27  ;;  %v221_v52 = vld [vmem:[#allocation5 + $0x1a0] sm:$0xff]  ;;  %v222_v55 = vld [vmem:[#allocation5 + $0x1a8] sm:$0xff] }
  0x8d   :  { %3289 = vmatprep.subr.bf16.mxu0 %v6236_v28  ;;  %3453 = vmatprep.subr.bf16.mxu1 %v6238_v29  ;;  %v6260_v58 = vcombine.high %v217_v51, %v221_v52  ;;  %v6262_v60 = vcombine.high %v218_v54, %v222_v55  ;;  %v225_v61 = vld [vmem:[#allocation5 + $0x1c0] sm:$0xff]  ;;  %v226_v0 = vld [vmem:[#allocation5 + $0x1c8] sm:$0xff]  ;;  %v6259_v2 = vcombine.low %v217_v51, %v221_v52 }
  0x8e   :  { %v229_v62 = vld [vmem:[#allocation5 + $0x1e0] sm:$0xff]  ;;  %v230_v1 = vld [vmem:[#allocation5 + $0x1e8] sm:$0xff]  ;;  %v6261_v4 = vcombine.low %v218_v54, %v222_v55  ;;  %3315 = vmatprep.mubr.bf16.mxu0 %v7912_v9  ;;  %3479 = vmatprep.mubr.bf16.mxu1 %v7912_v9 }
  0x8f   :  { %v6268_v5 = vcombine.high %v225_v61, %v229_v62  ;;  %v6270_v6 = vcombine.high %v226_v0, %v230_v1  ;;  %v233_v7 = vld [vmem:[#allocation5 + $0x200] sm:$0xff]  ;;  %v234_v10 = vld [vmem:[#allocation5 + $0x208] sm:$0xff]  ;;  %v6267_v12 = vcombine.low %v225_v61, %v229_v62  ;;  %v6269_v13 = vcombine.low %v226_v0, %v230_v1 }
  0x90   :  { %3290 = vmatpush1.bf16.msra.mxu0 %v6235_v37  ;;  %3454 = vmatpush1.bf16.msra.mxu1 %v6237_v38  ;;  %v237_v8 = vld [vmem:[#allocation5 + $0x220] sm:$0xff]  ;;  %v238_v11 = vld [vmem:[#allocation5 + $0x228] sm:$0xff] }
  0x91   :  { %3291 = vmatprep.subr.bf16.mxu0 %v6244_v39  ;;  %3455 = vmatprep.subr.bf16.mxu1 %v6246_v40  ;;  %v6276_v14 = vcombine.high %v233_v7, %v237_v8  ;;  %v6278_v15 = vcombine.high %v234_v10, %v238_v11  ;;  %v241_v16 = vld [vmem:[#allocation5 + $0x240] sm:$0xff]  ;;  %v242_v18 = vld [vmem:[#allocation5 + $0x248] sm:$0xff]  ;;  %v6275_v20 = vcombine.low %v233_v7, %v237_v8 }
  0x92   :  { %v245_v17 = vld [vmem:[#allocation5 + $0x260] sm:$0xff]  ;;  %v246_v19 = vld [vmem:[#allocation5 + $0x268] sm:$0xff]  ;;  %v6277_v21 = vcombine.low %v234_v10, %v238_v11 }
  0x93   :  { %v6284_v22 = vcombine.high %v241_v16, %v245_v17  ;;  %v6286_v23 = vcombine.high %v242_v18, %v246_v19  ;;  %v249_v24 = vld [vmem:[#allocation5 + $0x280] sm:$0xff]  ;;  %v250_v26 = vld [vmem:[#allocation5 + $0x288] sm:$0xff]  ;;  %v6283_v28 = vcombine.low %v241_v16, %v245_v17  ;;  %v6285_v29 = vcombine.low %v242_v18, %v246_v19 }
  0x94   :  { %3292 = vmatpush1.bf16.msra.mxu0 %v6243_v47  ;;  %3456 = vmatpush1.bf16.msra.mxu1 %v6245_v48  ;;  %v253_v25 = vld [vmem:[#allocation5 + $0x2a0] sm:$0xff]  ;;  %v254_v27 = vld [vmem:[#allocation5 + $0x2a8] sm:$0xff] }
  0x95   :  { %3293 = vmatprep.subr.bf16.mxu0 %v6252_v49  ;;  %3457 = vmatprep.subr.bf16.mxu1 %v6254_v50  ;;  %v6292_v30 = vcombine.high %v249_v24, %v253_v25  ;;  %v6294_v31 = vcombine.high %v250_v26, %v254_v27  ;;  %v257_v32 = vld [vmem:[#allocation5 + $0x2c0] sm:$0xff]  ;;  %v258_v34 = vld [vmem:[#allocation5 + $0x2c8] sm:$0xff]  ;;  %v6291_v36 = vcombine.low %v249_v24, %v253_v25 }
  0x96   :  { %v261_v33 = vld [vmem:[#allocation5 + $0x2e0] sm:$0xff]  ;;  %v262_v35 = vld [vmem:[#allocation5 + $0x2e8] sm:$0xff]  ;;  %v6293_v37 = vcombine.low %v250_v26, %v254_v27  ;;  %v7925_v25 = vpack.c.bf16 %v7908_v63, %v7908_v63 }
  0x97   :  { %v6300_v38 = vcombine.high %v257_v32, %v261_v33  ;;  %v6302_v39 = vcombine.high %v258_v34, %v262_v35  ;;  %v265_v40 = vld [vmem:[#allocation5 + $0x300] sm:$0xff]  ;;  %v266_v42 = vld [vmem:[#allocation5 + $0x308] sm:$0xff]  ;;  %v6299_v45 = vcombine.low %v257_v32, %v261_v33  ;;  %v6301_v46 = vcombine.low %v258_v34, %v262_v35 }
  0x98   :  { %3294 = vmatpush1.bf16.msra.mxu0 %v6251_v56  ;;  %3458 = vmatpush1.bf16.msra.mxu1 %v6253_v57  ;;  %v269_v41 = vld [vmem:[#allocation5 + $0x320] sm:$0xff]  ;;  %v270_v43 = vld [vmem:[#allocation5 + $0x328] sm:$0xff] }
  0x99   :  { %3295 = vmatprep.subr.bf16.mxu0 %v6260_v58  ;;  %3459 = vmatprep.subr.bf16.mxu1 %v6262_v60  ;;  %v6308_v47 = vcombine.high %v265_v40, %v269_v41  ;;  %v6310_v48 = vcombine.high %v266_v42, %v270_v43  ;;  %v273_v49 = vld [vmem:[#allocation5 + $0x340] sm:$0xff]  ;;  %v274_v51 = vld [vmem:[#allocation5 + $0x348] sm:$0xff]  ;;  %v6307_v54 = vcombine.low %v265_v40, %v269_v41 }
  0x9a   :  { %v277_v50 = vld [vmem:[#allocation5 + $0x360] sm:$0xff]  ;;  %v278_v52 = vld [vmem:[#allocation5 + $0x368] sm:$0xff]  ;;  %v6309_v55 = vcombine.low %v266_v42, %v270_v43 }
  0x9b   :  { %v6316_v56 = vcombine.high %v273_v49, %v277_v50  ;;  %v6318_v57 = vcombine.high %v274_v51, %v278_v52  ;;  %v281_v58 = vld [vmem:[#allocation5 + $0x380] sm:$0xff]  ;;  %v282_v61 = vld [vmem:[#allocation5 + $0x388] sm:$0xff]  ;;  %v6315_v0 = vcombine.low %v273_v49, %v277_v50  ;;  %v6317_v1 = vcombine.low %v274_v51, %v278_v52 }
  0x9c   :  { %3296 = vmatpush1.bf16.msra.mxu0 %v6259_v2  ;;  %3460 = vmatpush1.bf16.msra.mxu1 %v6261_v4  ;;  %v285_v60 = vld [vmem:[#allocation5 + $0x3a0] sm:$0xff]  ;;  %v286_v62 = vld [vmem:[#allocation5 + $0x3a8] sm:$0xff] }
  0x9d   :  { %3297 = vmatprep.subr.bf16.mxu0 %v6268_v5  ;;  %3461 = vmatprep.subr.bf16.mxu1 %v6270_v6  ;;  %v6324_v2 = vcombine.high %v281_v58, %v285_v60  ;;  %v6326_v3 = vcombine.high %v282_v61, %v286_v62  ;;  %v289_v4 = vld [vmem:[#allocation5 + $0x3c0] sm:$0xff]  ;;  %v119_v6 = vcombine.high %v7904_v59, %v7904_v59  ;;  %v290_v7 = vld [vmem:[#allocation5 + $0x3c8] sm:$0xff] }
  0x9e   :  { %v293_v5 = vld [vmem:[#allocation5 + $0x3e0] sm:$0xff]  ;;  %v294_v8 = vld [vmem:[#allocation5 + $0x3e8] sm:$0xff]  ;;  %v6323_v10 = vcombine.low %v281_v58, %v285_v60  ;;  %v6325_v11 = vcombine.low %v282_v61, %v286_v62 }
  0x9f   :  { %v7919_v16 = vrot.slane %v119_v6, %v7902_v53  ;;  %v298_v17 = vld [vmem:[#allocation5 + $0x408] sm:$0xff]  ;;  %v6331_v19 = vcombine.low %v289_v4, %v293_v5  ;;  %v6333_v59 = vcombine.low %v290_v7, %v294_v8  ;;  %v317_v32 = vld [vmem:[#allocation5 + $0x4a0] sm:$0xff] }
  0xa0   :  { %3298 = vmatpush1.bf16.msra.mxu0 %v6267_v12  ;;  %3462 = vmatpush1.bf16.msra.mxu1 %v6269_v13  ;;  %v6332_v12 = vcombine.high %v289_v4, %v293_v5  ;;  %v6334_v13 = vcombine.high %v290_v7, %v294_v8  ;;  %v302_v18 = vld [vmem:[#allocation5 + $0x428] sm:$0xff]  ;;  %v325_v40 = vld [vmem:[#allocation5 + $0x4e0] sm:$0xff] }
  0xa1   :  { %3299 = vmatprep.subr.bf16.mxu0 %v6276_v14  ;;  %3463 = vmatprep.subr.bf16.mxu1 %v6278_v15  ;;  %v297_v14 = vld [vmem:[#allocation5 + $0x400] sm:$0xff]  ;;  %v135_v24 = vcombine.high %v7919_v16, %v7919_v16  ;;  %v306_v26 = vld [vmem:[#allocation5 + $0x448] sm:$0xff] }
  0xa2   :  { %v301_v15 = vld [vmem:[#allocation5 + $0x420] sm:$0xff]  ;;  %v310_v27 = vld [vmem:[#allocation5 + $0x468] sm:$0xff] }
  0xa3   :  { %v314_v33 = vld [vmem:[#allocation5 + $0x488] sm:$0xff]  ;;  %v6350_v34 = vcombine.high %v306_v26, %v310_v27  ;;  %v333_v49 = vld [vmem:[#allocation5 + $0x520] sm:$0xff] }
  0xa4   :  { %3300 = vmatpush1.bf16.msra.mxu0 %v6275_v20  ;;  %3464 = vmatpush1.bf16.msra.mxu1 %v6277_v21  ;;  %v6340_v20 = vcombine.high %v297_v14, %v301_v15  ;;  %v6342_v21 = vcombine.high %v298_v17, %v302_v18  ;;  %v318_v35 = vld [vmem:[#allocation5 + $0x4a8] sm:$0xff]  ;;  %v341_v58 = vld [vmem:[#allocation5 + $0x560] sm:$0xff] }
  0xa5   :  { %3301 = vmatprep.subr.bf16.mxu0 %v6284_v22  ;;  %3465 = vmatprep.subr.bf16.mxu1 %v6286_v23  ;;  %v305_v22 = vld [vmem:[#allocation5 + $0x440] sm:$0xff]  ;;  %v322_v41 = vld [vmem:[#allocation5 + $0x4c8] sm:$0xff]  ;;  %v6358_v42 = vcombine.high %v314_v33, %v318_v35 }
  0xa6   :  { %v309_v23 = vld [vmem:[#allocation5 + $0x460] sm:$0xff]  ;;  %v326_v43 = vld [vmem:[#allocation5 + $0x4e8] sm:$0xff] }
  0xa7   :  { %v6347_v63 = vcombine.low %v305_v22, %v309_v23  ;;  %v330_v50 = vld [vmem:[#allocation5 + $0x508] sm:$0xff]  ;;  %v6366_v51 = vcombine.high %v322_v41, %v326_v43  ;;  %v349_v4 = vld [vmem:[#allocation5 + $0x5a0] sm:$0xff] }
  0xa8   :  { %3302 = vmatpush1.bf16.msra.mxu0 %v6283_v28  ;;  %3466 = vmatpush1.bf16.msra.mxu1 %v6285_v29  ;;  %v6339_v28 = vcombine.low %v297_v14, %v301_v15  ;;  %v6341_v29 = vcombine.low %v298_v17, %v302_v18  ;;  %v334_v52 = vld [vmem:[#allocation5 + $0x528] sm:$0xff] }
  0xa9   :  { %3303 = vmatprep.subr.bf16.mxu0 %v6292_v30  ;;  %3467 = vmatprep.subr.bf16.mxu1 %v6294_v31  ;;  %v6348_v30 = vcombine.high %v305_v22, %v309_v23  ;;  %v313_v31 = vld [vmem:[#allocation5 + $0x480] sm:$0xff]  ;;  %v338_v60 = vld [vmem:[#allocation5 + $0x548] sm:$0xff]  ;;  %v6374_v61 = vcombine.high %v330_v50, %v334_v52 }
  0xaa   :  { %v342_v62 = vld [vmem:[#allocation5 + $0x568] sm:$0xff] }
  0xab   :  { %v346_v5 = vld [vmem:[#allocation5 + $0x588] sm:$0xff]  ;;  %v6382_v6 = vcombine.high %v338_v60, %v342_v62 }
  0xac   :  { %3304 = vmatpush1.bf16.msra.mxu0 %v6291_v36  ;;  %3468 = vmatpush1.bf16.msra.mxu1 %v6293_v37  ;;  %v7927_v36 = vpack.c.bf16 %v135_v24, %v135_v24  ;;  %v6349_v37 = vcombine.low %v306_v26, %v310_v27  ;;  %v350_v7 = vld [vmem:[#allocation5 + $0x5a8] sm:$0xff] }
  0xad   :  { %3305 = vmatprep.subr.bf16.mxu0 %v6300_v38  ;;  %3469 = vmatprep.subr.bf16.mxu1 %v6302_v39  ;;  %v6356_v38 = vcombine.high %v313_v31, %v317_v32  ;;  %v321_v39 = vld [vmem:[#allocation5 + $0x4c0] sm:$0xff]  ;;  %v354_v14 = vld [vmem:[#allocation5 + $0x5c8] sm:$0xff]  ;;  %v6390_v15 = vcombine.high %v346_v5, %v350_v7 }
  0xae   :  { %v358_v17 = vld [vmem:[#allocation5 + $0x5e8] sm:$0xff] }
  0xaf   :  { %v362_v22 = vld [vmem:[#allocation5 + $0x608] sm:$0xff]  ;;  %v6398_v23 = vcombine.high %v354_v14, %v358_v17  ;;  %v6397_v27 = vcombine.low %v354_v14, %v358_v17  ;;  %v417_v17 = vld [vmem:[#allocation5 + $0x7c0] sm:$0xff] }
  0xb0   :  { %3306 = vmatpush1.bf16.msra.mxu0 %v6299_v45  ;;  %3470 = vmatpush1.bf16.msra.mxu1 %v6301_v46  ;;  %v6355_v45 = vcombine.low %v313_v31, %v317_v32  ;;  %v6357_v46 = vcombine.low %v314_v33, %v318_v35  ;;  %v366_v24 = vld [vmem:[#allocation5 + $0x628] sm:$0xff] }
  0xb1   :  { %3307 = vmatprep.subr.bf16.mxu0 %v6308_v47  ;;  %3471 = vmatprep.subr.bf16.mxu1 %v6310_v48  ;;  %v6364_v47 = vcombine.high %v321_v39, %v325_v40  ;;  %v329_v48 = vld [vmem:[#allocation5 + $0x500] sm:$0xff]  ;;  %v370_v31 = vld [vmem:[#allocation5 + $0x648] sm:$0xff]  ;;  %v6406_v32 = vcombine.high %v362_v22, %v366_v24  ;;  %v6405_v35 = vcombine.low %v362_v22, %v366_v24 }
  0xb2   :  { %v374_v33 = vld [vmem:[#allocation5 + $0x668] sm:$0xff] }
  0xb3   :  { %v414_v14 = vld [vmem:[#allocation5 + $0x7a8] sm:$0xff] }
  0xb4   :  { %3308 = vmatpush1.bf16.msra.mxu0 %v6307_v54  ;;  %3472 = vmatpush1.bf16.msra.mxu1 %v6309_v55  ;;  %v6363_v54 = vcombine.low %v321_v39, %v325_v40  ;;  %v6365_v55 = vcombine.low %v322_v41, %v326_v43  ;;  %v378_v39 = vld [vmem:[#allocation5 + $0x688] sm:$0xff]  ;;  %v6414_v40 = vcombine.high %v370_v31, %v374_v33 }
  0xb5   :  { %3309 = vmatprep.subr.bf16.mxu0 %v6316_v56  ;;  %3473 = vmatprep.subr.bf16.mxu1 %v6318_v57  ;;  %v6372_v56 = vcombine.high %v329_v48, %v333_v49  ;;  %v337_v57 = vld [vmem:[#allocation5 + $0x540] sm:$0xff]  ;;  %v382_v41 = vld [vmem:[#allocation5 + $0x6a8] sm:$0xff]  ;;  %v6413_v43 = vcombine.low %v370_v31, %v374_v33 }
  0xb6   :  { %v6379_v8 = vcombine.low %v337_v57, %v341_v58 }
  0xb8   :  { %3310 = vmatpush1.bf16.msra.mxu0 %v6315_v0  ;;  %3474 = vmatpush1.bf16.msra.mxu1 %v6317_v1  ;;  %v6371_v0 = vcombine.low %v329_v48, %v333_v49  ;;  %v6373_v1 = vcombine.low %v330_v50, %v334_v52  ;;  %v386_v48 = vld [vmem:[#allocation5 + $0x6c8] sm:$0xff]  ;;  %v6422_v49 = vcombine.high %v378_v39, %v382_v41 }
  0xb9   :  { %3311 = vmatprep.subr.bf16.mxu0 %v6324_v2  ;;  %3475 = vmatprep.subr.bf16.mxu1 %v6326_v3  ;;  %v6380_v2 = vcombine.high %v337_v57, %v341_v58  ;;  %v345_v3 = vld [vmem:[#allocation5 + $0x580] sm:$0xff]  ;;  %v390_v50 = vld [vmem:[#allocation5 + $0x6e8] sm:$0xff]  ;;  %v6421_v52 = vcombine.low %v378_v39, %v382_v41 }
  0xba   :  { %v6387_v18 = vcombine.low %v345_v3, %v349_v4  ;;  %v394_v57 = vld [vmem:[#allocation5 + $0x708] sm:$0xff]  ;;  %v6430_v58 = vcombine.high %v386_v48, %v390_v50 }
  0xbb   :  { %v434_v39 = vld [vmem:[#allocation5 + $0x848] sm:$0xff] }
  0xbc   :  { %3312 = vmatpush1.bf16.msra.mxu0 %v6323_v10  ;;  %3476 = vmatpush1.bf16.msra.mxu1 %v6325_v11  ;;  %v6381_v10 = vcombine.low %v338_v60, %v342_v62  ;;  %v6388_v11 = vcombine.high %v345_v3, %v349_v4  ;;  %v398_v60 = vld [vmem:[#allocation5 + $0x728] sm:$0xff]  ;;  %v6429_v62 = vcombine.low %v386_v48, %v390_v50  ;;  %v441_v48 = vld [vmem:[#allocation5 + $0x880] sm:$0xff] }
  0xbd   :  { %3313 = vmatprep.subr.bf16.mxu0 %v6332_v12  ;;  %3477 = vmatprep.subr.bf16.mxu1 %v6334_v13  ;;  %v353_v12 = vld [vmem:[#allocation5 + $0x5c0] sm:$0xff]  ;;  %v402_v3 = vld [vmem:[#allocation5 + $0x748] sm:$0xff]  ;;  %v6438_v4 = vcombine.high %v394_v57, %v398_v60 }
  0xbe   :  { %v357_v13 = vld [vmem:[#allocation5 + $0x5e0] sm:$0xff]  ;;  %v438_v41 = vld [vmem:[#allocation5 + $0x868] sm:$0xff] }
  0xbf   :  { %v6395_v26 = vcombine.low %v353_v12, %v357_v13  ;;  %v442_v50 = vld [vmem:[#allocation5 + $0x888] sm:$0xff] }
  0xc0   :  { %3314 = vmatpush1.bf16.msra.mxu0 %v6331_v19  ;;  %3478 = vmatpush1.bf16.msra.mxu1 %v6333_v59  ;;  %v6389_v19 = vcombine.low %v346_v5, %v350_v7  ;;  %v6396_v59 = vcombine.high %v353_v12, %v357_v13  ;;  %v406_v5 = vld [vmem:[#allocation5 + $0x768] sm:$0xff]  ;;  %v6437_v7 = vcombine.low %v394_v57, %v398_v60  ;;  %v449_v57 = vld [vmem:[#allocation5 + $0x8c0] sm:$0xff] }
  0xc1   :  { %3324 = vmatprep.subr.bf16.mxu0 %v6340_v20  ;;  %3488 = vmatprep.subr.bf16.mxu1 %v6342_v21  ;;  %v361_v20 = vld [vmem:[#allocation5 + $0x600] sm:$0xff]  ;;  %v410_v12 = vld [vmem:[#allocation5 + $0x788] sm:$0xff]  ;;  %v6446_v13 = vcombine.high %v402_v3, %v406_v5 }
  0xc2   :  { %v365_v21 = vld [vmem:[#allocation5 + $0x620] sm:$0xff]  ;;  %v6454_v22 = vcombine.high %v410_v12, %v414_v14  ;;  %v450_v60 = vld [vmem:[#allocation5 + $0x8c8] sm:$0xff] }
  0xc3   :  { %3316 = vmatmul.mubr.bf16.vlgmr.msra.gmra.mrb[0].mxu0 %v7925_v25  ;;  %3480 = vmatmul.mubr.bf16.vlgmr.msra.gmra.mrb[0].mxu1 %v7925_v25 }
  0xc4   :  { %3325 = vmatpush1.bf16.msra.mxu0 %v6339_v28  ;;  %3489 = vmatpush1.bf16.msra.mxu1 %v6341_v29  ;;  %v6404_v28 = vcombine.high %v361_v20, %v365_v21  ;;  %v369_v29 = vld [vmem:[#allocation5 + $0x640] sm:$0xff] }
  0xc5   :  { %3326 = vmatprep.subr.bf16.mxu0 %v6348_v30  ;;  %3490 = vmatprep.subr.bf16.mxu1 %v6350_v34  ;;  %v373_v30 = vld [vmem:[#allocation5 + $0x660] sm:$0xff]  ;;  %v6403_v34 = vcombine.low %v361_v20, %v365_v21  ;;  %v418_v20 = vld [vmem:[#allocation5 + $0x7c8] sm:$0xff] }
  0xc6   :  { %3356 = vmatprep.mubr.bf16.mxu0 %v7927_v36  ;;  %3520 = vmatprep.mubr.bf16.mxu1 %v7927_v36  ;;  %v422_v21 = vld [vmem:[#allocation5 + $0x7e8] sm:$0xff] }
  0xc7   :  { %v6462_v31 = vcombine.high %v418_v20, %v422_v21 }
  0xc8   :  { %3327 = vmatpush1.bf16.msra.mxu0 %v6347_v63  ;;  %3491 = vmatpush1.bf16.msra.mxu1 %v6349_v37  ;;  %v6412_v63 = vcombine.high %v369_v29, %v373_v30  ;;  %v377_v37 = vld [vmem:[#allocation5 + $0x680] sm:$0xff] }
  0xc9   :  { %3328 = vmatprep.subr.bf16.mxu0 %v6356_v38  ;;  %3492 = vmatprep.subr.bf16.mxu1 %v6358_v42  ;;  %v381_v38 = vld [vmem:[#allocation5 + $0x6a0] sm:$0xff]  ;;  %v6411_v42 = vcombine.low %v369_v29, %v373_v30  ;;  %v426_v30 = vld [vmem:[#allocation5 + $0x808] sm:$0xff] }
  0xca   :  { %v429_v29 = vld [vmem:[#allocation5 + $0x820] sm:$0xff] }
  0xcc   :  { %3329 = vmatpush1.bf16.msra.mxu0 %v6355_v45  ;;  %3493 = vmatpush1.bf16.msra.mxu1 %v6357_v46  ;;  %v6420_v45 = vcombine.high %v377_v37, %v381_v38  ;;  %v385_v46 = vld [vmem:[#allocation5 + $0x6c0] sm:$0xff] }
  0xcd   :  { %3330 = vmatprep.subr.bf16.mxu0 %v6364_v47  ;;  %3494 = vmatprep.subr.bf16.mxu1 %v6366_v51  ;;  %v389_v47 = vld [vmem:[#allocation5 + $0x6e0] sm:$0xff]  ;;  %v6419_v51 = vcombine.low %v377_v37, %v381_v38 }
  0xce   :  { %v433_v37 = vld [vmem:[#allocation5 + $0x840] sm:$0xff] }
  0xcf   :  { %v437_v38 = vld [vmem:[#allocation5 + $0x860] sm:$0xff] }
  0xd0   :  { %3331 = vmatpush1.bf16.msra.mxu0 %v6363_v54  ;;  %3495 = vmatpush1.bf16.msra.mxu1 %v6365_v55  ;;  %v6428_v54 = vcombine.high %v385_v46, %v389_v47  ;;  %v393_v55 = vld [vmem:[#allocation5 + $0x700] sm:$0xff] }
  0xd1   :  { %3332 = vmatprep.subr.bf16.mxu0 %v6372_v56  ;;  %3496 = vmatprep.subr.bf16.mxu1 %v6374_v61  ;;  %v397_v56 = vld [vmem:[#allocation5 + $0x720] sm:$0xff]  ;;  %v6427_v61 = vcombine.low %v385_v46, %v389_v47  ;;  %v6476_v47 = vcombine.high %v433_v37, %v437_v38 }
  0xd4   :  { %3333 = vmatpush1.bf16.msra.mxu0 %v6371_v0  ;;  %3497 = vmatpush1.bf16.msra.mxu1 %v6373_v1  ;;  %v6436_v0 = vcombine.high %v393_v55, %v397_v56  ;;  %v401_v1 = vld [vmem:[#allocation5 + $0x740] sm:$0xff] }
  0xd5   :  { %3334 = vmatprep.subr.bf16.mxu0 %v6380_v2  ;;  %3498 = vmatprep.subr.bf16.mxu1 %v6382_v6  ;;  %v405_v2 = vld [vmem:[#allocation5 + $0x760] sm:$0xff]  ;;  %v6435_v6 = vcombine.low %v393_v55, %v397_v56  ;;  %v6477_v55 = vcombine.low %v434_v39, %v438_v41 }
  0xd8   :  { %3335 = vmatpush1.bf16.msra.mxu0 %v6379_v8  ;;  %3499 = vmatpush1.bf16.msra.mxu1 %v6381_v10  ;;  %v6444_v8 = vcombine.high %v401_v1, %v405_v2  ;;  %v409_v10 = vld [vmem:[#allocation5 + $0x780] sm:$0xff] }
  0xd9   :  { %3336 = vmatprep.subr.bf16.mxu0 %v6388_v11  ;;  %3500 = vmatprep.subr.bf16.mxu1 %v6390_v15  ;;  %v413_v11 = vld [vmem:[#allocation5 + $0x7a0] sm:$0xff]  ;;  %v6443_v15 = vcombine.low %v401_v1, %v405_v2 }
  0xda   :  { %v6451_v24 = vcombine.low %v409_v10, %v413_v11 }
  0xdc   :  { %3337 = vmatpush1.bf16.msra.mxu0 %v6387_v18  ;;  %3501 = vmatpush1.bf16.msra.mxu1 %v6389_v19  ;;  %v6445_v18 = vcombine.low %v402_v3, %v406_v5  ;;  %v6452_v19 = vcombine.high %v409_v10, %v413_v11  ;;  %v457_v3 = vld [vmem:[#allocation5 + $0x900] sm:$0xff]  ;;  %v458_v5 = vld [vmem:[#allocation5 + $0x908] sm:$0xff] }
  0xdd   :  { %3338 = vmatprep.subr.bf16.mxu0 %v6396_v59  ;;  %3502 = vmatprep.subr.bf16.mxu1 %v6398_v23  ;;  %v421_v59 = vld [vmem:[#allocation5 + $0x7e0] sm:$0xff]  ;;  %v7933_v23 = vld [vmem:[#allocation2 + $0x8] sm:$0xff] }
  0xde   :  { %v7937_v33 = vrot.slane %v7933_v23, %v7902_v53 }
  0xe0   :  { %3339 = vmatpush1.bf16.msra.mxu0 %v6395_v26  ;;  %3503 = vmatpush1.bf16.msra.mxu1 %v6397_v27  ;;  %v6453_v26 = vcombine.low %v410_v12, %v414_v14  ;;  %v6460_v27 = vcombine.high %v417_v17, %v421_v59  ;;  %v465_v12 = vld [vmem:[#allocation5 + $0x940] sm:$0xff]  ;;  %v466_v14 = vld [vmem:[#allocation5 + $0x948] sm:$0xff] }
  0xe1   :  { %3340 = vmatprep.subr.bf16.mxu0 %v6404_v28  ;;  %3504 = vmatprep.subr.bf16.mxu1 %v6406_v32  ;;  %v425_v28 = vld [vmem:[#allocation5 + $0x800] sm:$0xff]  ;;  %v430_v32 = vld [vmem:[#allocation5 + $0x828] sm:$0xff] }
  0xe2   :  { %v6469_v46 = vcombine.low %v426_v30, %v430_v32 }
  0xe4   :  { %3341 = vmatpush1.bf16.msra.mxu0 %v6403_v34  ;;  %3505 = vmatpush1.bf16.msra.mxu1 %v6405_v35  ;;  %v6459_v34 = vcombine.low %v417_v17, %v421_v59  ;;  %v6461_v35 = vcombine.low %v418_v20, %v422_v21  ;;  %v470_v17 = vld [vmem:[#allocation5 + $0x968] sm:$0xff]  ;;  %v473_v20 = vld [vmem:[#allocation5 + $0x980] sm:$0xff] }
  0xe5   :  { %3342 = vmatprep.subr.bf16.mxu0 %v6412_v63  ;;  %3506 = vmatprep.subr.bf16.mxu1 %v6414_v40  ;;  %v6468_v63 = vcombine.high %v425_v28, %v429_v29  ;;  %v6470_v40 = vcombine.high %v426_v30, %v430_v32  ;;  %v477_v21 = vld [vmem:[#allocation5 + $0x9a0] sm:$0xff]  ;;  %v482_v32 = vld [vmem:[#allocation5 + $0x9c8] sm:$0xff] }
  0xe6   :  { %v481_v30 = vld [vmem:[#allocation5 + $0x9c0] sm:$0xff] }
  0xe8   :  { %3343 = vmatpush1.bf16.msra.mxu0 %v6411_v42  ;;  %3507 = vmatpush1.bf16.msra.mxu1 %v6413_v43  ;;  %v151_v42 = vcombine.high %v7937_v33, %v7937_v33  ;;  %v7943_v43 = vpack.c.bf16 %v7919_v16, %v7919_v16  ;;  %v6475_v16 = vcombine.low %v433_v37, %v437_v38 }
  0xe9   :  { %3344 = vmatprep.subr.bf16.mxu0 %v6420_v45  ;;  %3508 = vmatprep.subr.bf16.mxu1 %v6422_v49  ;;  %v6467_v45 = vcombine.low %v425_v28, %v429_v29  ;;  %v445_v49 = vld [vmem:[#allocation5 + $0x8a0] sm:$0xff]  ;;  %v6509_v28 = vcombine.low %v466_v14, %v470_v17  ;;  %v6516_v29 = vcombine.high %v473_v20, %v477_v21 }
  0xea   :  { %v6484_v56 = vcombine.high %v441_v48, %v445_v49 }
  0xec   :  { %3345 = vmatpush1.bf16.msra.mxu0 %v6419_v51  ;;  %3509 = vmatpush1.bf16.msra.mxu1 %v6421_v52  ;;  %v6478_v51 = vcombine.high %v434_v39, %v438_v41  ;;  %v446_v52 = vld [vmem:[#allocation5 + $0x8a8] sm:$0xff]  ;;  %v489_v39 = vld [vmem:[#allocation5 + $0xa00] sm:$0xff] }
  0xed   :  { %3346 = vmatprep.subr.bf16.mxu0 %v6428_v54  ;;  %3510 = vmatprep.subr.bf16.mxu1 %v6430_v58  ;;  %v7945_v54 = vpack.c.bf16 %v151_v42, %v151_v42  ;;  %v453_v58 = vld [vmem:[#allocation5 + $0x8e0] sm:$0xff]  ;;  %v6485_v1 = vcombine.low %v442_v50, %v446_v52  ;;  %v490_v41 = vld [vmem:[#allocation5 + $0xa08] sm:$0xff] }
  0xee   :  { %v6492_v2 = vcombine.high %v449_v57, %v453_v58 }
  0xf0   :  { %3347 = vmatpush1.bf16.msra.mxu0 %v6427_v61  ;;  %3511 = vmatpush1.bf16.msra.mxu1 %v6429_v62  ;;  %v6486_v61 = vcombine.high %v442_v50, %v446_v52  ;;  %v454_v62 = vld [vmem:[#allocation5 + $0x8e8] sm:$0xff]  ;;  %v501_v50 = vld [vmem:[#allocation5 + $0xa60] sm:$0xff] }
  0xf1   :  { %3348 = vmatprep.subr.bf16.mxu0 %v6436_v0  ;;  %3512 = vmatprep.subr.bf16.mxu1 %v6438_v4  ;;  %v6483_v0 = vcombine.low %v441_v48, %v445_v49  ;;  %v461_v4 = vld [vmem:[#allocation5 + $0x920] sm:$0xff]  ;;  %v6493_v10 = vcombine.low %v450_v60, %v454_v62 }
  0xf2   :  { %v6500_v11 = vcombine.high %v457_v3, %v461_v4  ;;  %v497_v49 = vld [vmem:[#allocation5 + $0xa40] sm:$0xff] }
  0xf4   :  { %3349 = vmatpush1.bf16.msra.mxu0 %v6435_v6  ;;  %3513 = vmatpush1.bf16.msra.mxu1 %v6437_v7  ;;  %v6494_v6 = vcombine.high %v450_v60, %v454_v62  ;;  %v462_v7 = vld [vmem:[#allocation5 + $0x928] sm:$0xff]  ;;  %v509_v60 = vld [vmem:[#allocation5 + $0xaa0] sm:$0xff] }
  0xf5   :  { %3350 = vmatprep.subr.bf16.mxu0 %v6444_v8  ;;  %3514 = vmatprep.subr.bf16.mxu1 %v6446_v13  ;;  %v6491_v8 = vcombine.low %v449_v57, %v453_v58  ;;  %v469_v13 = vld [vmem:[#allocation5 + $0x960] sm:$0xff]  ;;  %v6540_v57 = vcombine.high %v497_v49, %v501_v50 }
  0xf6   :  { %v6508_v59 = vcombine.high %v465_v12, %v469_v13  ;;  %v505_v58 = vld [vmem:[#allocation5 + $0xa80] sm:$0xff] }
  0xf8   :  { %3351 = vmatpush1.bf16.msra.mxu0 %v6443_v15  ;;  %3515 = vmatpush1.bf16.msra.mxu1 %v6445_v18  ;;  %v6502_v15 = vcombine.high %v458_v5, %v462_v7  ;;  %v6499_v18 = vcombine.low %v457_v3, %v461_v4  ;;  %v6548_v3 = vcombine.high %v505_v58, %v509_v60  ;;  %v513_v4 = vld [vmem:[#allocation5 + $0xac0] sm:$0xff] }
  0xf9   :  { %3352 = vmatprep.subr.bf16.mxu0 %v6452_v19  ;;  %3516 = vmatprep.subr.bf16.mxu1 %v6454_v22  ;;  %v6501_v19 = vcombine.low %v458_v5, %v462_v7  ;;  %v474_v22 = vld [vmem:[#allocation5 + $0x988] sm:$0xff]  ;;  %v517_v5 = vld [vmem:[#allocation5 + $0xae0] sm:$0xff] }
  0xfc   :  { %3353 = vmatpush1.bf16.msra.mxu0 %v6451_v24  ;;  %3517 = vmatpush1.bf16.msra.mxu1 %v6453_v26  ;;  %v6510_v24 = vcombine.high %v466_v14, %v470_v17  ;;  %v478_v26 = vld [vmem:[#allocation5 + $0x9a8] sm:$0xff]  ;;  %v525_v14 = vld [vmem:[#allocation5 + $0xb20] sm:$0xff] }
  0xfd   :  { %3354 = vmatprep.subr.bf16.mxu0 %v6460_v27  ;;  %3518 = vmatprep.subr.bf16.mxu1 %v6462_v31  ;;  %v6507_v27 = vcombine.low %v465_v12, %v469_v13  ;;  %v485_v31 = vld [vmem:[#allocation5 + $0x9e0] sm:$0xff]  ;;  %v6517_v37 = vcombine.low %v474_v22, %v478_v26  ;;  %v6556_v12 = vcombine.high %v513_v4, %v517_v5 }
  0xfe   :  { %v6524_v38 = vcombine.high %v481_v30, %v485_v31  ;;  %v521_v13 = vld [vmem:[#allocation5 + $0xb00] sm:$0xff] }
 0x100   :  { %3355 = vmatpush1.bf16.msra.mxu0 %v6459_v34  ;;  %3519 = vmatpush1.bf16.msra.mxu1 %v6461_v35  ;;  %v6518_v34 = vcombine.high %v474_v22, %v478_v26  ;;  %v486_v35 = vld [vmem:[#allocation5 + $0x9e8] sm:$0xff]  ;;  %v533_v22 = vld [vmem:[#allocation5 + $0xb60] sm:$0xff] }
 0x101   :  { %3365 = vmatprep.subr.bf16.mxu0 %v6468_v63  ;;  %3529 = vmatprep.subr.bf16.mxu1 %v6470_v40  ;;  %v6515_v63 = vcombine.low %v473_v20, %v477_v21  ;;  %v493_v40 = vld [vmem:[#allocation5 + $0xa20] sm:$0xff]  ;;  %v6526_v42 = vcombine.high %v482_v32, %v486_v35  ;;  %v6564_v20 = vcombine.high %v521_v13, %v525_v14 }
 0x102   :  { %v6532_v48 = vcombine.high %v489_v39, %v493_v40  ;;  %v529_v21 = vld [vmem:[#allocation5 + $0xb40] sm:$0xff] }
 0x103   :  { %3357 = vmatmul.mubr.bf16.vlgmr.msra.gmra.mrb[0].mxu0 %v7943_v43  ;;  %3521 = vmatmul.mubr.bf16.vlgmr.msra.gmra.mrb[0].mxu1 %v7943_v43 }
 0x104   :  { %3366 = vmatpush1.bf16.msra.mxu0 %v6467_v45  ;;  %3530 = vmatpush1.bf16.msra.mxu1 %v6469_v46  ;;  %v494_v45 = vld [vmem:[#allocation5 + $0xa28] sm:$0xff]  ;;  %v6523_v46 = vcombine.low %v481_v30, %v485_v31  ;;  %v6572_v30 = vcombine.high %v529_v21, %v533_v22  ;;  %v537_v31 = vld [vmem:[#allocation5 + $0xb80] sm:$0xff] }
 0x105   :  { %3367 = vmatprep.subr.bf16.mxu0 %v6476_v47  ;;  %3531 = vmatprep.subr.bf16.mxu1 %v6478_v51  ;;  %v6525_v47 = vcombine.low %v482_v32, %v486_v35  ;;  %v498_v51 = vld [vmem:[#allocation5 + $0xa48] sm:$0xff]  ;;  %v6534_v52 = vcombine.high %v490_v41, %v494_v45  ;;  %v541_v32 = vld [vmem:[#allocation5 + $0xba0] sm:$0xff] }
 0x106   :  { %3397 = vmatprep.mubr.bf16.mxu0 %v7945_v54  ;;  %3561 = vmatprep.mubr.bf16.mxu1 %v7945_v54 }
 0x108   :  { %3368 = vmatpush1.bf16.msra.mxu0 %v6475_v16  ;;  %3532 = vmatpush1.bf16.msra.mxu1 %v6477_v55  ;;  %v502_v16 = vld [vmem:[#allocation5 + $0xa68] sm:$0xff]  ;;  %v6531_v55 = vcombine.low %v489_v39, %v493_v40  ;;  %v6580_v39 = vcombine.high %v537_v31, %v541_v32  ;;  %v545_v40 = vld [vmem:[#allocation5 + $0xbc0] sm:$0xff] }
 0x109   :  { %3369 = vmatprep.subr.bf16.mxu0 %v6484_v56  ;;  %3533 = vmatprep.subr.bf16.mxu1 %v6486_v61  ;;  %v6533_v56 = vcombine.low %v490_v41, %v494_v45  ;;  %v506_v61 = vld [vmem:[#allocation5 + $0xa88] sm:$0xff]  ;;  %v6542_v62 = vcombine.high %v498_v51, %v502_v16  ;;  %v549_v41 = vld [vmem:[#allocation5 + $0xbe0] sm:$0xff] }
 0x10c   :  { %3370 = vmatpush1.bf16.msra.mxu0 %v6483_v0  ;;  %3534 = vmatpush1.bf16.msra.mxu1 %v6485_v1  ;;  %v510_v0 = vld [vmem:[#allocation5 + $0xaa8] sm:$0xff]  ;;  %v6539_v1 = vcombine.low %v497_v49, %v501_v50  ;;  %v6588_v50 = vcombine.high %v545_v40, %v549_v41 }
 0x10d   :  { %3371 = vmatprep.subr.bf16.mxu0 %v6492_v2  ;;  %3535 = vmatprep.subr.bf16.mxu1 %v6494_v6  ;;  %v6541_v2 = vcombine.low %v498_v51, %v502_v16  ;;  %v514_v6 = vld [vmem:[#allocation5 + $0xac8] sm:$0xff]  ;;  %v6550_v7 = vcombine.high %v506_v61, %v510_v0  ;;  %v553_v51 = vld [vmem:[#allocation5 + $0xc00] sm:$0xff] }
 0x10e   :  { %v554_v16 = vld [vmem:[#allocation5 + $0xc08] sm:$0xff] }
 0x110   :  { %3372 = vmatpush1.bf16.msra.mxu0 %v6491_v8  ;;  %3536 = vmatpush1.bf16.msra.mxu1 %v6493_v10  ;;  %v518_v8 = vld [vmem:[#allocation5 + $0xae8] sm:$0xff]  ;;  %v6547_v10 = vcombine.low %v505_v58, %v509_v60  ;;  %v6587_v58 = vcombine.low %v545_v40, %v549_v41 }
 0x111   :  { %3373 = vmatprep.subr.bf16.mxu0 %v6500_v11  ;;  %3537 = vmatprep.subr.bf16.mxu1 %v6502_v15  ;;  %v6549_v11 = vcombine.low %v506_v61, %v510_v0  ;;  %v522_v15 = vld [vmem:[#allocation5 + $0xb08] sm:$0xff]  ;;  %v6558_v17 = vcombine.high %v514_v6, %v518_v8  ;;  %v561_v61 = vld [vmem:[#allocation5 + $0xc40] sm:$0xff] }
 0x112   :  { %v562_v0 = vld [vmem:[#allocation5 + $0xc48] sm:$0xff] }
 0x114   :  { %3374 = vmatpush1.bf16.msra.mxu0 %v6499_v18  ;;  %3538 = vmatpush1.bf16.msra.mxu1 %v6501_v19  ;;  %v526_v18 = vld [vmem:[#allocation5 + $0xb28] sm:$0xff]  ;;  %v6555_v19 = vcombine.low %v513_v4, %v517_v5  ;;  %v7960_v4 = vpack.c.bf16 %v7937_v33, %v7937_v33 }
 0x115   :  { %3375 = vmatprep.subr.bf16.mxu0 %v6508_v59  ;;  %3539 = vmatprep.subr.bf16.mxu1 %v6510_v24  ;;  %v6557_v59 = vcombine.low %v514_v6, %v518_v8  ;;  %v530_v24 = vld [vmem:[#allocation5 + $0xb48] sm:$0xff]  ;;  %v6566_v26 = vcombine.high %v522_v15, %v526_v18  ;;  %v573_v8 = vld [vmem:[#allocation5 + $0xca0] sm:$0xff] }
 0x118   :  { %3376 = vmatpush1.bf16.msra.mxu0 %v6507_v27  ;;  %3540 = vmatpush1.bf16.msra.mxu1 %v6509_v28  ;;  %v534_v27 = vld [vmem:[#allocation5 + $0xb68] sm:$0xff]  ;;  %v6563_v28 = vcombine.low %v521_v13, %v525_v14 }
 0x119   :  { %3377 = vmatprep.subr.bf16.mxu0 %v6516_v29  ;;  %3541 = vmatprep.subr.bf16.mxu1 %v6518_v34  ;;  %v6565_v29 = vcombine.low %v522_v15, %v526_v18  ;;  %v538_v34 = vld [vmem:[#allocation5 + $0xb88] sm:$0xff]  ;;  %v6574_v35 = vcombine.high %v530_v24, %v534_v27  ;;  %v581_v18 = vld [vmem:[#allocation5 + $0xce0] sm:$0xff] }
 0x11c   :  { %3378 = vmatpush1.bf16.msra.mxu0 %v6515_v63  ;;  %3542 = vmatpush1.bf16.msra.mxu1 %v6517_v37  ;;  %v542_v63 = vld [vmem:[#allocation5 + $0xba8] sm:$0xff]  ;;  %v6571_v37 = vcombine.low %v529_v21, %v533_v22 }
 0x11d   :  { %3379 = vmatprep.subr.bf16.mxu0 %v6524_v38  ;;  %3543 = vmatprep.subr.bf16.mxu1 %v6526_v42  ;;  %v6573_v38 = vcombine.low %v530_v24, %v534_v27  ;;  %v546_v42 = vld [vmem:[#allocation5 + $0xbc8] sm:$0xff]  ;;  %v6582_v45 = vcombine.high %v538_v34, %v542_v63  ;;  %v6581_v49 = vcombine.low %v538_v34, %v542_v63  ;;  %v589_v27 = vld [vmem:[#allocation5 + $0xd20] sm:$0xff] }
 0x11e   :  { %v597_v63 = vld [vmem:[#allocation5 + $0xd60] sm:$0xff] }
 0x120   :  { %3380 = vmatpush1.bf16.msra.mxu0 %v6523_v46  ;;  %3544 = vmatpush1.bf16.msra.mxu1 %v6525_v47  ;;  %v550_v46 = vld [vmem:[#allocation5 + $0xbe8] sm:$0xff]  ;;  %v136_v47 = vcombine.high %v7933_v23, %v7933_v23 }
 0x121   :  { %3381 = vmatprep.subr.bf16.mxu0 %v6532_v48  ;;  %3545 = vmatprep.subr.bf16.mxu1 %v6534_v52  ;;  %v6579_v48 = vcombine.low %v537_v31, %v541_v32  ;;  %v557_v52 = vld [vmem:[#allocation5 + $0xc20] sm:$0xff]  ;;  %v6589_v23 = vcombine.low %v546_v42, %v550_v46 }
 0x122   :  { %v6596_v60 = vcombine.high %v553_v51, %v557_v52 }
 0x124   :  { %3382 = vmatpush1.bf16.msra.mxu0 %v6531_v55  ;;  %3546 = vmatpush1.bf16.msra.mxu1 %v6533_v56  ;;  %v6590_v55 = vcombine.high %v546_v42, %v550_v46  ;;  %v558_v56 = vld [vmem:[#allocation5 + $0xc28] sm:$0xff]  ;;  %v605_v46 = vld [vmem:[#allocation5 + $0xda0] sm:$0xff] }
 0x125   :  { %3383 = vmatprep.subr.bf16.mxu0 %v6540_v57  ;;  %3547 = vmatprep.subr.bf16.mxu1 %v6542_v62  ;;  %v7954_v57 = vrot.slane %v136_v47, %v7902_v53  ;;  %v565_v62 = vld [vmem:[#allocation5 + $0xc60] sm:$0xff]  ;;  %v6595_v53 = vcombine.low %v553_v51, %v557_v52  ;;  %v6597_v5 = vcombine.low %v554_v16, %v558_v56  ;;  %v602_v47 = vld [vmem:[#allocation5 + $0xd88] sm:$0xff] }
 0x126   :  { %v6604_v6 = vcombine.high %v561_v61, %v565_v62  ;;  %v6603_v33 = vcombine.low %v561_v61, %v565_v62 }
 0x128   :  { %3384 = vmatpush1.bf16.msra.mxu0 %v6539_v1  ;;  %3548 = vmatpush1.bf16.msra.mxu1 %v6541_v2  ;;  %v6598_v1 = vcombine.high %v554_v16, %v558_v56  ;;  %v566_v2 = vld [vmem:[#allocation5 + $0xc68] sm:$0xff]  ;;  %v609_v16 = vld [vmem:[#allocation5 + $0xdc0] sm:$0xff] }
 0x129   :  { %3385 = vmatprep.subr.bf16.mxu0 %v6548_v3  ;;  %3549 = vmatprep.subr.bf16.mxu1 %v6550_v7  ;;  %v152_v3 = vcombine.high %v7954_v57, %v7954_v57  ;;  %v569_v7 = vld [vmem:[#allocation5 + $0xc80] sm:$0xff]  ;;  %v6605_v14 = vcombine.low %v562_v0, %v566_v2  ;;  %v610_v56 = vld [vmem:[#allocation5 + $0xdc8] sm:$0xff] }
 0x12a   :  { %v6612_v15 = vcombine.high %v569_v7, %v573_v8  ;;  %v6611_v21 = vcombine.low %v569_v7, %v573_v8  ;;  %v625_v8 = vld [vmem:[#allocation5 + $0xe40] sm:$0xff] }
 0x12b   :  { %v7962_v13 = vpack.c.bf16 %v152_v3, %v152_v3 }
 0x12c   :  { %3386 = vmatpush1.bf16.msra.mxu0 %v6547_v10  ;;  %3550 = vmatpush1.bf16.msra.mxu1 %v6549_v11  ;;  %v570_v10 = vld [vmem:[#allocation5 + $0xc88] sm:$0xff]  ;;  %v6606_v11 = vcombine.high %v562_v0, %v566_v2  ;;  %v617_v0 = vld [vmem:[#allocation5 + $0xe00] sm:$0xff] }
 0x12d   :  { %3387 = vmatprep.subr.bf16.mxu0 %v6556_v12  ;;  %3551 = vmatprep.subr.bf16.mxu1 %v6558_v17  ;;  %v574_v12 = vld [vmem:[#allocation5 + $0xca8] sm:$0xff]  ;;  %v577_v17 = vld [vmem:[#allocation5 + $0xcc0] sm:$0xff] }
 0x12e   :  { %v6613_v22 = vcombine.low %v570_v10, %v574_v12  ;;  %v6620_v24 = vcombine.high %v577_v17, %v581_v18  ;;  %v6619_v31 = vcombine.low %v577_v17, %v581_v18  ;;  %v618_v2 = vld [vmem:[#allocation5 + $0xe08] sm:$0xff] }
 0x130   :  { %3388 = vmatpush1.bf16.msra.mxu0 %v6555_v19  ;;  %3552 = vmatpush1.bf16.msra.mxu1 %v6557_v59  ;;  %v578_v19 = vld [vmem:[#allocation5 + $0xcc8] sm:$0xff]  ;;  %v6614_v59 = vcombine.high %v570_v10, %v574_v12  ;;  %v629_v10 = vld [vmem:[#allocation5 + $0xe60] sm:$0xff] }
 0x131   :  { %3389 = vmatprep.subr.bf16.mxu0 %v6564_v20  ;;  %3553 = vmatprep.subr.bf16.mxu1 %v6566_v26  ;;  %v582_v20 = vld [vmem:[#allocation5 + $0xce8] sm:$0xff]  ;;  %v585_v26 = vld [vmem:[#allocation5 + $0xd00] sm:$0xff]  ;;  %v6668_v17 = vcombine.high %v625_v8, %v629_v10 }
 0x132   :  { %v6621_v32 = vcombine.low %v578_v19, %v582_v20  ;;  %v6628_v34 = vcombine.high %v585_v26, %v589_v27  ;;  %v6627_v40 = vcombine.low %v585_v26, %v589_v27 }
 0x134   :  { %3390 = vmatpush1.bf16.msra.mxu0 %v6563_v28  ;;  %3554 = vmatpush1.bf16.msra.mxu1 %v6565_v29  ;;  %v586_v28 = vld [vmem:[#allocation5 + $0xd08] sm:$0xff]  ;;  %v6622_v29 = vcombine.high %v578_v19, %v582_v20  ;;  %v633_v19 = vld [vmem:[#allocation5 + $0xe80] sm:$0xff] }
 0x135   :  { %3391 = vmatprep.subr.bf16.mxu0 %v6572_v30  ;;  %3555 = vmatprep.subr.bf16.mxu1 %v6574_v35  ;;  %v590_v30 = vld [vmem:[#allocation5 + $0xd28] sm:$0xff]  ;;  %v593_v35 = vld [vmem:[#allocation5 + $0xd40] sm:$0xff] }
 0x136   :  { %v6629_v41 = vcombine.low %v586_v28, %v590_v30  ;;  %v6636_v42 = vcombine.high %v593_v35, %v597_v63  ;;  %v634_v20 = vld [vmem:[#allocation5 + $0xe88] sm:$0xff] }
 0x138   :  { %3392 = vmatpush1.bf16.msra.mxu0 %v6571_v37  ;;  %3556 = vmatpush1.bf16.msra.mxu1 %v6573_v38  ;;  %v594_v37 = vld [vmem:[#allocation5 + $0xd48] sm:$0xff]  ;;  %v6630_v38 = vcombine.high %v586_v28, %v590_v30  ;;  %v641_v28 = vld [vmem:[#allocation5 + $0xec0] sm:$0xff] }
 0x139   :  { %3393 = vmatprep.subr.bf16.mxu0 %v6580_v39  ;;  %3557 = vmatprep.subr.bf16.mxu1 %v6582_v45  ;;  %v598_v39 = vld [vmem:[#allocation5 + $0xd68] sm:$0xff]  ;;  %v601_v45 = vld [vmem:[#allocation5 + $0xd80] sm:$0xff] }
 0x13a   :  { %v6637_v51 = vcombine.low %v594_v37, %v598_v39  ;;  %v6644_v52 = vcombine.high %v601_v45, %v605_v46  ;;  %v642_v30 = vld [vmem:[#allocation5 + $0xec8] sm:$0xff] }
 0x13c   :  { %3394 = vmatpush1.bf16.msra.mxu0 %v6579_v48  ;;  %3558 = vmatpush1.bf16.msra.mxu1 %v6581_v49  ;;  %v6638_v48 = vcombine.high %v594_v37, %v598_v39  ;;  %v606_v49 = vld [vmem:[#allocation5 + $0xda8] sm:$0xff]  ;;  %v649_v37 = vld [vmem:[#allocation5 + $0xf00] sm:$0xff] }
 0x13d   :  { %3395 = vmatprep.subr.bf16.mxu0 %v6588_v50  ;;  %3559 = vmatprep.subr.bf16.mxu1 %v6590_v55  ;;  %v6635_v50 = vcombine.low %v593_v35, %v597_v63  ;;  %v613_v55 = vld [vmem:[#allocation5 + $0xde0] sm:$0xff]  ;;  %v6645_v61 = vcombine.low %v602_v47, %v606_v49  ;;  %v650_v39 = vld [vmem:[#allocation5 + $0xf08] sm:$0xff] }
 0x13e   :  { %v6652_v62 = vcombine.high %v609_v16, %v613_v55 }
 0x140   :  { %3396 = vmatpush1.bf16.msra.mxu0 %v6587_v58  ;;  %3560 = vmatpush1.bf16.msra.mxu1 %v6589_v23  ;;  %v6646_v58 = vcombine.high %v602_v47, %v606_v49  ;;  %v614_v23 = vld [vmem:[#allocation5 + $0xde8] sm:$0xff]  ;;  %v657_v47 = vld [vmem:[#allocation5 + $0xf40] sm:$0xff] }
 0x141   :  { %3406 = vmatprep.subr.bf16.mxu0 %v6596_v60  ;;  %3570 = vmatprep.subr.bf16.mxu1 %v6598_v1  ;;  %v6643_v60 = vcombine.low %v601_v45, %v605_v46  ;;  %v621_v1 = vld [vmem:[#allocation5 + $0xe20] sm:$0xff]  ;;  %v6654_v3 = vcombine.high %v610_v56, %v614_v23  ;;  %v658_v49 = vld [vmem:[#allocation5 + $0xf48] sm:$0xff] }
 0x142   :  { %v6660_v7 = vcombine.high %v617_v0, %v621_v1 }
 0x143   :  { %3398 = vmatmul.mubr.bf16.vlgmr.msra.gmra.mrb[0].mxu0 %v7960_v4  ;;  %3562 = vmatmul.mubr.bf16.vlgmr.msra.gmra.mrb[0].mxu1 %v7960_v4 }
 0x144   :  { %3407 = vmatpush1.bf16.msra.mxu0 %v6595_v53  ;;  %3571 = vmatpush1.bf16.msra.mxu1 %v6597_v5  ;;  %v622_v53 = vld [vmem:[#allocation5 + $0xe28] sm:$0xff]  ;;  %v6651_v5 = vcombine.low %v609_v16, %v613_v55 }
 0x145   :  { %3408 = vmatprep.subr.bf16.mxu0 %v6604_v6  ;;  %3572 = vmatprep.subr.bf16.mxu1 %v6606_v11  ;;  %v6653_v6 = vcombine.low %v610_v56, %v614_v23  ;;  %v626_v11 = vld [vmem:[#allocation5 + $0xe48] sm:$0xff]  ;;  %v6662_v12 = vcombine.high %v618_v2, %v622_v53  ;;  %v665_v56 = vld [vmem:[#allocation5 + $0xf80] sm:$0xff] }
 0x146   :  { %3438 = vmatprep.mubr.bf16.mxu0 %v7962_v13  ;;  %3602 = vmatprep.mubr.bf16.mxu1 %v7962_v13  ;;  %v666_v23 = vld [vmem:[#allocation5 + $0xf88] sm:$0xff] }
 0x148   :  { %3409 = vmatpush1.bf16.msra.mxu0 %v6603_v33  ;;  %3573 = vmatpush1.bf16.msra.mxu1 %v6605_v14  ;;  %v630_v33 = vld [vmem:[#allocation5 + $0xe68] sm:$0xff]  ;;  %v6659_v14 = vcombine.low %v617_v0, %v621_v1 }
 0x149   :  { %3410 = vmatprep.subr.bf16.mxu0 %v6612_v15  ;;  %3574 = vmatprep.subr.bf16.mxu1 %v6614_v59  ;;  %v6661_v15 = vcombine.low %v618_v2, %v622_v53  ;;  %v6670_v18 = vcombine.high %v626_v11, %v630_v33  ;;  %v637_v59 = vld [vmem:[#allocation5 + $0xea0] sm:$0xff]  ;;  %v674_v53 = vld [vmem:[#allocation5 + $0xfc8] sm:$0xff] }
 0x14a   :  { %v6676_v26 = vcombine.high %v633_v19, %v637_v59  ;;  %v673_v2 = vld [vmem:[#allocation5 + $0xfc0] sm:$0xff] }
 0x14c   :  { %3411 = vmatpush1.bf16.msra.mxu0 %v6611_v21  ;;  %3575 = vmatpush1.bf16.msra.mxu1 %v6613_v22  ;;  %v638_v21 = vld [vmem:[#allocation5 + $0xea8] sm:$0xff]  ;;  %v6667_v22 = vcombine.low %v625_v8, %v629_v10 }
 0x14d   :  { %3412 = vmatprep.subr.bf16.mxu0 %v6620_v24  ;;  %3576 = vmatprep.subr.bf16.mxu1 %v6622_v29  ;;  %v6669_v24 = vcombine.low %v626_v11, %v630_v33  ;;  %v6678_v27 = vcombine.high %v634_v20, %v638_v21  ;;  %v645_v29 = vld [vmem:[#allocation5 + $0xee0] sm:$0xff]  ;;  %v171_v11 = vld [vmem:[#allocation5 + $0x10] sm:$0xff]  ;;  %v172_v33 = vld [vmem:[#allocation5 + $0x18] sm:$0xff] }
 0x14e   :  { %v6684_v35 = vcombine.high %v641_v28, %v645_v29 }
 0x150   :  { %3413 = vmatpush1.bf16.msra.mxu0 %v6619_v31  ;;  %3577 = vmatpush1.bf16.msra.mxu1 %v6621_v32  ;;  %v646_v31 = vld [vmem:[#allocation5 + $0xee8] sm:$0xff]  ;;  %v6675_v32 = vcombine.low %v633_v19, %v637_v59  ;;  %v179_v59 = vld [vmem:[#allocation5 + $0x50] sm:$0xff] }
 0x151   :  { %3414 = vmatprep.subr.bf16.mxu0 %v6628_v34  ;;  %3578 = vmatprep.subr.bf16.mxu1 %v6630_v38  ;;  %v6677_v34 = vcombine.low %v634_v20, %v638_v21  ;;  %v6686_v63 = vcombine.high %v642_v30, %v646_v31  ;;  %v653_v38 = vld [vmem:[#allocation5 + $0xf20] sm:$0xff]  ;;  %v183_v20 = vld [vmem:[#allocation5 + $0x70] sm:$0xff]  ;;  %v7970_v21 = vpack.c.bf16 %v7954_v57, %v7954_v57 }
 0x152   :  { %v6692_v45 = vcombine.high %v649_v37, %v653_v38  ;;  %v6223_v57 = vcombine.low %v179_v59, %v183_v20 }
 0x154   :  { %3415 = vmatpush1.bf16.msra.mxu0 %v6627_v40  ;;  %3579 = vmatpush1.bf16.msra.mxu1 %v6629_v41  ;;  %v654_v40 = vld [vmem:[#allocation5 + $0xf28] sm:$0xff]  ;;  %v6683_v41 = vcombine.low %v641_v28, %v645_v29  ;;  %v6224_v28 = vcombine.high %v179_v59, %v183_v20  ;;  %v235_v59 = vld [vmem:[#allocation5 + $0x210] sm:$0xff] }
 0x155   :  { %3416 = vmatprep.subr.bf16.mxu0 %v6636_v42  ;;  %3580 = vmatprep.subr.bf16.mxu1 %v6638_v48  ;;  %v6685_v42 = vcombine.low %v642_v30, %v646_v31  ;;  %v6694_v46 = vcombine.high %v650_v39, %v654_v40  ;;  %v661_v48 = vld [vmem:[#allocation5 + $0xf60] sm:$0xff]  ;;  %v187_v30 = vld [vmem:[#allocation5 + $0x90] sm:$0xff] }
 0x156   :  { %v6700_v16 = vcombine.high %v657_v47, %v661_v48  ;;  %v191_v31 = vld [vmem:[#allocation5 + $0xb0] sm:$0xff] }
 0x157   :  { %v239_v20 = vld [vmem:[#allocation5 + $0x230] sm:$0xff] }
 0x158   :  { %3417 = vmatpush1.bf16.msra.mxu0 %v6635_v50  ;;  %3581 = vmatpush1.bf16.msra.mxu1 %v6637_v51  ;;  %v662_v50 = vld [vmem:[#allocation5 + $0xf68] sm:$0xff]  ;;  %v6691_v51 = vcombine.low %v649_v37, %v653_v38  ;;  %v195_v38 = vld [vmem:[#allocation5 + $0xd0] sm:$0xff] }
 0x159   :  { %3418 = vmatprep.subr.bf16.mxu0 %v6644_v52  ;;  %3582 = vmatprep.subr.bf16.mxu1 %v6646_v58  ;;  %v6693_v52 = vcombine.low %v650_v39, %v654_v40  ;;  %v6702_v55 = vcombine.high %v658_v49, %v662_v50  ;;  %v669_v58 = vld [vmem:[#allocation5 + $0xfa0] sm:$0xff]  ;;  %v199_v39 = vld [vmem:[#allocation5 + $0xf0] sm:$0xff]  ;;  %v196_v40 = vld [vmem:[#allocation5 + $0xd8] sm:$0xff] }
 0x15a   :  { %v6708_v0 = vcombine.high %v665_v56, %v669_v58 }
 0x15c   :  { %3419 = vmatpush1.bf16.msra.mxu0 %v6643_v60  ;;  %3583 = vmatpush1.bf16.msra.mxu1 %v6645_v61  ;;  %v670_v60 = vld [vmem:[#allocation5 + $0xfa8] sm:$0xff]  ;;  %v6699_v61 = vcombine.low %v657_v47, %v661_v48  ;;  %v203_v48 = vld [vmem:[#allocation5 + $0x110] sm:$0xff] }
 0x15d   :  { %3420 = vmatprep.subr.bf16.mxu0 %v6652_v62  ;;  %3584 = vmatprep.subr.bf16.mxu1 %v6654_v3  ;;  %v6701_v62 = vcombine.low %v658_v49, %v662_v50  ;;  %v6710_v1 = vcombine.high %v666_v23, %v670_v60  ;;  %v677_v3 = vld [vmem:[#allocation5 + $0xfe0] sm:$0xff]  ;;  %v207_v49 = vld [vmem:[#allocation5 + $0x130] sm:$0xff]  ;;  %v204_v50 = vld [vmem:[#allocation5 + $0x118] sm:$0xff] }
 0x15e   :  { %v6716_v8 = vcombine.high %v673_v2, %v677_v3 }
 0x160   :  { %3421 = vmatpush1.bf16.msra.mxu0 %v6651_v5  ;;  %3585 = vmatpush1.bf16.msra.mxu1 %v6653_v6  ;;  %v678_v5 = vld [vmem:[#allocation5 + $0xfe8] sm:$0xff]  ;;  %v6707_v6 = vcombine.low %v665_v56, %v669_v58  ;;  %v211_v56 = vld [vmem:[#allocation5 + $0x150] sm:$0xff] }
 0x161   :  { %3422 = vmatprep.subr.bf16.mxu0 %v6660_v7  ;;  %3586 = vmatprep.subr.bf16.mxu1 %v6662_v12  ;;  %v6709_v7 = vcombine.low %v666_v23, %v670_v60  ;;  %v6718_v10 = vcombine.high %v674_v53, %v678_v5  ;;  %v175_v12 = vld [vmem:[#allocation5 + $0x30] sm:$0xff]  ;;  %v212_v23 = vld [vmem:[#allocation5 + $0x158] sm:$0xff] }
 0x162   :  { %v215_v58 = vld [vmem:[#allocation5 + $0x170] sm:$0xff]  ;;  %v216_v60 = vld [vmem:[#allocation5 + $0x178] sm:$0xff] }
 0x164   :  { %3423 = vmatpush1.bf16.msra.mxu0 %v6659_v14  ;;  %3587 = vmatpush1.bf16.msra.mxu1 %v6661_v15  ;;  %v176_v14 = vld [vmem:[#allocation5 + $0x38] sm:$0xff]  ;;  %v6715_v15 = vcombine.low %v673_v2, %v677_v3  ;;  %v219_v2 = vld [vmem:[#allocation5 + $0x190] sm:$0xff] }
 0x165   :  { %3424 = vmatprep.subr.bf16.mxu0 %v6668_v17  ;;  %3588 = vmatprep.subr.bf16.mxu1 %v6670_v18  ;;  %v6717_v17 = vcombine.low %v674_v53, %v678_v5  ;;  %v6216_v18 = vcombine.high %v171_v11, %v175_v12  ;;  %v6218_v19 = vcombine.high %v172_v33, %v176_v14  ;;  %v223_v3 = vld [vmem:[#allocation5 + $0x1b0] sm:$0xff]  ;;  %v220_v53 = vld [vmem:[#allocation5 + $0x198] sm:$0xff] }
 0x166   :  { %v224_v5 = vld [vmem:[#allocation5 + $0x1b8] sm:$0xff] }
 0x168   :  { %3425 = vmatpush1.bf16.msra.mxu0 %v6667_v22  ;;  %3589 = vmatpush1.bf16.msra.mxu1 %v6669_v24  ;;  %v180_v22 = vld [vmem:[#allocation5 + $0x58] sm:$0xff] }
 0x169   :  { %3426 = vmatprep.subr.bf16.mxu0 %v6676_v26  ;;  %3590 = vmatprep.subr.bf16.mxu1 %v6678_v27  ;;  %v184_v24 = vld [vmem:[#allocation5 + $0x78] sm:$0xff]  ;;  %v6215_v26 = vcombine.low %v171_v11, %v175_v12  ;;  %v6217_v27 = vcombine.low %v172_v33, %v176_v14  ;;  %v227_v11 = vld [vmem:[#allocation5 + $0x1d0] sm:$0xff] }
 0x16a   :  { %v6226_v29 = vcombine.high %v180_v22, %v184_v24  ;;  %v231_v12 = vld [vmem:[#allocation5 + $0x1f0] sm:$0xff]  ;;  %v228_v33 = vld [vmem:[#allocation5 + $0x1d8] sm:$0xff] }
 0x16b   :  { %v232_v14 = vld [vmem:[#allocation5 + $0x1f8] sm:$0xff] }
 0x16c   :  { %3427 = vmatpush1.bf16.msra.mxu0 %v6675_v32  ;;  %3591 = vmatpush1.bf16.msra.mxu1 %v6677_v34  ;;  %v188_v32 = vld [vmem:[#allocation5 + $0x98] sm:$0xff] }
 0x16d   :  { %3428 = vmatprep.subr.bf16.mxu0 %v6684_v35  ;;  %3592 = vmatprep.subr.bf16.mxu1 %v6686_v63  ;;  %v192_v34 = vld [vmem:[#allocation5 + $0xb8] sm:$0xff]  ;;  %v6225_v35 = vcombine.low %v180_v22, %v184_v24  ;;  %v6232_v63 = vcombine.high %v187_v30, %v191_v31 }
 0x16e   :  { %v6234_v37 = vcombine.high %v188_v32, %v192_v34  ;;  %v236_v22 = vld [vmem:[#allocation5 + $0x218] sm:$0xff] }
 0x16f   :  { %v240_v24 = vld [vmem:[#allocation5 + $0x238] sm:$0xff] }
 0x170   :  { %3429 = vmatpush1.bf16.msra.mxu0 %v6683_v41  ;;  %3593 = vmatpush1.bf16.msra.mxu1 %v6685_v42  ;;  %v200_v41 = vld [vmem:[#allocation5 + $0xf8] sm:$0xff]  ;;  %v6231_v42 = vcombine.low %v187_v30, %v191_v31  ;;  %v243_v30 = vld [vmem:[#allocation5 + $0x250] sm:$0xff] }
 0x171   :  { %3430 = vmatprep.subr.bf16.mxu0 %v6692_v45  ;;  %3594 = vmatprep.subr.bf16.mxu1 %v6694_v46  ;;  %v6233_v45 = vcombine.low %v188_v32, %v192_v34  ;;  %v6240_v46 = vcombine.high %v195_v38, %v199_v39  ;;  %v6242_v47 = vcombine.high %v196_v40, %v200_v41  ;;  %v247_v31 = vld [vmem:[#allocation5 + $0x270] sm:$0xff]  ;;  %v244_v32 = vld [vmem:[#allocation5 + $0x258] sm:$0xff] }
 0x172   :  { %v248_v34 = vld [vmem:[#allocation5 + $0x278] sm:$0xff] }
 0x174   :  { %3431 = vmatpush1.bf16.msra.mxu0 %v6691_v51  ;;  %3595 = vmatpush1.bf16.msra.mxu1 %v6693_v52  ;;  %v208_v51 = vld [vmem:[#allocation5 + $0x138] sm:$0xff]  ;;  %v6239_v52 = vcombine.low %v195_v38, %v199_v39  ;;  %v251_v38 = vld [vmem:[#allocation5 + $0x290] sm:$0xff] }
 0x175   :  { %3432 = vmatprep.subr.bf16.mxu0 %v6700_v16  ;;  %3596 = vmatprep.subr.bf16.mxu1 %v6702_v55  ;;  %v6241_v16 = vcombine.low %v196_v40, %v200_v41  ;;  %v6248_v55 = vcombine.high %v203_v48, %v207_v49  ;;  %v255_v39 = vld [vmem:[#allocation5 + $0x2b0] sm:$0xff]  ;;  %v252_v40 = vld [vmem:[#allocation5 + $0x298] sm:$0xff] }
 0x176   :  { %v256_v41 = vld [vmem:[#allocation5 + $0x2b8] sm:$0xff] }
 0x178   :  { %3433 = vmatpush1.bf16.msra.mxu0 %v6699_v61  ;;  %3597 = vmatpush1.bf16.msra.mxu1 %v6701_v62  ;;  %v6247_v61 = vcombine.low %v203_v48, %v207_v49  ;;  %v6249_v62 = vcombine.low %v204_v50, %v208_v51  ;;  %v259_v48 = vld [vmem:[#allocation5 + $0x2d0] sm:$0xff] }
 0x179   :  { %3434 = vmatprep.subr.bf16.mxu0 %v6708_v0  ;;  %3598 = vmatprep.subr.bf16.mxu1 %v6710_v1  ;;  %v6256_v0 = vcombine.high %v211_v56, %v215_v58  ;;  %v6258_v1 = vcombine.high %v212_v23, %v216_v60  ;;  %v263_v49 = vld [vmem:[#allocation5 + $0x2f0] sm:$0xff] }
 0x17c   :  { %3435 = vmatpush1.bf16.msra.mxu0 %v6707_v6  ;;  %3599 = vmatpush1.bf16.msra.mxu1 %v6709_v7  ;;  %v6255_v6 = vcombine.low %v211_v56, %v215_v58  ;;  %v6257_v7 = vcombine.low %v212_v23, %v216_v60  ;;  %v267_v56 = vld [vmem:[#allocation5 + $0x310] sm:$0xff]  ;;  %v268_v23 = vld [vmem:[#allocation5 + $0x318] sm:$0xff] }
 0x17d   :  { %3436 = vmatprep.subr.bf16.mxu0 %v6716_v8  ;;  %3600 = vmatprep.subr.bf16.mxu1 %v6718_v10  ;;  %v6264_v8 = vcombine.high %v219_v2, %v223_v3  ;;  %v6266_v10 = vcombine.high %v220_v53, %v224_v5  ;;  %v271_v58 = vld [vmem:[#allocation5 + $0x330] sm:$0xff]  ;;  %v272_v60 = vld [vmem:[#allocation5 + $0x338] sm:$0xff] }
 0x180   :  { %3437 = vmatpush1.bf16.msra.mxu0 %v6715_v15  ;;  %3601 = vmatpush1.bf16.msra.mxu1 %v6717_v17  ;;  %v6263_v15 = vcombine.low %v219_v2, %v223_v3  ;;  %v6265_v17 = vcombine.low %v220_v53, %v224_v5  ;;  %v275_v2 = vld [vmem:[#allocation5 + $0x350] sm:$0xff]  ;;  %v276_v53 = vld [vmem:[#allocation5 + $0x358] sm:$0xff] }
 0x181   :  { %3611 = vmatprep.subr.bf16.mxu0 %v6216_v18  ;;  %3775 = vmatprep.subr.bf16.mxu1 %v6218_v19  ;;  %v6272_v18 = vcombine.high %v227_v11, %v231_v12  ;;  %v6274_v19 = vcombine.high %v228_v33, %v232_v14  ;;  %v279_v3 = vld [vmem:[#allocation5 + $0x370] sm:$0xff]  ;;  %v280_v5 = vld [vmem:[#allocation5 + $0x378] sm:$0xff] }
 0x183   :  { %3439 = vmatmul.mubr.bf16.vlgmr.msra.gmra.mrb[0].mxu0 %v7970_v21  ;;  %3603 = vmatmul.mubr.bf16.vlgmr.msra.gmra.mrb[0].mxu1 %v7970_v21 }
 0x184   :  { %3612 = vmatpush1.bf16.msra.mxu0 %v6215_v26  ;;  %3776 = vmatpush1.bf16.msra.mxu1 %v6217_v27  ;;  %v6271_v26 = vcombine.low %v227_v11, %v231_v12  ;;  %v6273_v27 = vcombine.low %v228_v33, %v232_v14  ;;  %v283_v11 = vld [vmem:[#allocation5 + $0x390] sm:$0xff]  ;;  %v284_v33 = vld [vmem:[#allocation5 + $0x398] sm:$0xff] }
 0x185   :  { %3613 = vmatprep.subr.bf16.mxu0 %v6224_v28  ;;  %3777 = vmatprep.subr.bf16.mxu1 %v6226_v29  ;;  %v6280_v28 = vcombine.high %v235_v59, %v239_v20  ;;  %v6282_v29 = vcombine.high %v236_v22, %v240_v24  ;;  %v287_v12 = vld [vmem:[#allocation5 + $0x3b0] sm:$0xff]  ;;  %v288_v14 = vld [vmem:[#allocation5 + $0x3b8] sm:$0xff] }
 0x186   :  { %3643 = vmatprep.mubr.bf16.mxu0 %v7912_v9  ;;  %3807 = vmatprep.mubr.bf16.mxu1 %v7912_v9  ;;  %v6250_v9 = vcombine.high %v204_v50, %v208_v51  ;;  %v260_v50 = vld [vmem:[#allocation5 + $0x2d8] sm:$0xff] }
 0x187   :  { %v264_v51 = vld [vmem:[#allocation5 + $0x2f8] sm:$0xff] }
 0x188   :  { %3614 = vmatpush1.bf16.msra.mxu0 %v6223_v57  ;;  %3778 = vmatpush1.bf16.msra.mxu1 %v6225_v35  ;;  %v6279_v57 = vcombine.low %v235_v59, %v239_v20  ;;  %v6281_v35 = vcombine.low %v236_v22, %v240_v24  ;;  %v291_v59 = vld [vmem:[#allocation5 + $0x3d0] sm:$0xff]  ;;  %v292_v22 = vld [vmem:[#allocation5 + $0x3d8] sm:$0xff] }
 0x189   :  { %3615 = vmatprep.subr.bf16.mxu0 %v6232_v63  ;;  %3779 = vmatprep.subr.bf16.mxu1 %v6234_v37  ;;  %v6288_v63 = vcombine.high %v243_v30, %v247_v31  ;;  %v6290_v37 = vcombine.high %v244_v32, %v248_v34  ;;  %v295_v20 = vld [vmem:[#allocation5 + $0x3f0] sm:$0xff]  ;;  %v296_v24 = vld [vmem:[#allocation5 + $0x3f8] sm:$0xff] }
 0x18c   :  { %3616 = vmatpush1.bf16.msra.mxu0 %v6231_v42  ;;  %3780 = vmatpush1.bf16.msra.mxu1 %v6233_v45  ;;  %v6287_v42 = vcombine.low %v243_v30, %v247_v31  ;;  %v6289_v45 = vcombine.low %v244_v32, %v248_v34  ;;  %v299_v30 = vld [vmem:[#allocation5 + $0x410] sm:$0xff]  ;;  %v300_v32 = vld [vmem:[#allocation5 + $0x418] sm:$0xff] }
 0x18d   :  { %3617 = vmatprep.subr.bf16.mxu0 %v6240_v46  ;;  %3781 = vmatprep.subr.bf16.mxu1 %v6242_v47  ;;  %v6296_v46 = vcombine.high %v251_v38, %v255_v39  ;;  %v6298_v47 = vcombine.high %v252_v40, %v256_v41  ;;  %v303_v31 = vld [vmem:[#allocation5 + $0x430] sm:$0xff]  ;;  %v304_v34 = vld [vmem:[#allocation5 + $0x438] sm:$0xff] }
 0x190   :  { %3618 = vmatpush1.bf16.msra.mxu0 %v6239_v52  ;;  %3782 = vmatpush1.bf16.msra.mxu1 %v6241_v16  ;;  %v6295_v52 = vcombine.low %v251_v38, %v255_v39  ;;  %v6297_v16 = vcombine.low %v252_v40, %v256_v41  ;;  %v307_v38 = vld [vmem:[#allocation5 + $0x450] sm:$0xff]  ;;  %v308_v40 = vld [vmem:[#allocation5 + $0x458] sm:$0xff] }
 0x191   :  { %3619 = vmatprep.subr.bf16.mxu0 %v6248_v55  ;;  %3783 = vmatprep.subr.bf16.mxu1 %v6250_v9  ;;  %v6304_v55 = vcombine.high %v259_v48, %v263_v49  ;;  %v6306_v9 = vcombine.high %v260_v50, %v264_v51  ;;  %v311_v39 = vld [vmem:[#allocation5 + $0x470] sm:$0xff]  ;;  %v312_v41 = vld [vmem:[#allocation5 + $0x478] sm:$0xff] }
 0x194   :  { %3620 = vmatpush1.bf16.msra.mxu0 %v6247_v61  ;;  %3784 = vmatpush1.bf16.msra.mxu1 %v6249_v62  ;;  %v6303_v61 = vcombine.low %v259_v48, %v263_v49  ;;  %v6305_v62 = vcombine.low %v260_v50, %v264_v51  ;;  %v315_v48 = vld [vmem:[#allocation5 + $0x490] sm:$0xff]  ;;  %v316_v50 = vld [vmem:[#allocation5 + $0x498] sm:$0xff] }
 0x195   :  { %3621 = vmatprep.subr.bf16.mxu0 %v6256_v0  ;;  %3785 = vmatprep.subr.bf16.mxu1 %v6258_v1  ;;  %v6312_v0 = vcombine.high %v267_v56, %v271_v58  ;;  %v6314_v1 = vcombine.high %v268_v23, %v272_v60  ;;  %v319_v49 = vld [vmem:[#allocation5 + $0x4b0] sm:$0xff]  ;;  %v320_v51 = vld [vmem:[#allocation5 + $0x4b8] sm:$0xff] }
 0x198   :  { %3622 = vmatpush1.bf16.msra.mxu0 %v6255_v6  ;;  %3786 = vmatpush1.bf16.msra.mxu1 %v6257_v7  ;;  %v6311_v6 = vcombine.low %v267_v56, %v271_v58  ;;  %v6313_v7 = vcombine.low %v268_v23, %v272_v60  ;;  %v323_v56 = vld [vmem:[#allocation5 + $0x4d0] sm:$0xff]  ;;  %v324_v23 = vld [vmem:[#allocation5 + $0x4d8] sm:$0xff] }
 0x199   :  { %3623 = vmatprep.subr.bf16.mxu0 %v6264_v8  ;;  %3787 = vmatprep.subr.bf16.mxu1 %v6266_v10  ;;  %v6320_v8 = vcombine.high %v275_v2, %v279_v3  ;;  %v6322_v10 = vcombine.high %v276_v53, %v280_v5  ;;  %v327_v58 = vld [vmem:[#allocation5 + $0x4f0] sm:$0xff]  ;;  %v328_v60 = vld [vmem:[#allocation5 + $0x4f8] sm:$0xff] }
 0x19c   :  { %3624 = vmatpush1.bf16.msra.mxu0 %v6263_v15  ;;  %3788 = vmatpush1.bf16.msra.mxu1 %v6265_v17  ;;  %v6319_v15 = vcombine.low %v275_v2, %v279_v3  ;;  %v6321_v17 = vcombine.low %v276_v53, %v280_v5  ;;  %v335_v2 = vld [vmem:[#allocation5 + $0x530] sm:$0xff]  ;;  %v332_v3 = vld [vmem:[#allocation5 + $0x518] sm:$0xff]  ;;  %v6367_v5 = vcombine.low %v323_v56, %v327_v58 }
 0x19d   :  { %3625 = vmatprep.subr.bf16.mxu0 %v6272_v18  ;;  %3789 = vmatprep.subr.bf16.mxu1 %v6274_v19  ;;  %v6328_v18 = vcombine.high %v283_v11, %v287_v12  ;;  %v6330_v19 = vcombine.high %v284_v33, %v288_v14  ;;  %v336_v53 = vld [vmem:[#allocation5 + $0x538] sm:$0xff] }
 0x1a0   :  { %3626 = vmatpush1.bf16.msra.mxu0 %v6271_v26  ;;  %3790 = vmatpush1.bf16.msra.mxu1 %v6273_v27  ;;  %v6327_v26 = vcombine.low %v283_v11, %v287_v12  ;;  %v6329_v27 = vcombine.low %v284_v33, %v288_v14  ;;  %v340_v11 = vld [vmem:[#allocation5 + $0x558] sm:$0xff]  ;;  %v6377_v14 = vcombine.low %v332_v3, %v336_v53 }
 0x1a1   :  { %3627 = vmatprep.subr.bf16.mxu0 %v6280_v28  ;;  %3791 = vmatprep.subr.bf16.mxu1 %v6282_v29  ;;  %v6336_v28 = vcombine.high %v291_v59, %v295_v20  ;;  %v6338_v29 = vcombine.high %v292_v22, %v296_v24  ;;  %v344_v12 = vld [vmem:[#allocation5 + $0x578] sm:$0xff] }
 0x1a4   :  { %3628 = vmatpush1.bf16.msra.mxu0 %v6279_v57  ;;  %3792 = vmatpush1.bf16.msra.mxu1 %v6281_v35  ;;  %v6335_v57 = vcombine.low %v291_v59, %v295_v20  ;;  %v6337_v35 = vcombine.low %v292_v22, %v296_v24  ;;  %v348_v59 = vld [vmem:[#allocation5 + $0x598] sm:$0xff]  ;;  %v6385_v24 = vcombine.low %v340_v11, %v344_v12 }
 0x1a5   :  { %3629 = vmatprep.subr.bf16.mxu0 %v6288_v63  ;;  %3793 = vmatprep.subr.bf16.mxu1 %v6290_v37  ;;  %v6344_v63 = vcombine.high %v299_v30, %v303_v31  ;;  %v6346_v37 = vcombine.high %v300_v32, %v304_v34  ;;  %v352_v20 = vld [vmem:[#allocation5 + $0x5b8] sm:$0xff] }
 0x1a8   :  { %3630 = vmatpush1.bf16.msra.mxu0 %v6287_v42  ;;  %3794 = vmatpush1.bf16.msra.mxu1 %v6289_v45  ;;  %v6343_v42 = vcombine.low %v299_v30, %v303_v31  ;;  %v6345_v45 = vcombine.low %v300_v32, %v304_v34  ;;  %v356_v30 = vld [vmem:[#allocation5 + $0x5d8] sm:$0xff]  ;;  %v6393_v34 = vcombine.low %v348_v59, %v352_v20 }
 0x1a9   :  { %3631 = vmatprep.subr.bf16.mxu0 %v6296_v46  ;;  %3795 = vmatprep.subr.bf16.mxu1 %v6298_v47  ;;  %v6352_v46 = vcombine.high %v307_v38, %v311_v39  ;;  %v6354_v47 = vcombine.high %v308_v40, %v312_v41  ;;  %v360_v31 = vld [vmem:[#allocation5 + $0x5f8] sm:$0xff] }
 0x1ac   :  { %3632 = vmatpush1.bf16.msra.mxu0 %v6295_v52  ;;  %3796 = vmatpush1.bf16.msra.mxu1 %v6297_v16  ;;  %v6351_v52 = vcombine.low %v307_v38, %v311_v39  ;;  %v6353_v16 = vcombine.low %v308_v40, %v312_v41  ;;  %v364_v38 = vld [vmem:[#allocation5 + $0x618] sm:$0xff]  ;;  %v6401_v41 = vcombine.low %v356_v30, %v360_v31 }
 0x1ad   :  { %3633 = vmatprep.subr.bf16.mxu0 %v6304_v55  ;;  %3797 = vmatprep.subr.bf16.mxu1 %v6306_v9  ;;  %v6360_v55 = vcombine.high %v315_v48, %v319_v49  ;;  %v6362_v9 = vcombine.high %v316_v50, %v320_v51  ;;  %v368_v39 = vld [vmem:[#allocation5 + $0x638] sm:$0xff] }
 0x1b0   :  { %3634 = vmatpush1.bf16.msra.mxu0 %v6303_v61  ;;  %3798 = vmatpush1.bf16.msra.mxu1 %v6305_v62  ;;  %v6359_v61 = vcombine.low %v315_v48, %v319_v49  ;;  %v6368_v62 = vcombine.high %v323_v56, %v327_v58  ;;  %v372_v48 = vld [vmem:[#allocation5 + $0x658] sm:$0xff] }
 0x1b1   :  { %3635 = vmatprep.subr.bf16.mxu0 %v6312_v0  ;;  %3799 = vmatprep.subr.bf16.mxu1 %v6314_v1  ;;  %v6370_v0 = vcombine.high %v324_v23, %v328_v60  ;;  %v331_v1 = vld [vmem:[#allocation5 + $0x510] sm:$0xff]  ;;  %v376_v49 = vld [vmem:[#allocation5 + $0x678] sm:$0xff] }
 0x1b2   :  { %v6375_v33 = vcombine.low %v331_v1, %v335_v2  ;;  %v380_v56 = vld [vmem:[#allocation5 + $0x698] sm:$0xff] }
 0x1b3   :  { %v384_v58 = vld [vmem:[#allocation5 + $0x6b8] sm:$0xff] }
 0x1b4   :  { %3636 = vmatpush1.bf16.msra.mxu0 %v6311_v6  ;;  %3800 = vmatpush1.bf16.msra.mxu1 %v6313_v7  ;;  %v6369_v6 = vcombine.low %v324_v23, %v328_v60  ;;  %v6376_v7 = vcombine.high %v331_v1, %v335_v2  ;;  %v6417_v60 = vcombine.low %v372_v48, %v376_v49  ;;  %v388_v1 = vld [vmem:[#allocation5 + $0x6d8] sm:$0xff] }
 0x1b5   :  { %3637 = vmatprep.subr.bf16.mxu0 %v6320_v8  ;;  %3801 = vmatprep.subr.bf16.mxu1 %v6322_v10  ;;  %v339_v8 = vld [vmem:[#allocation5 + $0x550] sm:$0xff]  ;;  %v392_v2 = vld [vmem:[#allocation5 + $0x6f8] sm:$0xff] }
 0x1b6   :  { %v343_v10 = vld [vmem:[#allocation5 + $0x570] sm:$0xff] }
 0x1b7   :  { %v6383_v22 = vcombine.low %v339_v8, %v343_v10 }
 0x1b8   :  { %3638 = vmatpush1.bf16.msra.mxu0 %v6319_v15  ;;  %3802 = vmatpush1.bf16.msra.mxu1 %v6321_v17  ;;  %v6384_v15 = vcombine.high %v339_v8, %v343_v10  ;;  %v6386_v17 = vcombine.high %v340_v11, %v344_v12  ;;  %v396_v8 = vld [vmem:[#allocation5 + $0x718] sm:$0xff]  ;;  %v6433_v12 = vcombine.low %v388_v1, %v392_v2 }
 0x1b9   :  { %3639 = vmatprep.subr.bf16.mxu0 %v6328_v18  ;;  %3803 = vmatprep.subr.bf16.mxu1 %v6330_v19  ;;  %v347_v18 = vld [vmem:[#allocation5 + $0x590] sm:$0xff]  ;;  %v400_v10 = vld [vmem:[#allocation5 + $0x738] sm:$0xff] }
 0x1ba   :  { %v351_v19 = vld [vmem:[#allocation5 + $0x5b0] sm:$0xff] }
 0x1bb   :  { %v6391_v32 = vcombine.low %v347_v18, %v351_v19 }
 0x1bc   :  { %3640 = vmatpush1.bf16.msra.mxu0 %v6327_v26  ;;  %3804 = vmatpush1.bf16.msra.mxu1 %v6329_v27  ;;  %v6392_v26 = vcombine.high %v347_v18, %v351_v19  ;;  %v6394_v27 = vcombine.high %v348_v59, %v352_v20  ;;  %v404_v18 = vld [vmem:[#allocation5 + $0x758] sm:$0xff]  ;;  %v6441_v20 = vcombine.low %v396_v8, %v400_v10 }
 0x1bd   :  { %3641 = vmatprep.subr.bf16.mxu0 %v6336_v28  ;;  %3805 = vmatprep.subr.bf16.mxu1 %v6338_v29  ;;  %v355_v28 = vld [vmem:[#allocation5 + $0x5d0] sm:$0xff]  ;;  %v408_v19 = vld [vmem:[#allocation5 + $0x778] sm:$0xff] }
 0x1be   :  { %v359_v29 = vld [vmem:[#allocation5 + $0x5f0] sm:$0xff] }
 0x1bf   :  { %v6399_v40 = vcombine.low %v355_v28, %v359_v29 }
 0x1c0   :  { %3642 = vmatpush1.bf16.msra.mxu0 %v6335_v57  ;;  %3806 = vmatpush1.bf16.msra.mxu1 %v6337_v35  ;;  %v6400_v57 = vcombine.high %v355_v28, %v359_v29  ;;  %v6402_v35 = vcombine.high %v356_v30, %v360_v31  ;;  %v412_v28 = vld [vmem:[#allocation5 + $0x798] sm:$0xff]  ;;  %v6449_v31 = vcombine.low %v404_v18, %v408_v19 }
 0x1c1   :  { %3652 = vmatprep.subr.bf16.mxu0 %v6344_v63  ;;  %3816 = vmatprep.subr.bf16.mxu1 %v6346_v37  ;;  %v363_v63 = vld [vmem:[#allocation5 + $0x610] sm:$0xff]  ;;  %v416_v29 = vld [vmem:[#allocation5 + $0x7b8] sm:$0xff] }
 0x1c2   :  { %v367_v37 = vld [vmem:[#allocation5 + $0x630] sm:$0xff] }
 0x1c3   :  { %3644 = vmatmul.mubr.bf16.vlgmr.msra.gmra.mrb[4].mxu0 %v7925_v25  ;;  %3808 = vmatmul.mubr.bf16.vlgmr.msra.gmra.mrb[4].mxu1 %v7925_v25  ;;  %v6361_v25 = vcombine.low %v316_v50, %v320_v51  ;;  %v6407_v50 = vcombine.low %v363_v63, %v367_v37  ;;  %v6409_v51 = vcombine.low %v364_v38, %v368_v39 }
 0x1c4   :  { %3653 = vmatpush1.bf16.msra.mxu0 %v6343_v42  ;;  %3817 = vmatpush1.bf16.msra.mxu1 %v6345_v45  ;;  %v6408_v42 = vcombine.high %v363_v63, %v367_v37  ;;  %v6410_v45 = vcombine.high %v364_v38, %v368_v39  ;;  %v420_v63 = vld [vmem:[#allocation5 + $0x7d8] sm:$0xff]  ;;  %v6457_v39 = vcombine.low %v412_v28, %v416_v29 }
 0x1c5   :  { %3654 = vmatprep.subr.bf16.mxu0 %v6352_v46  ;;  %3818 = vmatprep.subr.bf16.mxu1 %v6354_v47  ;;  %v371_v46 = vld [vmem:[#allocation5 + $0x650] sm:$0xff]  ;;  %v424_v37 = vld [vmem:[#allocation5 + $0x7f8] sm:$0xff] }
 0x1c6   :  { %3684 = vmatprep.mubr.bf16.mxu0 %v7927_v36  ;;  %3848 = vmatprep.mubr.bf16.mxu1 %v7927_v36  ;;  %v6378_v36 = vcombine.high %v332_v3, %v336_v53  ;;  %v375_v47 = vld [vmem:[#allocation5 + $0x670] sm:$0xff]  ;;  %v6425_v53 = vcombine.low %v380_v56, %v384_v58 }
 0x1c7   :  { %v6415_v23 = vcombine.low %v371_v46, %v375_v47 }
 0x1c8   :  { %3655 = vmatpush1.bf16.msra.mxu0 %v6351_v52  ;;  %3819 = vmatpush1.bf16.msra.mxu1 %v6353_v16  ;;  %v6416_v52 = vcombine.high %v371_v46, %v375_v47  ;;  %v6418_v16 = vcombine.high %v372_v48, %v376_v49  ;;  %v428_v46 = vld [vmem:[#allocation5 + $0x818] sm:$0xff]  ;;  %v6465_v49 = vcombine.low %v420_v63, %v424_v37 }
 0x1c9   :  { %3656 = vmatprep.subr.bf16.mxu0 %v6360_v55  ;;  %3820 = vmatprep.subr.bf16.mxu1 %v6362_v9  ;;  %v379_v55 = vld [vmem:[#allocation5 + $0x690] sm:$0xff]  ;;  %v432_v47 = vld [vmem:[#allocation5 + $0x838] sm:$0xff] }
 0x1ca   :  { %v383_v9 = vld [vmem:[#allocation5 + $0x6b0] sm:$0xff] }
 0x1cb   :  { %v6423_v3 = vcombine.low %v379_v55, %v383_v9 }
 0x1cc   :  { %3657 = vmatpush1.bf16.msra.mxu0 %v6359_v61  ;;  %3821 = vmatpush1.bf16.msra.mxu1 %v6361_v25  ;;  %v6424_v61 = vcombine.high %v379_v55, %v383_v9  ;;  %v6426_v25 = vcombine.high %v380_v56, %v384_v58  ;;  %v436_v55 = vld [vmem:[#allocation5 + $0x858] sm:$0xff]  ;;  %v6473_v58 = vcombine.low %v428_v46, %v432_v47 }
 0x1cd   :  { %3658 = vmatprep.subr.bf16.mxu0 %v6368_v62  ;;  %3822 = vmatprep.subr.bf16.mxu1 %v6370_v0  ;;  %v387_v62 = vld [vmem:[#allocation5 + $0x6d0] sm:$0xff]  ;;  %v440_v9 = vld [vmem:[#allocation5 + $0x878] sm:$0xff] }
 0x1ce   :  { %v391_v0 = vld [vmem:[#allocation5 + $0x6f0] sm:$0xff] }
 0x1cf   :  { %v6431_v11 = vcombine.low %v387_v62, %v391_v0 }
 0x1d0   :  { %3659 = vmatpush1.bf16.msra.mxu0 %v6367_v5  ;;  %3823 = vmatpush1.bf16.msra.mxu1 %v6369_v6  ;;  %v6432_v5 = vcombine.high %v387_v62, %v391_v0  ;;  %v6434_v6 = vcombine.high %v388_v1, %v392_v2  ;;  %v444_v62 = vld [vmem:[#allocation5 + $0x898] sm:$0xff]  ;;  %v6481_v2 = vcombine.low %v436_v55, %v440_v9 }
 0x1d1   :  { %3660 = vmatprep.subr.bf16.mxu0 %v6376_v7  ;;  %3824 = vmatprep.subr.bf16.mxu1 %v6378_v36  ;;  %v395_v7 = vld [vmem:[#allocation5 + $0x710] sm:$0xff]  ;;  %v448_v0 = vld [vmem:[#allocation5 + $0x8b8] sm:$0xff] }
 0x1d2   :  { %v399_v36 = vld [vmem:[#allocation5 + $0x730] sm:$0xff] }
 0x1d3   :  { %v6439_v59 = vcombine.low %v395_v7, %v399_v36 }
 0x1d4   :  { %3661 = vmatpush1.bf16.msra.mxu0 %v6375_v33  ;;  %3825 = vmatpush1.bf16.msra.mxu1 %v6377_v14  ;;  %v6440_v33 = vcombine.high %v395_v7, %v399_v36  ;;  %v6442_v14 = vcombine.high %v396_v8, %v400_v10  ;;  %v452_v7 = vld [vmem:[#allocation5 + $0x8d8] sm:$0xff] }
 0x1d5   :  { %3662 = vmatprep.subr.bf16.mxu0 %v6384_v15  ;;  %3826 = vmatprep.subr.bf16.mxu1 %v6386_v17  ;;  %v403_v15 = vld [vmem:[#allocation5 + $0x750] sm:$0xff]  ;;  %v456_v36 = vld [vmem:[#allocation5 + $0x8f8] sm:$0xff] }
 0x1d6   :  { %v407_v17 = vld [vmem:[#allocation5 + $0x770] sm:$0xff] }
 0x1d7   :  { %v6447_v30 = vcombine.low %v403_v15, %v407_v17 }
 0x1d8   :  { %3663 = vmatpush1.bf16.msra.mxu0 %v6383_v22  ;;  %3827 = vmatpush1.bf16.msra.mxu1 %v6385_v24  ;;  %v6448_v22 = vcombine.high %v403_v15, %v407_v17  ;;  %v6450_v24 = vcombine.high %v404_v18, %v408_v19  ;;  %v464_v15 = vld [vmem:[#allocation5 + $0x938] sm:$0xff]  ;;  %v6497_v18 = vcombine.low %v452_v7, %v456_v36 }
 0x1d9   :  { %3664 = vmatprep.subr.bf16.mxu0 %v6392_v26  ;;  %3828 = vmatprep.subr.bf16.mxu1 %v6394_v27  ;;  %v411_v26 = vld [vmem:[#allocation5 + $0x790] sm:$0xff] }
 0x1da   :  { %v415_v27 = vld [vmem:[#allocation5 + $0x7b0] sm:$0xff] }
 0x1db   :  { %v6455_v38 = vcombine.low %v411_v26, %v415_v27 }
 0x1dc   :  { %3665 = vmatpush1.bf16.msra.mxu0 %v6391_v32  ;;  %3829 = vmatpush1.bf16.msra.mxu1 %v6393_v34  ;;  %v6456_v32 = vcombine.high %v411_v26, %v415_v27  ;;  %v6458_v34 = vcombine.high %v412_v28, %v416_v29 }
 0x1dd   :  { %3666 = vmatprep.subr.bf16.mxu0 %v6400_v57  ;;  %3830 = vmatprep.subr.bf16.mxu1 %v6402_v35  ;;  %v419_v57 = vld [vmem:[#allocation5 + $0x7d0] sm:$0xff] }
 0x1de   :  { %v423_v35 = vld [vmem:[#allocation5 + $0x7f0] sm:$0xff] }
 0x1df   :  { %v6463_v48 = vcombine.low %v419_v57, %v423_v35 }
 0x1e0   :  { %3667 = vmatpush1.bf16.msra.mxu0 %v6399_v40  ;;  %3831 = vmatpush1.bf16.msra.mxu1 %v6401_v41  ;;  %v6464_v40 = vcombine.high %v419_v57, %v423_v35  ;;  %v6466_v41 = vcombine.high %v420_v63, %v424_v37 }
 0x1e1   :  { %3668 = vmatprep.subr.bf16.mxu0 %v6408_v42  ;;  %3832 = vmatprep.subr.bf16.mxu1 %v6410_v45  ;;  %v427_v42 = vld [vmem:[#allocation5 + $0x810] sm:$0xff] }
 0x1e2   :  { %v431_v45 = vld [vmem:[#allocation5 + $0x830] sm:$0xff] }
 0x1e3   :  { %v6471_v56 = vcombine.low %v427_v42, %v431_v45 }
 0x1e4   :  { %3669 = vmatpush1.bf16.msra.mxu0 %v6407_v50  ;;  %3833 = vmatpush1.bf16.msra.mxu1 %v6409_v51  ;;  %v6472_v50 = vcombine.high %v427_v42, %v431_v45  ;;  %v6474_v51 = vcombine.high %v428_v46, %v432_v47 }
 0x1e5   :  { %3670 = vmatprep.subr.bf16.mxu0 %v6416_v52  ;;  %3834 = vmatprep.subr.bf16.mxu1 %v6418_v16  ;;  %v435_v52 = vld [vmem:[#allocation5 + $0x850] sm:$0xff] }
 0x1e6   :  { %v439_v16 = vld [vmem:[#allocation5 + $0x870] sm:$0xff] }
 0x1e7   :  { %v6479_v1 = vcombine.low %v435_v52, %v439_v16 }
 0x1e8   :  { %3671 = vmatpush1.bf16.msra.mxu0 %v6415_v23  ;;  %3835 = vmatpush1.bf16.msra.mxu1 %v6417_v60  ;;  %v6480_v23 = vcombine.high %v435_v52, %v439_v16  ;;  %v6482_v60 = vcombine.high %v436_v55, %v440_v9 }
 0x1e9   :  { %3672 = vmatprep.subr.bf16.mxu0 %v6424_v61  ;;  %3836 = vmatprep.subr.bf16.mxu1 %v6426_v25  ;;  %v443_v61 = vld [vmem:[#allocation5 + $0x890] sm:$0xff] }
 0x1ea   :  { %v447_v25 = vld [vmem:[#allocation5 + $0x8b0] sm:$0xff] }
 0x1eb   :  { %v6487_v8 = vcombine.low %v443_v61, %v447_v25 }
 0x1ec   :  { %3673 = vmatpush1.bf16.msra.mxu0 %v6423_v3  ;;  %3837 = vmatpush1.bf16.msra.mxu1 %v6425_v53  ;;  %v6488_v3 = vcombine.high %v443_v61, %v447_v25  ;;  %v6490_v53 = vcombine.high %v444_v62, %v448_v0 }
 0x1ed   :  { %3674 = vmatprep.subr.bf16.mxu0 %v6432_v5  ;;  %3838 = vmatprep.subr.bf16.mxu1 %v6434_v6  ;;  %v451_v5 = vld [vmem:[#allocation5 + $0x8d0] sm:$0xff] }
 0x1ee   :  { %v455_v6 = vld [vmem:[#allocation5 + $0x8f0] sm:$0xff] }
 0x1ef   :  { %v6496_v10 = vcombine.high %v451_v5, %v455_v6  ;;  %v6495_v17 = vcombine.low %v451_v5, %v455_v6 }
 0x1f0   :  { %3675 = vmatpush1.bf16.msra.mxu0 %v6431_v11  ;;  %3839 = vmatpush1.bf16.msra.mxu1 %v6433_v12  ;;  %v6498_v11 = vcombine.high %v452_v7, %v456_v36  ;;  %v459_v12 = vld [vmem:[#allocation5 + $0x910] sm:$0xff] }
 0x1f1   :  { %3676 = vmatprep.subr.bf16.mxu0 %v6440_v33  ;;  %3840 = vmatprep.subr.bf16.mxu1 %v6442_v14  ;;  %v463_v33 = vld [vmem:[#allocation5 + $0x930] sm:$0xff]  ;;  %v460_v14 = vld [vmem:[#allocation5 + $0x918] sm:$0xff] }
 0x1f2   :  { %v6504_v19 = vcombine.high %v459_v12, %v463_v33  ;;  %v6503_v26 = vcombine.low %v459_v12, %v463_v33  ;;  %v6505_v27 = vcombine.low %v460_v14, %v464_v15 }
 0x1f4   :  { %3677 = vmatpush1.bf16.msra.mxu0 %v6439_v59  ;;  %3841 = vmatpush1.bf16.msra.mxu1 %v6441_v20  ;;  %v467_v59 = vld [vmem:[#allocation5 + $0x950] sm:$0xff] }
 0x1f5   :  { %3678 = vmatprep.subr.bf16.mxu0 %v6448_v22  ;;  %3842 = vmatprep.subr.bf16.mxu1 %v6450_v24  ;;  %v471_v20 = vld [vmem:[#allocation5 + $0x970] sm:$0xff]  ;;  %v468_v22 = vld [vmem:[#allocation5 + $0x958] sm:$0xff] }
 0x1f6   :  { %v472_v24 = vld [vmem:[#allocation5 + $0x978] sm:$0xff]  ;;  %v6512_v28 = vcombine.high %v467_v59, %v471_v20  ;;  %v6511_v57 = vcombine.low %v467_v59, %v471_v20 }
 0x1f7   :  { %v6514_v29 = vcombine.high %v468_v22, %v472_v24  ;;  %v6513_v35 = vcombine.low %v468_v22, %v472_v24 }
 0x1f8   :  { %3679 = vmatpush1.bf16.msra.mxu0 %v6447_v30  ;;  %3843 = vmatpush1.bf16.msra.mxu1 %v6449_v31  ;;  %v475_v30 = vld [vmem:[#allocation5 + $0x990] sm:$0xff] }
 0x1f9   :  { %3680 = vmatprep.subr.bf16.mxu0 %v6456_v32  ;;  %3844 = vmatprep.subr.bf16.mxu1 %v6458_v34  ;;  %v479_v31 = vld [vmem:[#allocation5 + $0x9b0] sm:$0xff]  ;;  %v476_v32 = vld [vmem:[#allocation5 + $0x998] sm:$0xff] }
 0x1fa   :  { %v480_v34 = vld [vmem:[#allocation5 + $0x9b8] sm:$0xff]  ;;  %v6520_v63 = vcombine.high %v475_v30, %v479_v31  ;;  %v6519_v42 = vcombine.low %v475_v30, %v479_v31 }
 0x1fb   :  { %v6522_v37 = vcombine.high %v476_v32, %v480_v34  ;;  %v6521_v45 = vcombine.low %v476_v32, %v480_v34 }
 0x1fc   :  { %3681 = vmatpush1.bf16.msra.mxu0 %v6455_v38  ;;  %3845 = vmatpush1.bf16.msra.mxu1 %v6457_v39  ;;  %v483_v38 = vld [vmem:[#allocation5 + $0x9d0] sm:$0xff] }
 0x1fd   :  { %3682 = vmatprep.subr.bf16.mxu0 %v6464_v40  ;;  %3846 = vmatprep.subr.bf16.mxu1 %v6466_v41  ;;  %v487_v39 = vld [vmem:[#allocation5 + $0x9f0] sm:$0xff]  ;;  %v484_v40 = vld [vmem:[#allocation5 + $0x9d8] sm:$0xff] }
 0x1fe   :  { %v488_v41 = vld [vmem:[#allocation5 + $0x9f8] sm:$0xff]  ;;  %v6528_v46 = vcombine.high %v483_v38, %v487_v39  ;;  %v6527_v52 = vcombine.low %v483_v38, %v487_v39 }
 0x1ff   :  { %v6530_v47 = vcombine.high %v484_v40, %v488_v41  ;;  %v6529_v16 = vcombine.low %v484_v40, %v488_v41 }
 0x200   :  { %3683 = vmatpush1.bf16.msra.mxu0 %v6463_v48  ;;  %3847 = vmatpush1.bf16.msra.mxu1 %v6465_v49  ;;  %v491_v48 = vld [vmem:[#allocation5 + $0xa10] sm:$0xff] }
 0x201   :  { %3693 = vmatprep.subr.bf16.mxu0 %v6472_v50  ;;  %3857 = vmatprep.subr.bf16.mxu1 %v6474_v51  ;;  %v495_v49 = vld [vmem:[#allocation5 + $0xa30] sm:$0xff]  ;;  %v492_v50 = vld [vmem:[#allocation5 + $0xa18] sm:$0xff] }
 0x202   :  { %v496_v51 = vld [vmem:[#allocation5 + $0xa38] sm:$0xff]  ;;  %v6536_v55 = vcombine.high %v491_v48, %v495_v49  ;;  %v6535_v61 = vcombine.low %v491_v48, %v495_v49 }
 0x203   :  { %3685 = vmatmul.mubr.bf16.vlgmr.msra.gmra.mrb[4].mxu0 %v7943_v43  ;;  %3849 = vmatmul.mubr.bf16.vlgmr.msra.gmra.mrb[4].mxu1 %v7943_v43  ;;  %v6489_v43 = vcombine.low %v444_v62, %v448_v0  ;;  %v6538_v9 = vcombine.high %v492_v50, %v496_v51  ;;  %v6537_v25 = vcombine.low %v492_v50, %v496_v51 }
 0x204   :  { %3694 = vmatpush1.bf16.msra.mxu0 %v6471_v56  ;;  %3858 = vmatpush1.bf16.msra.mxu1 %v6473_v58  ;;  %v499_v56 = vld [vmem:[#allocation5 + $0xa50] sm:$0xff] }
 0x205   :  { %3695 = vmatprep.subr.bf16.mxu0 %v6480_v23  ;;  %3859 = vmatprep.subr.bf16.mxu1 %v6482_v60  ;;  %v503_v58 = vld [vmem:[#allocation5 + $0xa70] sm:$0xff]  ;;  %v500_v23 = vld [vmem:[#allocation5 + $0xa58] sm:$0xff] }
 0x206   :  { %3725 = vmatprep.mubr.bf16.mxu0 %v7945_v54  ;;  %3889 = vmatprep.mubr.bf16.mxu1 %v7945_v54  ;;  %v6506_v54 = vcombine.high %v460_v14, %v464_v15  ;;  %v504_v60 = vld [vmem:[#allocation5 + $0xa78] sm:$0xff]  ;;  %v6544_v62 = vcombine.high %v499_v56, %v503_v58  ;;  %v6543_v5 = vcombine.low %v499_v56, %v503_v58 }
 0x207   :  { %v6546_v0 = vcombine.high %v500_v23, %v504_v60  ;;  %v6545_v6 = vcombine.low %v500_v23, %v504_v60 }
 0x208   :  { %3696 = vmatpush1.bf16.msra.mxu0 %v6479_v1  ;;  %3860 = vmatpush1.bf16.msra.mxu1 %v6481_v2  ;;  %v507_v1 = vld [vmem:[#allocation5 + $0xa90] sm:$0xff] }
 0x209   :  { %3697 = vmatprep.subr.bf16.mxu0 %v6488_v3  ;;  %3861 = vmatprep.subr.bf16.mxu1 %v6490_v53  ;;  %v511_v2 = vld [vmem:[#allocation5 + $0xab0] sm:$0xff]  ;;  %v508_v3 = vld [vmem:[#allocation5 + $0xa98] sm:$0xff] }
 0x20a   :  { %v512_v53 = vld [vmem:[#allocation5 + $0xab8] sm:$0xff]  ;;  %v6552_v7 = vcombine.high %v507_v1, %v511_v2  ;;  %v6551_v12 = vcombine.low %v507_v1, %v511_v2 }
 0x20b   :  { %v6554_v36 = vcombine.high %v508_v3, %v512_v53  ;;  %v6553_v33 = vcombine.low %v508_v3, %v512_v53 }
 0x20c   :  { %3698 = vmatpush1.bf16.msra.mxu0 %v6487_v8  ;;  %3862 = vmatpush1.bf16.msra.mxu1 %v6489_v43  ;;  %v515_v8 = vld [vmem:[#allocation5 + $0xad0] sm:$0xff] }
 0x20d   :  { %3699 = vmatprep.subr.bf16.mxu0 %v6496_v10  ;;  %3863 = vmatprep.subr.bf16.mxu1 %v6498_v11  ;;  %v519_v43 = vld [vmem:[#allocation5 + $0xaf0] sm:$0xff]  ;;  %v516_v10 = vld [vmem:[#allocation5 + $0xad8] sm:$0xff] }
 0x20e   :  { %v520_v11 = vld [vmem:[#allocation5 + $0xaf8] sm:$0xff]  ;;  %v6560_v14 = vcombine.high %v515_v8, %v519_v43  ;;  %v6559_v59 = vcombine.low %v515_v8, %v519_v43 }
 0x20f   :  { %v6562_v15 = vcombine.high %v516_v10, %v520_v11  ;;  %v6561_v20 = vcombine.low %v516_v10, %v520_v11 }
 0x210   :  { %3700 = vmatpush1.bf16.msra.mxu0 %v6495_v17  ;;  %3864 = vmatpush1.bf16.msra.mxu1 %v6497_v18  ;;  %v523_v17 = vld [vmem:[#allocation5 + $0xb10] sm:$0xff] }
 0x211   :  { %3701 = vmatprep.subr.bf16.mxu0 %v6504_v19  ;;  %3865 = vmatprep.subr.bf16.mxu1 %v6506_v54  ;;  %v527_v18 = vld [vmem:[#allocation5 + $0xb30] sm:$0xff]  ;;  %v524_v19 = vld [vmem:[#allocation5 + $0xb18] sm:$0xff] }
 0x212   :  { %v528_v54 = vld [vmem:[#allocation5 + $0xb38] sm:$0xff]  ;;  %v6568_v22 = vcombine.high %v523_v17, %v527_v18  ;;  %v6567_v30 = vcombine.low %v523_v17, %v527_v18 }
 0x213   :  { %v6570_v24 = vcombine.high %v524_v19, %v528_v54  ;;  %v6569_v31 = vcombine.low %v524_v19, %v528_v54  ;;  %v587_v54 = vld [vmem:[#allocation5 + $0xd10] sm:$0xff] }
 0x214   :  { %3702 = vmatpush1.bf16.msra.mxu0 %v6503_v26  ;;  %3866 = vmatpush1.bf16.msra.mxu1 %v6505_v27  ;;  %v531_v26 = vld [vmem:[#allocation5 + $0xb50] sm:$0xff] }
 0x215   :  { %3703 = vmatprep.subr.bf16.mxu0 %v6512_v28  ;;  %3867 = vmatprep.subr.bf16.mxu1 %v6514_v29  ;;  %v535_v27 = vld [vmem:[#allocation5 + $0xb70] sm:$0xff]  ;;  %v532_v28 = vld [vmem:[#allocation5 + $0xb58] sm:$0xff] }
 0x216   :  { %v536_v29 = vld [vmem:[#allocation5 + $0xb78] sm:$0xff]  ;;  %v6576_v32 = vcombine.high %v531_v26, %v535_v27  ;;  %v6575_v38 = vcombine.low %v531_v26, %v535_v27 }
 0x217   :  { %v6578_v34 = vcombine.high %v532_v28, %v536_v29  ;;  %v6577_v39 = vcombine.low %v532_v28, %v536_v29  ;;  %v595_v28 = vld [vmem:[#allocation5 + $0xd50] sm:$0xff] }
 0x218   :  { %3704 = vmatpush1.bf16.msra.mxu0 %v6511_v57  ;;  %3868 = vmatpush1.bf16.msra.mxu1 %v6513_v35  ;;  %v539_v57 = vld [vmem:[#allocation5 + $0xb90] sm:$0xff] }
 0x219   :  { %3705 = vmatprep.subr.bf16.mxu0 %v6520_v63  ;;  %3869 = vmatprep.subr.bf16.mxu1 %v6522_v37  ;;  %v543_v35 = vld [vmem:[#allocation5 + $0xbb0] sm:$0xff]  ;;  %v540_v63 = vld [vmem:[#allocation5 + $0xb98] sm:$0xff] }
 0x21a   :  { %v544_v37 = vld [vmem:[#allocation5 + $0xbb8] sm:$0xff]  ;;  %v6584_v40 = vcombine.high %v539_v57, %v543_v35  ;;  %v6583_v48 = vcombine.low %v539_v57, %v543_v35  ;;  %v599_v29 = vld [vmem:[#allocation5 + $0xd70] sm:$0xff] }
 0x21b   :  { %v6586_v41 = vcombine.high %v540_v63, %v544_v37  ;;  %v6585_v49 = vcombine.low %v540_v63, %v544_v37  ;;  %v6640_v57 = vcombine.high %v595_v28, %v599_v29  ;;  %v603_v63 = vld [vmem:[#allocation5 + $0xd90] sm:$0xff] }
 0x21c   :  { %3706 = vmatpush1.bf16.msra.mxu0 %v6519_v42  ;;  %3870 = vmatpush1.bf16.msra.mxu1 %v6521_v45  ;;  %v547_v42 = vld [vmem:[#allocation5 + $0xbd0] sm:$0xff] }
 0x21d   :  { %3707 = vmatprep.subr.bf16.mxu0 %v6528_v46  ;;  %3871 = vmatprep.subr.bf16.mxu1 %v6530_v47  ;;  %v551_v45 = vld [vmem:[#allocation5 + $0xbf0] sm:$0xff]  ;;  %v548_v46 = vld [vmem:[#allocation5 + $0xbd8] sm:$0xff] }
 0x21e   :  { %v552_v47 = vld [vmem:[#allocation5 + $0xbf8] sm:$0xff]  ;;  %v6592_v50 = vcombine.high %v547_v42, %v551_v45  ;;  %v6591_v56 = vcombine.low %v547_v42, %v551_v45  ;;  %v607_v37 = vld [vmem:[#allocation5 + $0xdb0] sm:$0xff] }
 0x21f   :  { %v6594_v51 = vcombine.high %v548_v46, %v552_v47  ;;  %v6593_v58 = vcombine.low %v548_v46, %v552_v47  ;;  %v6648_v42 = vcombine.high %v603_v63, %v607_v37  ;;  %v611_v47 = vld [vmem:[#allocation5 + $0xdd0] sm:$0xff] }
 0x220   :  { %3708 = vmatpush1.bf16.msra.mxu0 %v6527_v52  ;;  %3872 = vmatpush1.bf16.msra.mxu1 %v6529_v16  ;;  %v555_v52 = vld [vmem:[#allocation5 + $0xc10] sm:$0xff] }
 0x221   :  { %3709 = vmatprep.subr.bf16.mxu0 %v6536_v55  ;;  %3873 = vmatprep.subr.bf16.mxu1 %v6538_v9  ;;  %v559_v16 = vld [vmem:[#allocation5 + $0xc30] sm:$0xff]  ;;  %v556_v55 = vld [vmem:[#allocation5 + $0xc18] sm:$0xff] }
 0x222   :  { %v560_v9 = vld [vmem:[#allocation5 + $0xc38] sm:$0xff]  ;;  %v6600_v23 = vcombine.high %v555_v52, %v559_v16  ;;  %v6599_v1 = vcombine.low %v555_v52, %v559_v16 }
 0x223   :  { %v6602_v60 = vcombine.high %v556_v55, %v560_v9  ;;  %v6601_v2 = vcombine.low %v556_v55, %v560_v9  ;;  %v616_v52 = vld [vmem:[#allocation5 + $0xdf8] sm:$0xff]  ;;  %v6647_v9 = vcombine.low %v603_v63, %v607_v37 }
 0x224   :  { %3710 = vmatpush1.bf16.msra.mxu0 %v6535_v61  ;;  %3874 = vmatpush1.bf16.msra.mxu1 %v6537_v25  ;;  %v563_v61 = vld [vmem:[#allocation5 + $0xc50] sm:$0xff] }
 0x225   :  { %3711 = vmatprep.subr.bf16.mxu0 %v6544_v62  ;;  %3875 = vmatprep.subr.bf16.mxu1 %v6546_v0  ;;  %v567_v25 = vld [vmem:[#allocation5 + $0xc70] sm:$0xff]  ;;  %v564_v62 = vld [vmem:[#allocation5 + $0xc58] sm:$0xff] }
 0x226   :  { %v568_v0 = vld [vmem:[#allocation5 + $0xc78] sm:$0xff]  ;;  %v6608_v3 = vcombine.high %v563_v61, %v567_v25  ;;  %v6607_v8 = vcombine.low %v563_v61, %v567_v25 }
 0x227   :  { %v6610_v53 = vcombine.high %v564_v62, %v568_v0  ;;  %v6609_v43 = vcombine.low %v564_v62, %v568_v0  ;;  %v619_v62 = vld [vmem:[#allocation5 + $0xe10] sm:$0xff] }
 0x228   :  { %3712 = vmatpush1.bf16.msra.mxu0 %v6543_v5  ;;  %3876 = vmatpush1.bf16.msra.mxu1 %v6545_v6  ;;  %v571_v5 = vld [vmem:[#allocation5 + $0xc90] sm:$0xff] }
 0x229   :  { %3713 = vmatprep.subr.bf16.mxu0 %v6552_v7  ;;  %3877 = vmatprep.subr.bf16.mxu1 %v6554_v36  ;;  %v575_v6 = vld [vmem:[#allocation5 + $0xcb0] sm:$0xff]  ;;  %v572_v7 = vld [vmem:[#allocation5 + $0xc98] sm:$0xff] }
 0x22a   :  { %v576_v36 = vld [vmem:[#allocation5 + $0xcb8] sm:$0xff]  ;;  %v6616_v10 = vcombine.high %v571_v5, %v575_v6  ;;  %v6615_v17 = vcombine.low %v571_v5, %v575_v6  ;;  %v623_v0 = vld [vmem:[#allocation5 + $0xe30] sm:$0xff] }
 0x22b   :  { %v6618_v11 = vcombine.high %v572_v7, %v576_v36  ;;  %v6664_v5 = vcombine.high %v619_v62, %v623_v0 }
 0x22c   :  { %3714 = vmatpush1.bf16.msra.mxu0 %v6551_v12  ;;  %3878 = vmatpush1.bf16.msra.mxu1 %v6553_v33  ;;  %v579_v12 = vld [vmem:[#allocation5 + $0xcd0] sm:$0xff] }
 0x22d   :  { %3715 = vmatprep.subr.bf16.mxu0 %v6560_v14  ;;  %3879 = vmatprep.subr.bf16.mxu1 %v6562_v15  ;;  %v583_v33 = vld [vmem:[#allocation5 + $0xcf0] sm:$0xff]  ;;  %v580_v14 = vld [vmem:[#allocation5 + $0xcd8] sm:$0xff] }
 0x22e   :  { %v584_v15 = vld [vmem:[#allocation5 + $0xcf8] sm:$0xff]  ;;  %v6624_v18 = vcombine.high %v579_v12, %v583_v33 }
 0x22f   :  { %v6626_v19 = vcombine.high %v580_v14, %v584_v15  ;;  %v6625_v26 = vcombine.low %v580_v14, %v584_v15  ;;  %v635_v14 = vld [vmem:[#allocation5 + $0xe90] sm:$0xff] }
 0x230   :  { %3716 = vmatpush1.bf16.msra.mxu0 %v6559_v59  ;;  %3880 = vmatpush1.bf16.msra.mxu1 %v6561_v20  ;;  %v591_v59 = vld [vmem:[#allocation5 + $0xd30] sm:$0xff]  ;;  %v588_v20 = vld [vmem:[#allocation5 + $0xd18] sm:$0xff] }
 0x231   :  { %3717 = vmatprep.subr.bf16.mxu0 %v6568_v22  ;;  %3881 = vmatprep.subr.bf16.mxu1 %v6570_v24  ;;  %v592_v22 = vld [vmem:[#allocation5 + $0xd38] sm:$0xff]  ;;  %v6623_v24 = vcombine.low %v579_v12, %v583_v33  ;;  %v6632_v27 = vcombine.high %v587_v54, %v591_v59  ;;  %v639_v15 = vld [vmem:[#allocation5 + $0xeb0] sm:$0xff] }
 0x234   :  { %3718 = vmatpush1.bf16.msra.mxu0 %v6567_v30  ;;  %3882 = vmatpush1.bf16.msra.mxu1 %v6569_v31  ;;  %v596_v30 = vld [vmem:[#allocation5 + $0xd58] sm:$0xff] }
 0x235   :  { %3719 = vmatprep.subr.bf16.mxu0 %v6576_v32  ;;  %3883 = vmatprep.subr.bf16.mxu1 %v6578_v34  ;;  %v600_v31 = vld [vmem:[#allocation5 + $0xd78] sm:$0xff]  ;;  %v6631_v32 = vcombine.low %v587_v54, %v591_v59  ;;  %v6633_v34 = vcombine.low %v588_v20, %v592_v22  ;;  %v6680_v54 = vcombine.high %v635_v14, %v639_v15 }
 0x236   :  { %v6642_v35 = vcombine.high %v596_v30, %v600_v31 }
 0x238   :  { %3720 = vmatpush1.bf16.msra.mxu0 %v6575_v38  ;;  %3884 = vmatpush1.bf16.msra.mxu1 %v6577_v39  ;;  %v604_v38 = vld [vmem:[#allocation5 + $0xd98] sm:$0xff] }
 0x239   :  { %3721 = vmatprep.subr.bf16.mxu0 %v6584_v40  ;;  %3885 = vmatprep.subr.bf16.mxu1 %v6586_v41  ;;  %v608_v39 = vld [vmem:[#allocation5 + $0xdb8] sm:$0xff]  ;;  %v6639_v40 = vcombine.low %v595_v28, %v599_v29  ;;  %v6641_v41 = vcombine.low %v596_v30, %v600_v31  ;;  %v651_v30 = vld [vmem:[#allocation5 + $0xf10] sm:$0xff] }
 0x23a   :  { %v6650_v46 = vcombine.high %v604_v38, %v608_v39  ;;  %v655_v31 = vld [vmem:[#allocation5 + $0xf30] sm:$0xff] }
 0x23b   :  { %v6696_v63 = vcombine.high %v651_v30, %v655_v31 }
 0x23c   :  { %3722 = vmatpush1.bf16.msra.mxu0 %v6583_v48  ;;  %3886 = vmatpush1.bf16.msra.mxu1 %v6585_v49  ;;  %v615_v48 = vld [vmem:[#allocation5 + $0xdf0] sm:$0xff] }
 0x23d   :  { %3723 = vmatprep.subr.bf16.mxu0 %v6592_v50  ;;  %3887 = vmatprep.subr.bf16.mxu1 %v6594_v51  ;;  %v612_v51 = vld [vmem:[#allocation5 + $0xdd8] sm:$0xff] }
 0x23e   :  { %v6658_v25 = vcombine.high %v612_v51, %v616_v52 }
 0x240   :  { %3724 = vmatpush1.bf16.msra.mxu0 %v6591_v56  ;;  %3888 = vmatpush1.bf16.msra.mxu1 %v6593_v58 }
 0x241   :  { %3734 = vmatprep.subr.bf16.mxu0 %v6600_v23  ;;  %3898 = vmatprep.subr.bf16.mxu1 %v6602_v60  ;;  %v6649_v23 = vcombine.low %v604_v38, %v608_v39  ;;  %v6656_v60 = vcombine.high %v611_v47, %v615_v48  ;;  %v659_v38 = vld [vmem:[#allocation5 + $0xf50] sm:$0xff] }
 0x242   :  { %v663_v39 = vld [vmem:[#allocation5 + $0xf70] sm:$0xff] }
 0x243   :  { %3726 = vmatmul.mubr.bf16.vlgmr.msra.gmra.mrb[4].mxu0 %v7960_v4  ;;  %3890 = vmatmul.mubr.bf16.vlgmr.msra.gmra.mrb[4].mxu1 %v7960_v4  ;;  %v6617_v4 = vcombine.low %v572_v7, %v576_v36  ;;  %v627_v7 = vld [vmem:[#allocation5 + $0xe50] sm:$0xff] }
 0x244   :  { %3735 = vmatpush1.bf16.msra.mxu0 %v6599_v1  ;;  %3899 = vmatpush1.bf16.msra.mxu1 %v6601_v2  ;;  %v620_v1 = vld [vmem:[#allocation5 + $0xe18] sm:$0xff]  ;;  %v631_v36 = vld [vmem:[#allocation5 + $0xe70] sm:$0xff] }
 0x245   :  { %3736 = vmatprep.subr.bf16.mxu0 %v6608_v3  ;;  %3900 = vmatprep.subr.bf16.mxu1 %v6610_v53  ;;  %v624_v2 = vld [vmem:[#allocation5 + $0xe38] sm:$0xff]  ;;  %v6655_v3 = vcombine.low %v611_v47, %v615_v48  ;;  %v6657_v53 = vcombine.low %v612_v51, %v616_v52  ;;  %v6672_v12 = vcombine.high %v627_v7, %v631_v36  ;;  %v667_v51 = vld [vmem:[#allocation5 + $0xf90] sm:$0xff] }
 0x246   :  { %3766 = vmatprep.mubr.bf16.mxu0 %v7962_v13  ;;  %3930 = vmatprep.mubr.bf16.mxu1 %v7962_v13  ;;  %v6634_v13 = vcombine.high %v588_v20, %v592_v22  ;;  %v6666_v6 = vcombine.high %v620_v1, %v624_v2  ;;  %v643_v20 = vld [vmem:[#allocation5 + $0xed0] sm:$0xff]  ;;  %v6704_v47 = vcombine.high %v659_v38, %v663_v39 }
 0x247   :  { %v647_v22 = vld [vmem:[#allocation5 + $0xef0] sm:$0xff] }
 0x248   :  { %3737 = vmatpush1.bf16.msra.mxu0 %v6607_v8  ;;  %3901 = vmatpush1.bf16.msra.mxu1 %v6609_v43  ;;  %v628_v8 = vld [vmem:[#allocation5 + $0xe58] sm:$0xff]  ;;  %v6688_v28 = vcombine.high %v643_v20, %v647_v22  ;;  %v671_v52 = vld [vmem:[#allocation5 + $0xfb0] sm:$0xff] }
 0x249   :  { %3738 = vmatprep.subr.bf16.mxu0 %v6616_v10  ;;  %3902 = vmatprep.subr.bf16.mxu1 %v6618_v11  ;;  %v632_v43 = vld [vmem:[#allocation5 + $0xe78] sm:$0xff]  ;;  %v6663_v10 = vcombine.low %v619_v62, %v623_v0  ;;  %v6665_v11 = vcombine.low %v620_v1, %v624_v2  ;;  %v675_v62 = vld [vmem:[#allocation5 + $0xfd0] sm:$0xff] }
 0x24a   :  { %v6674_v33 = vcombine.high %v628_v8, %v632_v43  ;;  %v679_v0 = vld [vmem:[#allocation5 + $0xff0] sm:$0xff]  ;;  %v676_v2 = vld [vmem:[#allocation5 + $0xfd8] sm:$0xff] }
 0x24c   :  { %3739 = vmatpush1.bf16.msra.mxu0 %v6615_v17  ;;  %3903 = vmatpush1.bf16.msra.mxu1 %v6617_v4  ;;  %v636_v17 = vld [vmem:[#allocation5 + $0xe98] sm:$0xff] }
 0x24d   :  { %3740 = vmatprep.subr.bf16.mxu0 %v6624_v18  ;;  %3904 = vmatprep.subr.bf16.mxu1 %v6626_v19  ;;  %v640_v4 = vld [vmem:[#allocation5 + $0xeb8] sm:$0xff]  ;;  %v6671_v18 = vcombine.low %v627_v7, %v631_v36  ;;  %v6673_v19 = vcombine.low %v628_v8, %v632_v43  ;;  %v6719_v8 = vcombine.low %v675_v62, %v679_v0 }
 0x24e   :  { %v6682_v59 = vcombine.high %v636_v17, %v640_v4 }
 0x250   :  { %3741 = vmatpush1.bf16.msra.mxu0 %v6623_v24  ;;  %3905 = vmatpush1.bf16.msra.mxu1 %v6625_v26  ;;  %v644_v24 = vld [vmem:[#allocation5 + $0xed8] sm:$0xff] }
 0x251   :  { %3742 = vmatprep.subr.bf16.mxu0 %v6632_v27  ;;  %3906 = vmatprep.subr.bf16.mxu1 %v6634_v13  ;;  %v648_v26 = vld [vmem:[#allocation5 + $0xef8] sm:$0xff]  ;;  %v6679_v27 = vcombine.low %v635_v14, %v639_v15  ;;  %v6681_v13 = vcombine.low %v636_v17, %v640_v4  ;;  %v7160_v14 = vld [vmem:[#allocation8 + $0x8] ss:$16 sps:$4 sm:$0xff]  }
 0x252   :  { %v6690_v29 = vcombine.high %v644_v24, %v648_v26  ;;  %v7165_v15 = vld [vmem:[#allocation8 + $0x24] ss:$16 sps:$4 sm:$0xff]   ;;  %v7163_v4 = vld [vmem:[#allocation8 + $0x20] ss:$16 sps:$4 sm:$0xff]  }
 0x254   :  { %3743 = vmatpush1.bf16.msra.mxu0 %v6631_v32  ;;  %3907 = vmatpush1.bf16.msra.mxu1 %v6633_v34  ;;  %v652_v32 = vld [vmem:[#allocation5 + $0xf18] sm:$0xff] }
 0x255   :  { %3744 = vmatprep.subr.bf16.mxu0 %v6640_v57  ;;  %3908 = vmatprep.subr.bf16.mxu1 %v6642_v35  ;;  %v656_v34 = vld [vmem:[#allocation5 + $0xf38] sm:$0xff]  ;;  %v6687_v57 = vcombine.low %v643_v20, %v647_v22  ;;  %v6689_v35 = vcombine.low %v644_v24, %v648_v26  ;;  %v7172_v20 = vld [vmem:[#allocation8 + $0x48] ss:$16 sps:$4 sm:$0xff]   ;;  %v7180_v24 = vld [vmem:[#allocation8 + $0x6c] ss:$16 sps:$4 sm:$0xff]  }
 0x256   :  { %v7988_v45 = vpop.f32.mrb[0].mxu0  ;;  %v7990_v49 = vpop.f32.mrb[0].mxu1  ;;  %v6698_v37 = vcombine.high %v652_v32, %v656_v34  ;;  %v7177_v22 = vld [vmem:[#allocation8 + $0x64] ss:$16 sps:$4 sm:$0xff]   ;;  %v7178_v26 = vld [vmem:[#allocation8 + $0x68] ss:$16 sps:$4 sm:$0xff]  }
 0x257   :  { %v7992_v50 = vpop.f32.mrb[1].mxu0  ;;  %v7994_v16 = vpop.f32.mrb[1].mxu1 }
 0x258   :  { %v3444_v55 = vpop.f32.mrb[2].mxu0  ;;  %3745 = vmatpush1.bf16.msra.mxu0 %v6639_v40  ;;  %v3608_v56 = vpop.f32.mrb[2].mxu1  ;;  %3909 = vmatpush1.bf16.msra.mxu1 %v6641_v41  ;;  %v660_v40 = vld [vmem:[#allocation5 + $0xf58] sm:$0xff] }
 0x259   :  { %v3445_v58 = vpop.f32.mrb[3].mxu0  ;;  %3746 = vmatprep.subr.bf16.mxu0 %v6648_v42  ;;  %v3609_v61 = vpop.f32.mrb[3].mxu1  ;;  %3910 = vmatprep.subr.bf16.mxu1 %v6650_v46  ;;  %v664_v41 = vld [vmem:[#allocation5 + $0xf78] sm:$0xff]  ;;  %v6695_v42 = vcombine.low %v651_v30, %v655_v31  ;;  %v6697_v46 = vcombine.low %v652_v32, %v656_v34  ;;  %v689_v55 = vsub.s32 1, %v7899_v44  ;;  %v7192_v31 = vld [vmem:[#allocation8 + $0xac] ss:$16 sps:$4 sm:$0xff]  }
 0x25a   :  { %v6706_v48 = vcombine.high %v660_v40, %v664_v41  ;;  %v672_v56 = vld [vmem:[#allocation5 + $0xfb8] sm:$0xff]  ;;  %v7997_v58 = vld [vmem:[#allocation7] sm:$0xff]  ;;  %v6712_v61 = vcombine.high %v667_v51, %v671_v52 }
 0x25b   :  { %v690_v1 = vrot.slane %v7997_v58, %v689_v55  ;;  %v7189_v30 = vld [vmem:[#allocation8 + $0xa4] ss:$16 sps:$4 sm:$0xff]   ;;  %v7187_v32 = vld [vmem:[#allocation8 + $0xa0] ss:$16 sps:$4 sm:$0xff]   ;;  %v7190_v34 = vld [vmem:[#allocation8 + $0xa8] ss:$16 sps:$4 sm:$0xff]  }
 0x25c   :  { %3747 = vmatpush1.bf16.msra.mxu0 %v6647_v9  ;;  %3911 = vmatpush1.bf16.msra.mxu1 %v6649_v23  ;;  %v668_v9 = vld [vmem:[#allocation5 + $0xf98] sm:$0xff]  ;;  %v6703_v23 = vcombine.low %v659_v38, %v663_v39  ;;  %v7204_v39 = vld [vmem:[#allocation8 + $0xec] ss:$16 sps:$4 sm:$0xff]  }
 0x25d   :  { %3748 = vmatprep.subr.bf16.mxu0 %v6656_v60  ;;  %3912 = vmatprep.subr.bf16.mxu1 %v6658_v25  ;;  %v6705_v60 = vcombine.low %v660_v40, %v664_v41  ;;  %v6714_v25 = vcombine.high %v668_v9, %v672_v56  ;;  %v7057_v36 = vadd.f32 %v7992_v50, %v690_v1  ;;  %v7168_v50 = vld [vmem:[#allocation8 + $0x2c] ss:$16 sps:$4 sm:$0xff]   ;;  %v7201_v38 = vld [vmem:[#allocation8 + $0xe4] ss:$16 sps:$4 sm:$0xff]   ;;  %v7199_v40 = vld [vmem:[#allocation8 + $0xe0] ss:$16 sps:$4 sm:$0xff]  }
 0x25e   :  { %v7202_v41 = vld [vmem:[#allocation8 + $0xe8] ss:$16 sps:$4 sm:$0xff]   ;;  %v7223_v1 = vld [vmem:[#allocation8 + $0x160] ss:$16 sps:$4 sm:$0xff]  }
 0x260   :  { %3749 = vmatpush1.bf16.msra.mxu0 %v6655_v3  ;;  %3913 = vmatpush1.bf16.msra.mxu1 %v6657_v53  ;;  %v680_v3 = vld [vmem:[#allocation5 + $0xff8] sm:$0xff]  ;;  %v6711_v53 = vcombine.low %v667_v51, %v671_v52  ;;  %v7216_v52 = vld [vmem:[#allocation8 + $0x12c] ss:$16 sps:$4 sm:$0xff]  }
 0x261   :  { %3750 = vmatprep.subr.bf16.mxu0 %v6664_v5  ;;  %3914 = vmatprep.subr.bf16.mxu1 %v6666_v6  ;;  %v6713_v5 = vcombine.low %v668_v9, %v672_v56  ;;  %v6720_v6 = vcombine.high %v675_v62, %v679_v0  ;;  %v6722_v7 = vcombine.high %v676_v2, %v680_v3  ;;  %v7213_v51 = vld [vmem:[#allocation8 + $0x124] ss:$16 sps:$4 sm:$0xff]   ;;  %v7211_v9 = vld [vmem:[#allocation8 + $0x120] ss:$16 sps:$4 sm:$0xff]   ;;  %v7214_v56 = vld [vmem:[#allocation8 + $0x128] ss:$16 sps:$4 sm:$0xff]  }
 0x262   :  { %v6721_v43 = vcombine.low %v676_v2, %v680_v3  ;;  %v7225_v62 = vld [vmem:[#allocation8 + $0x164] ss:$16 sps:$4 sm:$0xff]   ;;  %v7228_v0 = vld [vmem:[#allocation8 + $0x16c] ss:$16 sps:$4 sm:$0xff]   ;;  %v7226_v2 = vld [vmem:[#allocation8 + $0x168] ss:$16 sps:$4 sm:$0xff]  }
 0x263   :  { %v7231_v3 = vld [vmem:[#allocation8 + $0x184] ss:$16 sps:$4 sm:$0xff]  }
 0x264   :  { %3751 = vmatpush1.bf16.msra.mxu0 %v6663_v10  ;;  %3915 = vmatpush1.bf16.msra.mxu1 %v6665_v11  ;;  %v7159_v10 = vld [vmem:[#allocation8 + $0x4] ss:$16 sps:$4 sm:$0xff]   ;;  %v7162_v11 = vld [vmem:[#allocation8 + $0xc] ss:$16 sps:$4 sm:$0xff]  }
 0x265   :  { %3752 = vmatprep.subr.bf16.mxu0 %v6672_v12  ;;  %3916 = vmatprep.subr.bf16.mxu1 %v6674_v33  ;;  %v3940_v12 = vmax.f32 %v7057_v36, 0.0  ;;  %v7157_v33 = vld [vmem:[#allocation8] ss:$16 sps:$4 sm:$0xff]   ;;  %v7237_v36 = vld [vmem:[#allocation8 + $0x1a4] ss:$16 sps:$4 sm:$0xff]  }
 0x267   :  { %v3948_v17 = vpack.c.bf16 %v3940_v12, %v3940_v12  ;;  %v7238_v12 = vld [vmem:[#allocation8 + $0x1a8] ss:$16 sps:$4 sm:$0xff]  }
 0x268   :  { %3753 = vmatpush1.bf16.msra.mxu0 %v6671_v18  ;;  %3917 = vmatpush1.bf16.msra.mxu1 %v6673_v19  ;;  %v7166_v18 = vld [vmem:[#allocation8 + $0x28] ss:$16 sps:$4 sm:$0xff]   ;;  %v7171_v19 = vld [vmem:[#allocation8 + $0x44] ss:$16 sps:$4 sm:$0xff]  }
 0x269   :  { %3754 = vmatprep.subr.bf16.mxu0 %v6680_v54  ;;  %3918 = vmatprep.subr.bf16.mxu1 %v6682_v59  ;;  %v7174_v54 = vld [vmem:[#allocation8 + $0x4c] ss:$16 sps:$4 sm:$0xff]   ;;  %v7169_v59 = vld [vmem:[#allocation8 + $0x40] ss:$16 sps:$4 sm:$0xff]  }
 0x26c   :  { %3755 = vmatpush1.bf16.msra.mxu0 %v6679_v27  ;;  %3919 = vmatpush1.bf16.msra.mxu1 %v6681_v13  ;;  %v7183_v27 = vld [vmem:[#allocation8 + $0x84] ss:$16 sps:$4 sm:$0xff]   ;;  %v7186_v13 = vld [vmem:[#allocation8 + $0x8c] ss:$16 sps:$4 sm:$0xff]  }
 0x26d   :  { %3756 = vmatprep.subr.bf16.mxu0 %v6688_v28  ;;  %3920 = vmatprep.subr.bf16.mxu1 %v6690_v29  ;;  %v7181_v28 = vld [vmem:[#allocation8 + $0x80] ss:$16 sps:$4 sm:$0xff]   ;;  %v7184_v29 = vld [vmem:[#allocation8 + $0x88] ss:$16 sps:$4 sm:$0xff]  }
 0x270   :  { %3757 = vmatpush1.bf16.msra.mxu0 %v6687_v57  ;;  %3921 = vmatpush1.bf16.msra.mxu1 %v6689_v35  ;;  %v7195_v57 = vld [vmem:[#allocation8 + $0xc4] ss:$16 sps:$4 sm:$0xff]   ;;  %v7198_v35 = vld [vmem:[#allocation8 + $0xcc] ss:$16 sps:$4 sm:$0xff]  }
 0x271   :  { %3758 = vmatprep.subr.bf16.mxu0 %v6696_v63  ;;  %3922 = vmatprep.subr.bf16.mxu1 %v6698_v37  ;;  %v7193_v63 = vld [vmem:[#allocation8 + $0xc0] ss:$16 sps:$4 sm:$0xff]   ;;  %v7196_v37 = vld [vmem:[#allocation8 + $0xc8] ss:$16 sps:$4 sm:$0xff]  }
 0x274   :  { %3759 = vmatpush1.bf16.msra.mxu0 %v6695_v42  ;;  %3923 = vmatpush1.bf16.msra.mxu1 %v6697_v46  ;;  %v7207_v42 = vld [vmem:[#allocation8 + $0x104] ss:$16 sps:$4 sm:$0xff]   ;;  %v7210_v46 = vld [vmem:[#allocation8 + $0x10c] ss:$16 sps:$4 sm:$0xff]  }
 0x275   :  { %3760 = vmatprep.subr.bf16.mxu0 %v6704_v47  ;;  %3924 = vmatprep.subr.bf16.mxu1 %v6706_v48  ;;  %v7205_v47 = vld [vmem:[#allocation8 + $0x100] ss:$16 sps:$4 sm:$0xff]   ;;  %v7208_v48 = vld [vmem:[#allocation8 + $0x108] ss:$16 sps:$4 sm:$0xff]  }
 0x278   :  { %3761 = vmatpush1.bf16.msra.mxu0 %v6703_v23  ;;  %3925 = vmatpush1.bf16.msra.mxu1 %v6705_v60  ;;  %v7219_v23 = vld [vmem:[#allocation8 + $0x144] ss:$16 sps:$4 sm:$0xff]   ;;  %v7222_v60 = vld [vmem:[#allocation8 + $0x14c] ss:$16 sps:$4 sm:$0xff]  }
 0x279   :  { %3762 = vmatprep.subr.bf16.mxu0 %v6712_v61  ;;  %3926 = vmatprep.subr.bf16.mxu1 %v6714_v25  ;;  %v7217_v61 = vld [vmem:[#allocation8 + $0x140] ss:$16 sps:$4 sm:$0xff]   ;;  %v7220_v25 = vld [vmem:[#allocation8 + $0x148] ss:$16 sps:$4 sm:$0xff]  }
 0x27c   :  { %3763 = vmatpush1.bf16.msra.mxu0 %v6711_v53  ;;  %3927 = vmatpush1.bf16.msra.mxu1 %v6713_v5  ;;  %v7234_v53 = vld [vmem:[#allocation8 + $0x18c] ss:$16 sps:$4 sm:$0xff]   ;;  %v7229_v5 = vld [vmem:[#allocation8 + $0x180] ss:$16 sps:$4 sm:$0xff]  }
 0x27d   :  { %3764 = vmatprep.subr.bf16.mxu0 %v6720_v6  ;;  %3928 = vmatprep.subr.bf16.mxu1 %v6722_v7  ;;  %v685_v6 = vsub.s32 0, %v7899_v44  ;;  %v7232_v7 = vld [vmem:[#allocation8 + $0x188] ss:$16 sps:$4 sm:$0xff]  }
 0x280   :  { %3765 = vmatpush1.bf16.msra.mxu0 %v6719_v8  ;;  %3929 = vmatpush1.bf16.msra.mxu1 %v6721_v43  ;;  %v7240_v8 = vld [vmem:[#allocation8 + $0x1ac] ss:$16 sps:$4 sm:$0xff]   ;;  %v697_v43 = vsub.s32 3, %v7899_v44 }
 0x281   :  { %5513 = vmatprep.subr.bf16.mxu0 %v7159_v10  ;;  %5677 = vmatprep.subr.bf16.mxu1 %v7162_v11  ;;  %v7235_v10 = vld [vmem:[#allocation8 + $0x1a0] ss:$16 sps:$4 sm:$0xff]   ;;  %v686_v11 = vrot.slane %v7997_v58, %v685_v6 }
 0x283   :  { %3767 = vmatmul.mubr.bf16.vlgmr.msra.gmra.mrb[4].mxu0 %v7970_v21  ;;  %3931 = vmatmul.mubr.bf16.vlgmr.msra.gmra.mrb[4].mxu1 %v7970_v21  ;;  %v7175_v21 = vld [vmem:[#allocation8 + $0x60] ss:$16 sps:$4 sm:$0xff]  }
 0x284   :  { %5514 = vmatpush1.bf16.msra.mxu0 %v7157_v33  ;;  %5545 = vmatprep.mubr.bf16.mxu0 %v3948_v17  ;;  %v7243_v33 = vld [vmem:[#allocation8 + $0x1c4] ss:$16 sps:$4 sm:$0xff]  }
 0x285   :  { %5678 = vmatpush1.bf16.msra.mxu1 %v7160_v14  ;;  %5709 = vmatprep.mubr.bf16.mxu1 %v3948_v17  ;;  %v7246_v14 = vld [vmem:[#allocation8 + $0x1cc] ss:$16 sps:$4 sm:$0xff]   ;;  %v7241_v17 = vld [vmem:[#allocation8 + $0x1c0] ss:$16 sps:$4 sm:$0xff]  }
 0x286   :  { %5515 = vmatprep.subr.bf16.mxu0 %v7165_v15  ;;  %5679 = vmatprep.subr.bf16.mxu1 %v7168_v50  ;;  %v698_v15 = vrot.slane %v7997_v58, %v697_v43  ;;  %v7056_v50 = vadd.f32 %v7988_v45, %v686_v11  ;;  %v7253_v45 = vld [vmem:[#allocation8 + $0x200] ss:$16 sps:$4 sm:$0xff]   ;;  %v7318_v11 = vld [vmem:[#allocation8 + $0x34c] ss:$16 sps:$4 sm:$0xff]  }
 0x288   :  { %5516 = vmatpush1.bf16.msra.mxu0 %v7163_v4  ;;  %v7244_v4 = vld [vmem:[#allocation8 + $0x1c8] ss:$16 sps:$4 sm:$0xff]  }
 0x289   :  { %5680 = vmatpush1.bf16.msra.mxu1 %v7166_v18  ;;  %5517 = vmatprep.subr.bf16.mxu0 %v7171_v19  ;;  %v7249_v18 = vld [vmem:[#allocation8 + $0x1e4] ss:$16 sps:$4 sm:$0xff]   ;;  %v7252_v19 = vld [vmem:[#allocation8 + $0x1ec] ss:$16 sps:$4 sm:$0xff]  }
 0x28a   :  { %5681 = vmatprep.subr.bf16.mxu1 %v7174_v54  ;;  %v7059_v54 = vadd.f32 %v7994_v16, %v698_v15  ;;  %v7264_v16 = vld [vmem:[#allocation8 + $0x22c] ss:$16 sps:$4 sm:$0xff]  }
 0x28b   :  { %v7324_v15 = vld [vmem:[#allocation8 + $0x36c] ss:$16 sps:$4 sm:$0xff]  }
 0x28c   :  { %5518 = vmatpush1.bf16.msra.mxu0 %v7169_v59  ;;  %v7247_v59 = vld [vmem:[#allocation8 + $0x1e0] ss:$16 sps:$4 sm:$0xff]  }
 0x28d   :  { %5682 = vmatpush1.bf16.msra.mxu1 %v7172_v20  ;;  %5519 = vmatprep.subr.bf16.mxu0 %v7177_v22  ;;  %v3939_v20 = vmax.f32 %v7056_v50, 0.0  ;;  %v7250_v22 = vld [vmem:[#allocation8 + $0x1e8] ss:$16 sps:$4 sm:$0xff]  }
 0x28e   :  { %5683 = vmatprep.subr.bf16.mxu1 %v7180_v24  ;;  %v7255_v24 = vld [vmem:[#allocation8 + $0x204] ss:$16 sps:$4 sm:$0xff]   ;;  %v7322_v50 = vld [vmem:[#allocation8 + $0x368] ss:$16 sps:$4 sm:$0xff]  }
 0x290   :  { %5520 = vmatpush1.bf16.msra.mxu0 %v7175_v21  ;;  %v7258_v21 = vld [vmem:[#allocation8 + $0x20c] ss:$16 sps:$4 sm:$0xff]  }
 0x291   :  { %5684 = vmatpush1.bf16.msra.mxu1 %v7178_v26  ;;  %5521 = vmatprep.subr.bf16.mxu0 %v7183_v27  ;;  %v3942_v26 = vmax.f32 %v7059_v54, 0.0  ;;  %v3947_v27 = vpack.c.bf16 %v3939_v20, %v3939_v20  ;;  %v693_v54 = vsub.s32 2, %v7899_v44  ;;  %v7333_v20 = vld [vmem:[#allocation8 + $0x3a4] ss:$16 sps:$4 sm:$0xff]  }
 0x292   :  { %5685 = vmatprep.subr.bf16.mxu1 %v7186_v13  ;;  %v7256_v13 = vld [vmem:[#allocation8 + $0x208] ss:$16 sps:$4 sm:$0xff]  }
 0x294   :  { %5522 = vmatpush1.bf16.msra.mxu0 %v7181_v28  ;;  %v7261_v28 = vld [vmem:[#allocation8 + $0x224] ss:$16 sps:$4 sm:$0xff]  }
 0x295   :  { %5686 = vmatpush1.bf16.msra.mxu1 %v7184_v29  ;;  %5523 = vmatprep.subr.bf16.mxu0 %v7189_v30  ;;  %v3950_v29 = vpack.c.bf16 %v3942_v26, %v3942_v26  ;;  %v7259_v30 = vld [vmem:[#allocation8 + $0x220] ss:$16 sps:$4 sm:$0xff]   ;;  %v7334_v26 = vld [vmem:[#allocation8 + $0x3a8] ss:$16 sps:$4 sm:$0xff]  }
 0x296   :  { %5687 = vmatprep.subr.bf16.mxu1 %v7192_v31  ;;  %v7262_v31 = vld [vmem:[#allocation8 + $0x228] ss:$16 sps:$4 sm:$0xff]  }
 0x298   :  { %5524 = vmatpush1.bf16.msra.mxu0 %v7187_v32  ;;  %v7267_v32 = vld [vmem:[#allocation8 + $0x244] ss:$16 sps:$4 sm:$0xff]  }
 0x299   :  { %5688 = vmatpush1.bf16.msra.mxu1 %v7190_v34  ;;  %5525 = vmatprep.subr.bf16.mxu0 %v7195_v57  ;;  %v7270_v34 = vld [vmem:[#allocation8 + $0x24c] ss:$16 sps:$4 sm:$0xff]   ;;  %v7265_v57 = vld [vmem:[#allocation8 + $0x240] ss:$16 sps:$4 sm:$0xff]  }
 0x29a   :  { %5689 = vmatprep.subr.bf16.mxu1 %v7198_v35  ;;  %v7268_v35 = vld [vmem:[#allocation8 + $0x248] ss:$16 sps:$4 sm:$0xff]  }
 0x29c   :  { %5526 = vmatpush1.bf16.msra.mxu0 %v7193_v63  ;;  %v7273_v63 = vld [vmem:[#allocation8 + $0x264] ss:$16 sps:$4 sm:$0xff]  }
 0x29d   :  { %5690 = vmatpush1.bf16.msra.mxu1 %v7196_v37  ;;  %5527 = vmatprep.subr.bf16.mxu0 %v7201_v38  ;;  %v7276_v37 = vld [vmem:[#allocation8 + $0x26c] ss:$16 sps:$4 sm:$0xff]   ;;  %v7271_v38 = vld [vmem:[#allocation8 + $0x260] ss:$16 sps:$4 sm:$0xff]  }
 0x29e   :  { %5691 = vmatprep.subr.bf16.mxu1 %v7204_v39  ;;  %v7274_v39 = vld [vmem:[#allocation8 + $0x268] ss:$16 sps:$4 sm:$0xff]  }
 0x2a0   :  { %5528 = vmatpush1.bf16.msra.mxu0 %v7199_v40  ;;  %v7279_v40 = vld [vmem:[#allocation8 + $0x284] ss:$16 sps:$4 sm:$0xff]  }
 0x2a1   :  { %5692 = vmatpush1.bf16.msra.mxu1 %v7202_v41  ;;  %5529 = vmatprep.subr.bf16.mxu0 %v7207_v42  ;;  %v7282_v41 = vld [vmem:[#allocation8 + $0x28c] ss:$16 sps:$4 sm:$0xff]   ;;  %v7277_v42 = vld [vmem:[#allocation8 + $0x280] ss:$16 sps:$4 sm:$0xff]  }
 0x2a2   :  { %5693 = vmatprep.subr.bf16.mxu1 %v7210_v46  ;;  %v7280_v46 = vld [vmem:[#allocation8 + $0x288] ss:$16 sps:$4 sm:$0xff]  }
 0x2a4   :  { %5530 = vmatpush1.bf16.msra.mxu0 %v7205_v47  ;;  %v7285_v47 = vld [vmem:[#allocation8 + $0x2a4] ss:$16 sps:$4 sm:$0xff]  }
 0x2a5   :  { %5694 = vmatpush1.bf16.msra.mxu1 %v7208_v48  ;;  %5531 = vmatprep.subr.bf16.mxu0 %v7213_v51  ;;  %v7288_v48 = vld [vmem:[#allocation8 + $0x2ac] ss:$16 sps:$4 sm:$0xff]   ;;  %v7283_v51 = vld [vmem:[#allocation8 + $0x2a0] ss:$16 sps:$4 sm:$0xff]  }
 0x2a6   :  { %5695 = vmatprep.subr.bf16.mxu1 %v7216_v52  ;;  %v7286_v52 = vld [vmem:[#allocation8 + $0x2a8] ss:$16 sps:$4 sm:$0xff]  }
 0x2a8   :  { %5532 = vmatpush1.bf16.msra.mxu0 %v7211_v9  ;;  %v7291_v9 = vld [vmem:[#allocation8 + $0x2c4] ss:$16 sps:$4 sm:$0xff]  }
 0x2a9   :  { %5696 = vmatpush1.bf16.msra.mxu1 %v7214_v56  ;;  %5533 = vmatprep.subr.bf16.mxu0 %v7219_v23  ;;  %v7294_v56 = vld [vmem:[#allocation8 + $0x2cc] ss:$16 sps:$4 sm:$0xff]   ;;  %v7289_v23 = vld [vmem:[#allocation8 + $0x2c0] ss:$16 sps:$4 sm:$0xff]  }
 0x2aa   :  { %5697 = vmatprep.subr.bf16.mxu1 %v7222_v60  ;;  %v7292_v60 = vld [vmem:[#allocation8 + $0x2c8] ss:$16 sps:$4 sm:$0xff]  }
 0x2ac   :  { %5534 = vmatpush1.bf16.msra.mxu0 %v7217_v61  ;;  %v7297_v61 = vld [vmem:[#allocation8 + $0x2e4] ss:$16 sps:$4 sm:$0xff]  }
 0x2ad   :  { %5698 = vmatpush1.bf16.msra.mxu1 %v7220_v25  ;;  %5535 = vmatprep.subr.bf16.mxu0 %v7225_v62  ;;  %v7300_v25 = vld [vmem:[#allocation8 + $0x2ec] ss:$16 sps:$4 sm:$0xff]   ;;  %v7295_v62 = vld [vmem:[#allocation8 + $0x2e0] ss:$16 sps:$4 sm:$0xff]  }
 0x2ae   :  { %5699 = vmatprep.subr.bf16.mxu1 %v7228_v0  ;;  %v7298_v0 = vld [vmem:[#allocation8 + $0x2e8] ss:$16 sps:$4 sm:$0xff]  }
 0x2b0   :  { %5536 = vmatpush1.bf16.msra.mxu0 %v7223_v1  ;;  %v7303_v1 = vld [vmem:[#allocation8 + $0x304] ss:$16 sps:$4 sm:$0xff]  }
 0x2b1   :  { %5700 = vmatpush1.bf16.msra.mxu1 %v7226_v2  ;;  %5537 = vmatprep.subr.bf16.mxu0 %v7231_v3  ;;  %v7306_v2 = vld [vmem:[#allocation8 + $0x30c] ss:$16 sps:$4 sm:$0xff]   ;;  %v7301_v3 = vld [vmem:[#allocation8 + $0x300] ss:$16 sps:$4 sm:$0xff]  }
 0x2b2   :  { %5701 = vmatprep.subr.bf16.mxu1 %v7234_v53  ;;  %v7304_v53 = vld [vmem:[#allocation8 + $0x308] ss:$16 sps:$4 sm:$0xff]  }
 0x2b4   :  { %5538 = vmatpush1.bf16.msra.mxu0 %v7229_v5  ;;  %v7309_v5 = vld [vmem:[#allocation8 + $0x324] ss:$16 sps:$4 sm:$0xff]  }
 0x2b5   :  { %5702 = vmatpush1.bf16.msra.mxu1 %v7232_v7  ;;  %5539 = vmatprep.subr.bf16.mxu0 %v7237_v36  ;;  %v7312_v7 = vld [vmem:[#allocation8 + $0x32c] ss:$16 sps:$4 sm:$0xff]   ;;  %v7307_v36 = vld [vmem:[#allocation8 + $0x320] ss:$16 sps:$4 sm:$0xff]  }
 0x2b6   :  { %5703 = vmatprep.subr.bf16.mxu1 %v7240_v8  ;;  %v7310_v8 = vld [vmem:[#allocation8 + $0x328] ss:$16 sps:$4 sm:$0xff]  }
 0x2b8   :  { %5540 = vmatpush1.bf16.msra.mxu0 %v7235_v10  ;;  %v7315_v10 = vld [vmem:[#allocation8 + $0x344] ss:$16 sps:$4 sm:$0xff]  }
 0x2b9   :  { %5704 = vmatpush1.bf16.msra.mxu1 %v7238_v12  ;;  %5541 = vmatprep.subr.bf16.mxu0 %v7243_v33  ;;  %v7313_v12 = vld [vmem:[#allocation8 + $0x340] ss:$16 sps:$4 sm:$0xff]   ;;  %v7316_v33 = vld [vmem:[#allocation8 + $0x348] ss:$16 sps:$4 sm:$0xff]  }
 0x2ba   :  { %5705 = vmatprep.subr.bf16.mxu1 %v7246_v14  ;;  %v7321_v14 = vld [vmem:[#allocation8 + $0x364] ss:$16 sps:$4 sm:$0xff]  }
 0x2bc   :  { %5542 = vmatpush1.bf16.msra.mxu0 %v7241_v17  ;;  %v7319_v17 = vld [vmem:[#allocation8 + $0x360] ss:$16 sps:$4 sm:$0xff]  }
 0x2bd   :  { %5706 = vmatpush1.bf16.msra.mxu1 %v7244_v4  ;;  %5543 = vmatprep.subr.bf16.mxu0 %v7249_v18  ;;  %v7327_v4 = vld [vmem:[#allocation8 + $0x384] ss:$16 sps:$4 sm:$0xff]   ;;  %v7330_v18 = vld [vmem:[#allocation8 + $0x38c] ss:$16 sps:$4 sm:$0xff]  }
 0x2be   :  { %5707 = vmatprep.subr.bf16.mxu1 %v7252_v19  ;;  %v7325_v19 = vld [vmem:[#allocation8 + $0x380] ss:$16 sps:$4 sm:$0xff]  }
 0x2c0   :  { %5544 = vmatpush1.bf16.msra.mxu0 %v7247_v59  ;;  %v7328_v59 = vld [vmem:[#allocation8 + $0x388] ss:$16 sps:$4 sm:$0xff]  }
 0x2c1   :  { %5708 = vmatpush1.bf16.msra.mxu1 %v7250_v22  ;;  %5554 = vmatprep.subr.bf16.mxu0 %v7255_v24  ;;  %v7336_v22 = vld [vmem:[#allocation8 + $0x3ac] ss:$16 sps:$4 sm:$0xff]   ;;  %v7331_v24 = vld [vmem:[#allocation8 + $0x3a0] ss:$16 sps:$4 sm:$0xff]  }
 0x2c2   :  { %5718 = vmatprep.subr.bf16.mxu1 %v7258_v21  ;;  %v694_v21 = vrot.slane %v7997_v58, %v693_v54 }
 0x2c3   :  { %5546 = vmatmul.mubr.bf16.vlgmr.msra.gmra.mrb[8].mxu0 %v3947_v27 }
 0x2c4   :  { %5710 = vmatmul.mubr.bf16.vlgmr.msra.gmra.mrb[8].mxu1 %v3947_v27  ;;  %5555 = vmatpush1.bf16.msra.mxu0 %v7253_v45  ;;  %v7339_v45 = vld [vmem:[#allocation8 + $0x3c4] ss:$16 sps:$4 sm:$0xff]   ;;  %v7342_v27 = vld [vmem:[#allocation8 + $0x3cc] ss:$16 sps:$4 sm:$0xff]  }
 0x2c5   :  { %5586 = vmatprep.mubr.bf16.mxu0 %v3950_v29  ;;  %5719 = vmatpush1.bf16.msra.mxu1 %v7256_v13  ;;  %v7337_v13 = vld [vmem:[#allocation8 + $0x3c0] ss:$16 sps:$4 sm:$0xff]  }
 0x2c6   :  { %5750 = vmatprep.mubr.bf16.mxu1 %v3950_v29  ;;  %5556 = vmatprep.subr.bf16.mxu0 %v7261_v28  ;;  %v7058_v28 = vadd.f32 %v7990_v49, %v694_v21  ;;  %v7340_v29 = vld [vmem:[#allocation8 + $0x3c8] ss:$16 sps:$4 sm:$0xff]   ;;  %v7420_v21 = vld [vmem:[#allocation8 + $0x56c] ss:$16 sps:$4 sm:$0xff]  }
 0x2c7   :  { %5720 = vmatprep.subr.bf16.mxu1 %v7264_v16  ;;  %v7345_v16 = vld [vmem:[#allocation8 + $0x3e4] ss:$16 sps:$4 sm:$0xff]   ;;  %v7352_v49 = vld [vmem:[#allocation8 + $0x408] ss:$16 sps:$4 sm:$0xff]  }
 0x2c8   :  { %5557 = vmatpush1.bf16.msra.mxu0 %v7259_v30  ;;  %v7348_v30 = vld [vmem:[#allocation8 + $0x3ec] ss:$16 sps:$4 sm:$0xff]  }
 0x2c9   :  { %5721 = vmatpush1.bf16.msra.mxu1 %v7262_v31  ;;  %5558 = vmatprep.subr.bf16.mxu0 %v7267_v32  ;;  %v7343_v31 = vld [vmem:[#allocation8 + $0x3e0] ss:$16 sps:$4 sm:$0xff]   ;;  %v3941_v32 = vmax.f32 %v7058_v28, 0.0 }
 0x2ca   :  { %5722 = vmatprep.subr.bf16.mxu1 %v7270_v34  ;;  %v7346_v34 = vld [vmem:[#allocation8 + $0x3e8] ss:$16 sps:$4 sm:$0xff]   ;;  %v7421_v28 = vld [vmem:[#allocation8 + $0x580] ss:$16 sps:$4 sm:$0xff]  }
 0x2cc   :  { %5559 = vmatpush1.bf16.msra.mxu0 %v7265_v57  ;;  %v7351_v57 = vld [vmem:[#allocation8 + $0x404] ss:$16 sps:$4 sm:$0xff]  }
 0x2cd   :  { %5723 = vmatpush1.bf16.msra.mxu1 %v7268_v35  ;;  %5560 = vmatprep.subr.bf16.mxu0 %v7273_v63  ;;  %v7354_v35 = vld [vmem:[#allocation8 + $0x40c] ss:$16 sps:$4 sm:$0xff]   ;;  %v7349_v63 = vld [vmem:[#allocation8 + $0x400] ss:$16 sps:$4 sm:$0xff]  }
 0x2ce   :  { %5724 = vmatprep.subr.bf16.mxu1 %v7276_v37  ;;  %v3949_v37 = vpack.c.bf16 %v3941_v32, %v3941_v32  ;;  %v7430_v32 = vld [vmem:[#allocation8 + $0x5a8] ss:$16 sps:$4 sm:$0xff]  }
 0x2d0   :  { %5561 = vmatpush1.bf16.msra.mxu0 %v7271_v38  ;;  %v7357_v38 = vld [vmem:[#allocation8 + $0x424] ss:$16 sps:$4 sm:$0xff]  }
 0x2d1   :  { %5725 = vmatpush1.bf16.msra.mxu1 %v7274_v39  ;;  %5562 = vmatprep.subr.bf16.mxu0 %v7279_v40  ;;  %v7360_v39 = vld [vmem:[#allocation8 + $0x42c] ss:$16 sps:$4 sm:$0xff]   ;;  %v7355_v40 = vld [vmem:[#allocation8 + $0x420] ss:$16 sps:$4 sm:$0xff]  }
 0x2d2   :  { %5726 = vmatprep.subr.bf16.mxu1 %v7282_v41  ;;  %v7358_v41 = vld [vmem:[#allocation8 + $0x428] ss:$16 sps:$4 sm:$0xff]  }
 0x2d4   :  { %5563 = vmatpush1.bf16.msra.mxu0 %v7277_v42  ;;  %v7363_v42 = vld [vmem:[#allocation8 + $0x444] ss:$16 sps:$4 sm:$0xff]  }
 0x2d5   :  { %5727 = vmatpush1.bf16.msra.mxu1 %v7280_v46  ;;  %5564 = vmatprep.subr.bf16.mxu0 %v7285_v47  ;;  %v7366_v46 = vld [vmem:[#allocation8 + $0x44c] ss:$16 sps:$4 sm:$0xff]   ;;  %v7361_v47 = vld [vmem:[#allocation8 + $0x440] ss:$16 sps:$4 sm:$0xff]  }
 0x2d6   :  { %5728 = vmatprep.subr.bf16.mxu1 %v7288_v48  ;;  %v7364_v48 = vld [vmem:[#allocation8 + $0x448] ss:$16 sps:$4 sm:$0xff]  }
 0x2d8   :  { %5565 = vmatpush1.bf16.msra.mxu0 %v7283_v51  ;;  %v7369_v51 = vld [vmem:[#allocation8 + $0x464] ss:$16 sps:$4 sm:$0xff]  }
 0x2d9   :  { %5729 = vmatpush1.bf16.msra.mxu1 %v7286_v52  ;;  %5566 = vmatprep.subr.bf16.mxu0 %v7291_v9  ;;  %v7372_v52 = vld [vmem:[#allocation8 + $0x46c] ss:$16 sps:$4 sm:$0xff]   ;;  %v7367_v9 = vld [vmem:[#allocation8 + $0x460] ss:$16 sps:$4 sm:$0xff]  }
 0x2da   :  { %5730 = vmatprep.subr.bf16.mxu1 %v7294_v56  ;;  %v7370_v56 = vld [vmem:[#allocation8 + $0x468] ss:$16 sps:$4 sm:$0xff]  }
 0x2dc   :  { %5567 = vmatpush1.bf16.msra.mxu0 %v7289_v23  ;;  %v7375_v23 = vld [vmem:[#allocation8 + $0x484] ss:$16 sps:$4 sm:$0xff]  }
 0x2dd   :  { %5731 = vmatpush1.bf16.msra.mxu1 %v7292_v60  ;;  %5568 = vmatprep.subr.bf16.mxu0 %v7297_v61  ;;  %v7378_v60 = vld [vmem:[#allocation8 + $0x48c] ss:$16 sps:$4 sm:$0xff]   ;;  %v7373_v61 = vld [vmem:[#allocation8 + $0x480] ss:$16 sps:$4 sm:$0xff]  }
 0x2de   :  { %5732 = vmatprep.subr.bf16.mxu1 %v7300_v25  ;;  %v7376_v25 = vld [vmem:[#allocation8 + $0x488] ss:$16 sps:$4 sm:$0xff]  }
 0x2e0   :  { %5569 = vmatpush1.bf16.msra.mxu0 %v7295_v62  ;;  %v7381_v62 = vld [vmem:[#allocation8 + $0x4a4] ss:$16 sps:$4 sm:$0xff]  }
 0x2e1   :  { %5733 = vmatpush1.bf16.msra.mxu1 %v7298_v0  ;;  %5570 = vmatprep.subr.bf16.mxu0 %v7303_v1  ;;  %v7384_v0 = vld [vmem:[#allocation8 + $0x4ac] ss:$16 sps:$4 sm:$0xff]   ;;  %v7379_v1 = vld [vmem:[#allocation8 + $0x4a0] ss:$16 sps:$4 sm:$0xff]  }
 0x2e2   :  { %5734 = vmatprep.subr.bf16.mxu1 %v7306_v2  ;;  %v7382_v2 = vld [vmem:[#allocation8 + $0x4a8] ss:$16 sps:$4 sm:$0xff]  }
 0x2e4   :  { %5571 = vmatpush1.bf16.msra.mxu0 %v7301_v3  ;;  %v7387_v3 = vld [vmem:[#allocation8 + $0x4c4] ss:$16 sps:$4 sm:$0xff]  }
 0x2e5   :  { %5735 = vmatpush1.bf16.msra.mxu1 %v7304_v53  ;;  %5572 = vmatprep.subr.bf16.mxu0 %v7309_v5  ;;  %v7390_v53 = vld [vmem:[#allocation8 + $0x4cc] ss:$16 sps:$4 sm:$0xff]   ;;  %v7385_v5 = vld [vmem:[#allocation8 + $0x4c0] ss:$16 sps:$4 sm:$0xff]  }
 0x2e6   :  { %5736 = vmatprep.subr.bf16.mxu1 %v7312_v7  ;;  %v7388_v7 = vld [vmem:[#allocation8 + $0x4c8] ss:$16 sps:$4 sm:$0xff]  }
 0x2e8   :  { %5573 = vmatpush1.bf16.msra.mxu0 %v7307_v36  ;;  %v7393_v36 = vld [vmem:[#allocation8 + $0x4e4] ss:$16 sps:$4 sm:$0xff]  }
 0x2e9   :  { %5737 = vmatpush1.bf16.msra.mxu1 %v7310_v8  ;;  %5574 = vmatprep.subr.bf16.mxu0 %v7315_v10  ;;  %v7396_v8 = vld [vmem:[#allocation8 + $0x4ec] ss:$16 sps:$4 sm:$0xff]   ;;  %v7391_v10 = vld [vmem:[#allocation8 + $0x4e0] ss:$16 sps:$4 sm:$0xff]  }
 0x2ea   :  { %5738 = vmatprep.subr.bf16.mxu1 %v7318_v11  ;;  %v7394_v11 = vld [vmem:[#allocation8 + $0x4e8] ss:$16 sps:$4 sm:$0xff]  }
 0x2ec   :  { %5575 = vmatpush1.bf16.msra.mxu0 %v7313_v12  ;;  %v7399_v12 = vld [vmem:[#allocation8 + $0x504] ss:$16 sps:$4 sm:$0xff]  }
 0x2ed   :  { %5739 = vmatpush1.bf16.msra.mxu1 %v7316_v33  ;;  %5576 = vmatprep.subr.bf16.mxu0 %v7321_v14  ;;  %v7402_v33 = vld [vmem:[#allocation8 + $0x50c] ss:$16 sps:$4 sm:$0xff]   ;;  %v7397_v14 = vld [vmem:[#allocation8 + $0x500] ss:$16 sps:$4 sm:$0xff]  }
 0x2ee   :  { %5740 = vmatprep.subr.bf16.mxu1 %v7324_v15  ;;  %v7400_v15 = vld [vmem:[#allocation8 + $0x508] ss:$16 sps:$4 sm:$0xff]  }
 0x2f0   :  { %5577 = vmatpush1.bf16.msra.mxu0 %v7319_v17  ;;  %v7405_v17 = vld [vmem:[#allocation8 + $0x524] ss:$16 sps:$4 sm:$0xff]  }
 0x2f1   :  { %5741 = vmatpush1.bf16.msra.mxu1 %v7322_v50  ;;  %5578 = vmatprep.subr.bf16.mxu0 %v7327_v4  ;;  %v7408_v50 = vld [vmem:[#allocation8 + $0x52c] ss:$16 sps:$4 sm:$0xff]   ;;  %v7403_v4 = vld [vmem:[#allocation8 + $0x520] ss:$16 sps:$4 sm:$0xff]  }
 0x2f2   :  { %5742 = vmatprep.subr.bf16.mxu1 %v7330_v18  ;;  %v7406_v18 = vld [vmem:[#allocation8 + $0x528] ss:$16 sps:$4 sm:$0xff]  }
 0x2f4   :  { %5579 = vmatpush1.bf16.msra.mxu0 %v7325_v19  ;;  %v7411_v19 = vld [vmem:[#allocation8 + $0x544] ss:$16 sps:$4 sm:$0xff]  }
 0x2f5   :  { %5743 = vmatpush1.bf16.msra.mxu1 %v7328_v59  ;;  %5580 = vmatprep.subr.bf16.mxu0 %v7333_v20  ;;  %v7414_v59 = vld [vmem:[#allocation8 + $0x54c] ss:$16 sps:$4 sm:$0xff]   ;;  %v7409_v20 = vld [vmem:[#allocation8 + $0x540] ss:$16 sps:$4 sm:$0xff]  }
 0x2f6   :  { %5744 = vmatprep.subr.bf16.mxu1 %v7336_v22  ;;  %v7412_v22 = vld [vmem:[#allocation8 + $0x548] ss:$16 sps:$4 sm:$0xff]  }
 0x2f8   :  { %5581 = vmatpush1.bf16.msra.mxu0 %v7331_v24  ;;  %v7417_v24 = vld [vmem:[#allocation8 + $0x564] ss:$16 sps:$4 sm:$0xff]  }
 0x2f9   :  { %5745 = vmatpush1.bf16.msra.mxu1 %v7334_v26  ;;  %5582 = vmatprep.subr.bf16.mxu0 %v7339_v45  ;;  %v7415_v26 = vld [vmem:[#allocation8 + $0x560] ss:$16 sps:$4 sm:$0xff]   ;;  %v7418_v45 = vld [vmem:[#allocation8 + $0x568] ss:$16 sps:$4 sm:$0xff]  }
 0x2fa   :  { %5746 = vmatprep.subr.bf16.mxu1 %v7342_v27  ;;  %v7423_v27 = vld [vmem:[#allocation8 + $0x584] ss:$16 sps:$4 sm:$0xff]  }
 0x2fc   :  { %5583 = vmatpush1.bf16.msra.mxu0 %v7337_v13  ;;  %v7426_v13 = vld [vmem:[#allocation8 + $0x58c] ss:$16 sps:$4 sm:$0xff]  }
 0x2fd   :  { %5747 = vmatpush1.bf16.msra.mxu1 %v7340_v29  ;;  %5584 = vmatprep.subr.bf16.mxu0 %v7345_v16  ;;  %v7424_v29 = vld [vmem:[#allocation8 + $0x588] ss:$16 sps:$4 sm:$0xff]   ;;  %v7429_v16 = vld [vmem:[#allocation8 + $0x5a4] ss:$16 sps:$4 sm:$0xff]  }
 0x2fe   :  { %5748 = vmatprep.subr.bf16.mxu1 %v7348_v30  ;;  %v7432_v30 = vld [vmem:[#allocation8 + $0x5ac] ss:$16 sps:$4 sm:$0xff]  }
 0x300   :  { %5585 = vmatpush1.bf16.msra.mxu0 %v7343_v31  ;;  %v7427_v31 = vld [vmem:[#allocation8 + $0x5a0] ss:$16 sps:$4 sm:$0xff]  }
 0x301   :  { %5749 = vmatpush1.bf16.msra.mxu1 %v7346_v34  ;;  %5595 = vmatprep.subr.bf16.mxu0 %v7351_v57  ;;  %v7435_v34 = vld [vmem:[#allocation8 + $0x5c4] ss:$16 sps:$4 sm:$0xff]   ;;  %v7438_v57 = vld [vmem:[#allocation8 + $0x5cc] ss:$16 sps:$4 sm:$0xff]  }
 0x302   :  { %5759 = vmatprep.subr.bf16.mxu1 %v7354_v35  ;;  %v7433_v35 = vld [vmem:[#allocation8 + $0x5c0] ss:$16 sps:$4 sm:$0xff]  }
 0x303   :  { %5587 = vmatmul.mubr.bf16.vlgmr.msra.gmra.mrb[8].mxu0 %v3949_v37 }
 0x304   :  { %5751 = vmatmul.mubr.bf16.vlgmr.msra.gmra.mrb[8].mxu1 %v3949_v37  ;;  %5596 = vmatpush1.bf16.msra.mxu0 %v7349_v63  ;;  %v7436_v63 = vld [vmem:[#allocation8 + $0x5c8] ss:$16 sps:$4 sm:$0xff]   ;;  %v7441_v37 = vld [vmem:[#allocation8 + $0x5e4] ss:$16 sps:$4 sm:$0xff]  }
 0x305   :  { %5760 = vmatpush1.bf16.msra.mxu1 %v7352_v49  ;;  %5597 = vmatprep.subr.bf16.mxu0 %v7357_v38  ;;  %v7444_v49 = vld [vmem:[#allocation8 + $0x5ec] ss:$16 sps:$4 sm:$0xff]   ;;  %v7439_v38 = vld [vmem:[#allocation8 + $0x5e0] ss:$16 sps:$4 sm:$0xff]  }
 0x306   :  { %5761 = vmatprep.subr.bf16.mxu1 %v7360_v39  ;;  %v7442_v39 = vld [vmem:[#allocation8 + $0x5e8] ss:$16 sps:$4 sm:$0xff]  }
 0x308   :  { %5598 = vmatpush1.bf16.msra.mxu0 %v7355_v40  ;;  %v7447_v40 = vld [vmem:[#allocation8 + $0x604] ss:$16 sps:$4 sm:$0xff]  }
 0x309   :  { %5762 = vmatpush1.bf16.msra.mxu1 %v7358_v41  ;;  %5599 = vmatprep.subr.bf16.mxu0 %v7363_v42  ;;  %v7450_v41 = vld [vmem:[#allocation8 + $0x60c] ss:$16 sps:$4 sm:$0xff]   ;;  %v701_v42 = vsub.s32 4, %v7899_v44 }
 0x30a   :  { %5763 = vmatprep.subr.bf16.mxu1 %v7366_v46  ;;  %v705_v46 = vsub.s32 5, %v7899_v44 }
 0x30c   :  { %5600 = vmatpush1.bf16.msra.mxu0 %v7361_v47  ;;  %v713_v47 = vsub.s32 7, %v7899_v44 }
 0x30d   :  { %5764 = vmatpush1.bf16.msra.mxu1 %v7364_v48  ;;  %5601 = vmatprep.subr.bf16.mxu0 %v7369_v51  ;;  %v702_v48 = vrot.slane %v7997_v58, %v701_v42  ;;  %v706_v51 = vrot.slane %v7997_v58, %v705_v46  ;;  %v7499_v42 = vld [vmem:[#allocation8 + $0x720] ss:$16 sps:$4 sm:$0xff]   ;;  %v7502_v46 = vld [vmem:[#allocation8 + $0x728] ss:$16 sps:$4 sm:$0xff]  }
 0x30e   :  { %5765 = vmatprep.subr.bf16.mxu1 %v7372_v52  ;;  %v714_v52 = vrot.slane %v7997_v58, %v713_v47  ;;  %v7453_v58 = vld [vmem:[#allocation8 + $0x624] ss:$16 sps:$4 sm:$0xff]  }
 0x30f   :  { %v7507_v47 = vld [vmem:[#allocation8 + $0x744] ss:$16 sps:$4 sm:$0xff]  }
 0x310   :  { %5602 = vmatpush1.bf16.msra.mxu0 %v7367_v9 }
 0x311   :  { %5766 = vmatpush1.bf16.msra.mxu1 %v7370_v56  ;;  %5603 = vmatprep.subr.bf16.mxu0 %v7375_v23 }
 0x312   :  { %5767 = vmatprep.subr.bf16.mxu1 %v7378_v60 }
 0x314   :  { %5604 = vmatpush1.bf16.msra.mxu0 %v7373_v61 }
 0x315   :  { %5768 = vmatpush1.bf16.msra.mxu1 %v7376_v25  ;;  %5605 = vmatprep.subr.bf16.mxu0 %v7381_v62 }
 0x316   :  { %5769 = vmatprep.subr.bf16.mxu1 %v7384_v0 }
 0x318   :  { %5606 = vmatpush1.bf16.msra.mxu0 %v7379_v1 }
 0x319   :  { %5770 = vmatpush1.bf16.msra.mxu1 %v7382_v2  ;;  %5607 = vmatprep.subr.bf16.mxu0 %v7387_v3 }
 0x31a   :  { %5771 = vmatprep.subr.bf16.mxu1 %v7390_v53 }
 0x31c   :  { %5608 = vmatpush1.bf16.msra.mxu0 %v7385_v5 }
 0x31d   :  { %5772 = vmatpush1.bf16.msra.mxu1 %v7388_v7  ;;  %5609 = vmatprep.subr.bf16.mxu0 %v7393_v36 }
 0x31e   :  { %5773 = vmatprep.subr.bf16.mxu1 %v7396_v8  ;;  %v7445_v8 = vld [vmem:[#allocation8 + $0x600] ss:$16 sps:$4 sm:$0xff]  }
 0x320   :  { %5610 = vmatpush1.bf16.msra.mxu0 %v7391_v10  ;;  %v7448_v10 = vld [vmem:[#allocation8 + $0x608] ss:$16 sps:$4 sm:$0xff]  }
 0x321   :  { %5774 = vmatpush1.bf16.msra.mxu1 %v7394_v11  ;;  %5611 = vmatprep.subr.bf16.mxu0 %v7399_v12  ;;  %v7456_v12 = vld [vmem:[#allocation8 + $0x62c] ss:$16 sps:$4 sm:$0xff]  }
 0x322   :  { %5775 = vmatprep.subr.bf16.mxu1 %v7402_v33 }
 0x324   :  { %5612 = vmatpush1.bf16.msra.mxu0 %v7397_v14  ;;  %v7451_v14 = vld [vmem:[#allocation8 + $0x620] ss:$16 sps:$4 sm:$0xff]  }
 0x325   :  { %5776 = vmatpush1.bf16.msra.mxu1 %v7400_v15  ;;  %5613 = vmatprep.subr.bf16.mxu0 %v7405_v17  ;;  %v7454_v15 = vld [vmem:[#allocation8 + $0x628] ss:$16 sps:$4 sm:$0xff]   ;;  %v7459_v17 = vld [vmem:[#allocation8 + $0x644] ss:$16 sps:$4 sm:$0xff]  }
 0x326   :  { %5777 = vmatprep.subr.bf16.mxu1 %v7408_v50  ;;  %v7462_v50 = vld [vmem:[#allocation8 + $0x64c] ss:$16 sps:$4 sm:$0xff]  }
 0x328   :  { %5614 = vmatpush1.bf16.msra.mxu0 %v7403_v4  ;;  %v7457_v4 = vld [vmem:[#allocation8 + $0x640] ss:$16 sps:$4 sm:$0xff]  }
 0x329   :  { %5778 = vmatpush1.bf16.msra.mxu1 %v7406_v18  ;;  %5615 = vmatprep.subr.bf16.mxu0 %v7411_v19  ;;  %v7460_v18 = vld [vmem:[#allocation8 + $0x648] ss:$16 sps:$4 sm:$0xff]   ;;  %v7465_v19 = vld [vmem:[#allocation8 + $0x664] ss:$16 sps:$4 sm:$0xff]  }
 0x32a   :  { %5779 = vmatprep.subr.bf16.mxu1 %v7414_v59  ;;  %v7468_v59 = vld [vmem:[#allocation8 + $0x66c] ss:$16 sps:$4 sm:$0xff]  }
 0x32c   :  { %5616 = vmatpush1.bf16.msra.mxu0 %v7409_v20  ;;  %v7463_v20 = vld [vmem:[#allocation8 + $0x660] ss:$16 sps:$4 sm:$0xff]  }
 0x32d   :  { %5780 = vmatpush1.bf16.msra.mxu1 %v7412_v22  ;;  %5617 = vmatprep.subr.bf16.mxu0 %v7417_v24  ;;  %v7466_v22 = vld [vmem:[#allocation8 + $0x668] ss:$16 sps:$4 sm:$0xff]   ;;  %v7471_v24 = vld [vmem:[#allocation8 + $0x684] ss:$16 sps:$4 sm:$0xff]  }
 0x32e   :  { %5781 = vmatprep.subr.bf16.mxu1 %v7420_v21  ;;  %v7474_v21 = vld [vmem:[#allocation8 + $0x68c] ss:$16 sps:$4 sm:$0xff]  }
 0x330   :  { %5618 = vmatpush1.bf16.msra.mxu0 %v7415_v26  ;;  %v7469_v26 = vld [vmem:[#allocation8 + $0x680] ss:$16 sps:$4 sm:$0xff]  }
 0x331   :  { %5782 = vmatpush1.bf16.msra.mxu1 %v7418_v45  ;;  %5619 = vmatprep.subr.bf16.mxu0 %v7423_v27  ;;  %v7472_v45 = vld [vmem:[#allocation8 + $0x688] ss:$16 sps:$4 sm:$0xff]   ;;  %v7477_v27 = vld [vmem:[#allocation8 + $0x6a4] ss:$16 sps:$4 sm:$0xff]  }
 0x332   :  { %5783 = vmatprep.subr.bf16.mxu1 %v7426_v13  ;;  %v7480_v13 = vld [vmem:[#allocation8 + $0x6ac] ss:$16 sps:$4 sm:$0xff]  }
 0x334   :  { %5620 = vmatpush1.bf16.msra.mxu0 %v7421_v28  ;;  %v7475_v28 = vld [vmem:[#allocation8 + $0x6a0] ss:$16 sps:$4 sm:$0xff]  }
 0x335   :  { %5784 = vmatpush1.bf16.msra.mxu1 %v7424_v29  ;;  %5621 = vmatprep.subr.bf16.mxu0 %v7429_v16  ;;  %v7478_v29 = vld [vmem:[#allocation8 + $0x6a8] ss:$16 sps:$4 sm:$0xff]   ;;  %v7483_v16 = vld [vmem:[#allocation8 + $0x6c4] ss:$16 sps:$4 sm:$0xff]  }
 0x336   :  { %5785 = vmatprep.subr.bf16.mxu1 %v7432_v30  ;;  %v7486_v30 = vld [vmem:[#allocation8 + $0x6cc] ss:$16 sps:$4 sm:$0xff]  }
 0x338   :  { %5622 = vmatpush1.bf16.msra.mxu0 %v7427_v31  ;;  %v7481_v31 = vld [vmem:[#allocation8 + $0x6c0] ss:$16 sps:$4 sm:$0xff]  }
 0x339   :  { %5786 = vmatpush1.bf16.msra.mxu1 %v7430_v32  ;;  %5623 = vmatprep.subr.bf16.mxu0 %v7435_v34  ;;  %v7484_v32 = vld [vmem:[#allocation8 + $0x6c8] ss:$16 sps:$4 sm:$0xff]   ;;  %v7489_v34 = vld [vmem:[#allocation8 + $0x6e4] ss:$16 sps:$4 sm:$0xff]  }
 0x33a   :  { %5787 = vmatprep.subr.bf16.mxu1 %v7438_v57  ;;  %v7492_v57 = vld [vmem:[#allocation8 + $0x6ec] ss:$16 sps:$4 sm:$0xff]  }
 0x33c   :  { %5624 = vmatpush1.bf16.msra.mxu0 %v7433_v35  ;;  %v7487_v35 = vld [vmem:[#allocation8 + $0x6e0] ss:$16 sps:$4 sm:$0xff]  }
 0x33d   :  { %5788 = vmatpush1.bf16.msra.mxu1 %v7436_v63  ;;  %5625 = vmatprep.subr.bf16.mxu0 %v7441_v37  ;;  %v7490_v63 = vld [vmem:[#allocation8 + $0x6e8] ss:$16 sps:$4 sm:$0xff]   ;;  %v7495_v37 = vld [vmem:[#allocation8 + $0x704] ss:$16 sps:$4 sm:$0xff]  }
 0x33e   :  { %5789 = vmatprep.subr.bf16.mxu1 %v7444_v49  ;;  %v7498_v49 = vld [vmem:[#allocation8 + $0x70c] ss:$16 sps:$4 sm:$0xff]  }
 0x340   :  { %5626 = vmatpush1.bf16.msra.mxu0 %v7439_v38  ;;  %v7493_v38 = vld [vmem:[#allocation8 + $0x700] ss:$16 sps:$4 sm:$0xff]  }
 0x341   :  { %5790 = vmatpush1.bf16.msra.mxu1 %v7442_v39  ;;  %5636 = vmatprep.subr.bf16.mxu0 %v7447_v40  ;;  %v7496_v39 = vld [vmem:[#allocation8 + $0x708] ss:$16 sps:$4 sm:$0xff]   ;;  %v7501_v40 = vld [vmem:[#allocation8 + $0x724] ss:$16 sps:$4 sm:$0xff]  }
 0x342   :  { %5800 = vmatprep.subr.bf16.mxu1 %v7450_v41  ;;  %v7504_v41 = vld [vmem:[#allocation8 + $0x72c] ss:$16 sps:$4 sm:$0xff]  }
 0x356   :  { %v3768_v9 = vpop.f32.mrb[4].mxu0  ;;  %v8026_v23 = vpop.f32.mrb[4].mxu1 }
 0x357   :  { %v7060_v56 = vadd.f32 %v3768_v9, %v702_v48  ;;  %v3770_v60 = vpop.f32.mrb[5].mxu0  ;;  %v3934_v25 = vpop.f32.mrb[5].mxu1  ;;  %v7510_v48 = vld [vmem:[#allocation8 + $0x74c] ss:$16 sps:$4 sm:$0xff]   ;;  %v7513_v9 = vld [vmem:[#allocation8 + $0x764] ss:$16 sps:$4 sm:$0xff]  }
 0x358   :  { %v7061_v61 = vadd.f32 %v3770_v60, %v706_v51  ;;  %v3772_v62 = vpop.f32.mrb[6].mxu0  ;;  %v7063_v1 = vadd.f32 %v3934_v25, %v714_v52  ;;  %v3936_v2 = vpop.f32.mrb[6].mxu1  ;;  %v7505_v51 = vld [vmem:[#allocation8 + $0x740] ss:$16 sps:$4 sm:$0xff]   ;;  %v7508_v52 = vld [vmem:[#allocation8 + $0x748] ss:$16 sps:$4 sm:$0xff]  }
 0x359   :  { %v3943_v0 = vmax.f32 %v7060_v56, 0.0  ;;  %v3773_v3 = vpop.f32.mrb[7].mxu0  ;;  %v3937_v5 = vpop.f32.mrb[7].mxu1  ;;  %v7516_v56 = vld [vmem:[#allocation8 + $0x76c] ss:$16 sps:$4 sm:$0xff]   ;;  %v709_v2 = vsub.s32 6, %v7899_v44 }
 0x35a   :  { %v3944_v53 = vmax.f32 %v7061_v61, 0.0  ;;  %v3946_v7 = vmax.f32 %v7063_v1, 0.0  ;;  %v7511_v60 = vld [vmem:[#allocation8 + $0x760] ss:$16 sps:$4 sm:$0xff]   ;;  %v7514_v61 = vld [vmem:[#allocation8 + $0x768] ss:$16 sps:$4 sm:$0xff]  }
 0x35b   :  { %v3951_v11 = vpack.c.bf16 %v3943_v0, %v3943_v0  ;;  %v7519_v25 = vld [vmem:[#allocation8 + $0x784] ss:$16 sps:$4 sm:$0xff]   ;;  %v7522_v62 = vld [vmem:[#allocation8 + $0x78c] ss:$16 sps:$4 sm:$0xff]   ;;  %v7517_v0 = vld [vmem:[#allocation8 + $0x780] ss:$16 sps:$4 sm:$0xff]  }
 0x35c   :  { %v3952_v36 = vpack.c.bf16 %v3944_v53, %v3944_v53  ;;  %v3954_v33 = vpack.c.bf16 %v3946_v7, %v3946_v7  ;;  %v7520_v1 = vld [vmem:[#allocation8 + $0x788] ss:$16 sps:$4 sm:$0xff]   ;;  %v7525_v3 = vld [vmem:[#allocation8 + $0x7a4] ss:$16 sps:$4 sm:$0xff]   ;;  %v7528_v53 = vld [vmem:[#allocation8 + $0x7ac] ss:$16 sps:$4 sm:$0xff]  }
 0x35d   :  { %v7523_v5 = vld [vmem:[#allocation8 + $0x7a0] ss:$16 sps:$4 sm:$0xff]   ;;  %v7526_v7 = vld [vmem:[#allocation8 + $0x7a8] ss:$16 sps:$4 sm:$0xff]  }
 0x35e   :  { %5627 = vmatprep.mubr.bf16.mxu0 %v3952_v36  ;;  %5791 = vmatprep.mubr.bf16.mxu1 %v3952_v36  ;;  %v7573_v36 = vld [vmem:[#allocation7] sm:$0xff] }
 0x35f   :  { %5628 = vmatmul.mubr.bf16.vlgmr.msra.gmra.mrb[8].mxu0 %v3951_v11  ;;  %5792 = vmatmul.mubr.bf16.vlgmr.msra.gmra.mrb[8].mxu1 %v3951_v11  ;;  %v7534_v11 = vld [vmem:[#allocation8 + $0x7cc] ss:$16 sps:$4 sm:$0xff]  }
 0x360   :  { %5637 = vmatpush1.bf16.msra.mxu0 %v7445_v8  ;;  %5801 = vmatpush1.bf16.msra.mxu1 %v7448_v10  ;;  %v710_v8 = vrot.slane %v7573_v36, %v709_v2  ;;  %v7531_v10 = vld [vmem:[#allocation8 + $0x7c4] ss:$16 sps:$4 sm:$0xff]  }
 0x361   :  { %5668 = vmatprep.mubr.bf16.mxu0 %v3954_v33  ;;  %5832 = vmatprep.mubr.bf16.mxu1 %v3954_v33 }
 0x362   :  { %5638 = vmatprep.subr.bf16.mxu0 %v7453_v58  ;;  %5802 = vmatprep.subr.bf16.mxu1 %v7456_v12  ;;  %v7529_v58 = vld [vmem:[#allocation8 + $0x7c0] ss:$16 sps:$4 sm:$0xff]   ;;  %v7532_v12 = vld [vmem:[#allocation8 + $0x7c8] ss:$16 sps:$4 sm:$0xff]   ;;  %v7062_v33 = vadd.f32 %v8026_v23, %v710_v8 }
 0x363   :  { %v7545_v23 = vld [vmem:[#allocation11 + $0x48] sm:$0xff]  }
 0x364   :  { %5639 = vmatpush1.bf16.msra.mxu0 %v7451_v14  ;;  %5803 = vmatpush1.bf16.msra.mxu1 %v7454_v15  ;;  %v7537_v14 = vld [vmem:[#allocation8 + $0x7e4] ss:$16 sps:$4 sm:$0xff]   ;;  %v7540_v15 = vld [vmem:[#allocation8 + $0x7ec] ss:$16 sps:$4 sm:$0xff]  }
 0x365   :  { %5640 = vmatprep.subr.bf16.mxu0 %v7459_v17  ;;  %5804 = vmatprep.subr.bf16.mxu1 %v7462_v50  ;;  %v7535_v17 = vld [vmem:[#allocation8 + $0x7e0] ss:$16 sps:$4 sm:$0xff]   ;;  %v7538_v50 = vld [vmem:[#allocation8 + $0x7e8] ss:$16 sps:$4 sm:$0xff]  }
 0x368   :  { %5641 = vmatpush1.bf16.msra.mxu0 %v7457_v4  ;;  %5805 = vmatpush1.bf16.msra.mxu1 %v7460_v18  ;;  %v3945_v4 = vmax.f32 %v7062_v33, 0.0  ;;  %v7541_v18 = vld [vmem:[#allocation11 + $0x40] sm:$0xff]  }
 0x369   :  { %5642 = vmatprep.subr.bf16.mxu0 %v7465_v19  ;;  %5806 = vmatprep.subr.bf16.mxu1 %v7468_v59  ;;  %v7542_v19 = vld [vmem:[#allocation11 + $0xc0] sm:$0xff]  }
 0x36a   :  { %v7543_v59 = vld [vmem:[#allocation11] sm:$0xff]  }
 0x36c   :  { %5643 = vmatpush1.bf16.msra.mxu0 %v7463_v20  ;;  %5807 = vmatpush1.bf16.msra.mxu1 %v7466_v22  ;;  %v7544_v20 = vld [vmem:[#allocation11 + $0x80] sm:$0xff]   ;;  %v3953_v22 = vpack.c.bf16 %v3945_v4, %v3945_v4 }
 0x36d   :  { %5644 = vmatprep.subr.bf16.mxu0 %v7471_v24  ;;  %5808 = vmatprep.subr.bf16.mxu1 %v7474_v21  ;;  %v7546_v24 = vld [vmem:[#allocation11 + $0xc8] sm:$0xff]  }
 0x36e   :  { %v7547_v21 = vld [vmem:[#allocation11 + $0x8] sm:$0xff]  }
 0x370   :  { %5645 = vmatpush1.bf16.msra.mxu0 %v7469_v26  ;;  %5809 = vmatpush1.bf16.msra.mxu1 %v7472_v45  ;;  %v7548_v26 = vld [vmem:[#allocation11 + $0x88] sm:$0xff]   ;;  %v7549_v45 = vld [vmem:[#allocation11 + $0x50] sm:$0xff]  }
 0x371   :  { %5646 = vmatprep.subr.bf16.mxu0 %v7477_v27  ;;  %5810 = vmatprep.subr.bf16.mxu1 %v7480_v13  ;;  %v7550_v27 = vld [vmem:[#allocation11 + $0xd0] sm:$0xff]  }
 0x372   :  { %v7551_v13 = vld [vmem:[#allocation11 + $0x10] sm:$0xff]  }
 0x374   :  { %5647 = vmatpush1.bf16.msra.mxu0 %v7475_v28  ;;  %5811 = vmatpush1.bf16.msra.mxu1 %v7478_v29  ;;  %v7552_v28 = vld [vmem:[#allocation11 + $0x90] sm:$0xff]   ;;  %v7553_v29 = vld [vmem:[#allocation11 + $0x58] sm:$0xff]  }
 0x375   :  { %5648 = vmatprep.subr.bf16.mxu0 %v7483_v16  ;;  %5812 = vmatprep.subr.bf16.mxu1 %v7486_v30  ;;  %v7554_v16 = vld [vmem:[#allocation11 + $0xd8] sm:$0xff]  }
 0x376   :  { %v7555_v30 = vld [vmem:[#allocation11 + $0x18] sm:$0xff]  }
 0x378   :  { %5649 = vmatpush1.bf16.msra.mxu0 %v7481_v31  ;;  %5813 = vmatpush1.bf16.msra.mxu1 %v7484_v32  ;;  %v7556_v31 = vld [vmem:[#allocation11 + $0x98] sm:$0xff]   ;;  %v7557_v32 = vld [vmem:[#allocation11 + $0x60] sm:$0xff]  }
 0x379   :  { %5650 = vmatprep.subr.bf16.mxu0 %v7489_v34  ;;  %5814 = vmatprep.subr.bf16.mxu1 %v7492_v57  ;;  %v7558_v34 = vld [vmem:[#allocation11 + $0xe0] sm:$0xff]  }
 0x37a   :  { %v7559_v57 = vld [vmem:[#allocation11 + $0x20] sm:$0xff]  }
 0x37c   :  { %5651 = vmatpush1.bf16.msra.mxu0 %v7487_v35  ;;  %5815 = vmatpush1.bf16.msra.mxu1 %v7490_v63  ;;  %v7560_v35 = vld [vmem:[#allocation11 + $0xa0] sm:$0xff]   ;;  %v7561_v63 = vld [vmem:[#allocation11 + $0x68] sm:$0xff]  }
 0x37d   :  { %5652 = vmatprep.subr.bf16.mxu0 %v7495_v37  ;;  %5816 = vmatprep.subr.bf16.mxu1 %v7498_v49  ;;  %v7562_v37 = vld [vmem:[#allocation11 + $0xe8] sm:$0xff]  }
 0x37e   :  { %v7563_v49 = vld [vmem:[#allocation11 + $0x28] sm:$0xff]  }
 0x380   :  { %5653 = vmatpush1.bf16.msra.mxu0 %v7493_v38  ;;  %5817 = vmatpush1.bf16.msra.mxu1 %v7496_v39  ;;  %v7564_v38 = vld [vmem:[#allocation11 + $0xa8] sm:$0xff]   ;;  %v7565_v39 = vld [vmem:[#allocation11 + $0x70] sm:$0xff]  }
 0x381   :  { %5654 = vmatprep.subr.bf16.mxu0 %v7501_v40  ;;  %5818 = vmatprep.subr.bf16.mxu1 %v7504_v41  ;;  %v7566_v40 = vld [vmem:[#allocation11 + $0xf0] sm:$0xff]  }
 0x382   :  { %v7567_v41 = vld [vmem:[#allocation11 + $0x30] sm:$0xff]  }
 0x384   :  { %5655 = vmatpush1.bf16.msra.mxu0 %v7499_v42  ;;  %5819 = vmatpush1.bf16.msra.mxu1 %v7502_v46  ;;  %v7568_v42 = vld [vmem:[#allocation11 + $0xb0] sm:$0xff]   ;;  %v7569_v46 = vld [vmem:[#allocation11 + $0x78] sm:$0xff]  }
 0x385   :  { %5656 = vmatprep.subr.bf16.mxu0 %v7507_v47  ;;  %5820 = vmatprep.subr.bf16.mxu1 %v7510_v48  ;;  %v7570_v47 = vld [vmem:[#allocation11 + $0xf8] sm:$0xff]  }
 0x386   :  { %v7571_v48 = vld [vmem:[#allocation11 + $0x38] sm:$0xff]  }
 0x388   :  { %5657 = vmatpush1.bf16.msra.mxu0 %v7505_v51  ;;  %5821 = vmatpush1.bf16.msra.mxu1 %v7508_v52  ;;  %v7572_v51 = vld [vmem:[#allocation11 + $0xb8] sm:$0xff]  }
 0x389   :  { %5658 = vmatprep.subr.bf16.mxu0 %v7513_v9  ;;  %5822 = vmatprep.subr.bf16.mxu1 %v7516_v56  ;;  %v4211_v52 = vld [vmem:[#allocation10] sm:$0xf] }
 0x38a   :  { %v4216_v9 = vrot.slane %v4211_v52, %v685_v6  ;;  %v4224_v56 = vrot.slane %v4211_v52, %v693_v54 }
 0x38c   :  { %5659 = vmatpush1.bf16.msra.mxu0 %v7511_v60  ;;  %5823 = vmatpush1.bf16.msra.mxu1 %v7514_v61  ;;  %v4220_v60 = vrot.slane %v4211_v52, %v689_v55  ;;  %v4228_v61 = vrot.slane %v4211_v52, %v697_v43 }
 0x38d   :  { %5660 = vmatprep.subr.bf16.mxu0 %v7519_v25  ;;  %5824 = vmatprep.subr.bf16.mxu1 %v7522_v62 }
 0x390   :  { %5661 = vmatpush1.bf16.msra.mxu0 %v7517_v0  ;;  %5825 = vmatpush1.bf16.msra.mxu1 %v7520_v1 }
 0x391   :  { %5662 = vmatprep.subr.bf16.mxu0 %v7525_v3  ;;  %5826 = vmatprep.subr.bf16.mxu1 %v7528_v53 }
 0x394   :  { %5663 = vmatpush1.bf16.msra.mxu0 %v7523_v5  ;;  %5827 = vmatpush1.bf16.msra.mxu1 %v7526_v7 }
 0x395   :  { %5664 = vmatprep.subr.bf16.mxu0 %v7531_v10  ;;  %5828 = vmatprep.subr.bf16.mxu1 %v7534_v11 }
 0x398   :  { %5665 = vmatpush1.bf16.msra.mxu0 %v7529_v58  ;;  %5829 = vmatpush1.bf16.msra.mxu1 %v7532_v12 }
 0x399   :  { %5666 = vmatprep.subr.bf16.mxu0 %v7537_v14  ;;  %5830 = vmatprep.subr.bf16.mxu1 %v7540_v15  ;;  %v6979_v15 = vld [vmem:[#allocation13] ss:$0 sm:$0xff] }
 0x39c   :  { %5667 = vmatpush1.bf16.msra.mxu0 %v7535_v17  ;;  %5831 = vmatpush1.bf16.msra.mxu1 %v7538_v50 }
 0x39d   :  { %7012 = vmatprep.subr.bf16.mxu0 %v7541_v18  ;;  %7034 = vmatprep.subr.bf16.mxu1 %v7542_v19 }
 0x39f   :  { %5669 = vmatmul.mubr.bf16.vlgmr.msra.gmra.mrb[8].mxu0 %v3953_v22  ;;  %5833 = vmatmul.mubr.bf16.vlgmr.msra.gmra.mrb[8].mxu1 %v3953_v22 }
 0x3a0   :  { %7013 = vmatpush3.bf16.msra.mxu0 %v7543_v59  ;;  %7035 = vmatpush3.bf16.msra.mxu1 %v7544_v20 }
 0x3a1   :  { %7014 = vmatprep.subr.bf16.mxu0 %v7545_v23  ;;  %7036 = vmatprep.subr.bf16.mxu1 %v7546_v24 }
 0x3a4   :  { %7015 = vmatpush3.bf16.msra.mxu0 %v7547_v21  ;;  %7037 = vmatpush3.bf16.msra.mxu1 %v7548_v26 }
 0x3a5   :  { %7016 = vmatprep.subr.bf16.mxu0 %v7549_v45  ;;  %7038 = vmatprep.subr.bf16.mxu1 %v7550_v27 }
 0x3a8   :  { %7017 = vmatpush3.bf16.msra.mxu0 %v7551_v13  ;;  %7039 = vmatpush3.bf16.msra.mxu1 %v7552_v28 }
 0x3a9   :  { %7018 = vmatprep.subr.bf16.mxu0 %v7553_v29  ;;  %7040 = vmatprep.subr.bf16.mxu1 %v7554_v16 }
 0x3ac   :  { %7019 = vmatpush3.bf16.msra.mxu0 %v7555_v30  ;;  %7041 = vmatpush3.bf16.msra.mxu1 %v7556_v31 }
 0x3ad   :  { %7020 = vmatprep.subr.bf16.mxu0 %v7557_v32  ;;  %7042 = vmatprep.subr.bf16.mxu1 %v7558_v34 }
 0x3b0   :  { %7021 = vmatpush3.bf16.msra.mxu0 %v7559_v57  ;;  %7043 = vmatpush3.bf16.msra.mxu1 %v7560_v35 }
 0x3b1   :  { %7022 = vmatprep.subr.bf16.mxu0 %v7561_v63  ;;  %7044 = vmatprep.subr.bf16.mxu1 %v7562_v37 }
 0x3b4   :  { %7023 = vmatpush3.bf16.msra.mxu0 %v7563_v49  ;;  %7045 = vmatpush3.bf16.msra.mxu1 %v7564_v38 }
 0x3b5   :  { %7024 = vmatprep.subr.bf16.mxu0 %v7565_v39  ;;  %7046 = vmatprep.subr.bf16.mxu1 %v7566_v40 }
 0x3b8   :  { %7025 = vmatpush3.bf16.msra.mxu0 %v7567_v41  ;;  %7047 = vmatpush3.bf16.msra.mxu1 %v7568_v42 }
 0x3b9   :  { %7026 = vmatprep.subr.bf16.mxu0 %v7569_v46  ;;  %7048 = vmatprep.subr.bf16.mxu1 %v7570_v47 }
 0x3bc   :  { %7027 = vmatpush3.bf16.msra.mxu0 %v7571_v48  ;;  %7049 = vmatpush3.bf16.msra.mxu1 %v7572_v51 }
 0x472   :  { %v5670_v25 = vpop.f32.mrb[8].mxu0  ;;  %v5834_v62 = vpop.f32.mrb[8].mxu1 }
 0x473   :  { %v7064_v0 = vadd.f32 %v5670_v25, %v4216_v9  ;;  %v7066_v1 = vadd.f32 %v5834_v62, %v4224_v56  ;;  %v5672_v2 = vpop.f32.mrb[9].mxu0  ;;  %v5836_v3 = vpop.f32.mrb[9].mxu1 }
 0x474   :  { %v7065_v53 = vadd.f32 %v5672_v2, %v4220_v60  ;;  %v7067_v5 = vadd.f32 %v5836_v3, %v4228_v61  ;;  %v5674_v7 = vpop.f32.mrb[10].mxu0  ;;  %v5838_v36 = vpop.f32.mrb[10].mxu1 }
 0x475   :  { %v5841_v6 = vmax.f32 %v7064_v0, 0.0  ;;  %v5843_v8 = vmax.f32 %v7066_v1, 0.0  ;;  %v5675_v10 = vpop.f32.mrb[11].mxu0  ;;  %v5839_v54 = vpop.f32.mrb[11].mxu1 }
 0x476   :  { %v5842_v11 = vmax.f32 %v7065_v53, 0.0  ;;  %v5844_v58 = vmax.f32 %v7067_v5, 0.0 }
 0x477   :  { %v5845_v44 = vpack.c.bf16 %v5841_v6, %v5841_v6  ;;  %v5847_v43 = vpack.c.bf16 %v5843_v8, %v5843_v8 }
 0x478   :  { %v5846_v55 = vpack.c.bf16 %v5842_v11, %v5842_v11  ;;  %v5848_v12 = vpack.c.bf16 %v5844_v58, %v5844_v58 }
 0x47a   :  { %6144 = vmatprep.mubr.bf16.mxu0 %v5846_v55  ;;  %6184 = vmatprep.mubr.bf16.mxu1 %v5848_v12 }
 0x47b   :  { %6145 = vmatmul.mubr.bf16.vlgmr.msra.gmra.mrb[12].mxu0 %v5845_v44  ;;  %6185 = vmatmul.mubr.bf16.vlgmr.msra.gmra.mrb[12].mxu1 %v5847_v43 }
 0x54e   :  { %v7028_v33 = vpop.f32.mrb[12].mxu0  ;;  %v7050_v14 = vpop.f32.mrb[12].mxu1 }
 0x54f   :  { %v7029_v17 = vpop.f32.mrb[13].mxu0  ;;  %v7051_v50 = vpop.f32.mrb[13].mxu1 }
 0x550   :  { %v7030_v4 = vadd.f32 %v7029_v17, %v7028_v33  ;;  %v7052_v18 = vadd.f32 %v7051_v50, %v7050_v14  ;;  %v7031_v19 = vpop.f32.mrb[14].mxu0  ;;  %v7053_v59 = vpop.f32.mrb[14].mxu1 }
 0x551   :  { %v7032_v20 = vpop.f32.mrb[15].mxu0  ;;  %v7054_v22 = vpop.f32.mrb[15].mxu1 }
 0x552   :  { %v6147_v23 = vadd.f32 %v7030_v4, %v6979_v15 }
 0x554   :  { %v6187_v24 = vadd.f32 %v7052_v18, %v6147_v23 }
 0x556   :  { %6192 = vst [vmem:[#allocation14] sm:$0x3] %v6187_v24 }
 0x557   :  { %7739 = shalt.err (!%p7736_p4)
}
 0x558   :  { %s7740_s15 = scalar_lea.hbm %s8057_s7, 32 }
 0x559   :  { %p7741_p5 = scmp.ne.s32.totalorder %s8057_s7, %s7740_s15  ;;  %p7744_p6 = scmp.lt.u32.totalorder %s7740_s15, %s8057_s7 }
 0x55b   :  { %p7746_p7 = pnand %p7744_p6, %p7741_p5 }
 0x55d   :  { %7749 = shalt.err (!%p7746_p7)
}
 0x55e   :  { %6202 = dma.vmem_to_hbm [thread:$0]  %s6200_s13, 32, %s8057_s7, [#allocation4]  }
 0x55f   :  { %7758 = dma.done.wait [#allocation4], 32  }
 0x560   :  { %7759 = vsyncadd [#allocation4], 4294967264 }
 0x561   :  { %6206 = vsyncpa [#allocation3], 1 }
 0x562   :  { %6207 = vsyncpa [#allocation6], 1 }
 0x563   :  { %6208 = vsyncpa [#allocation9], 1 }
 0x564   :  { %6209 = vsyncpa [#allocation12], 1 }
 0x565   :  { %6210 = vsyncpa [#allocation4], 1 }

</bundles_post_ra>
